<compile_context>
chip_gen: v7x
topology: tpu7x:2x2x1
jax: 0.10.0
libtpu: 0.0.40
codegen_flags: <defaults>
</compile_context>

<pallas_src>
import math
from functools import partial

import jax
import jax.numpy as jnp
import numpy as np
from jax.experimental import pallas as pl
from jax.experimental.pallas import tpu as pltpu


# ---------------------------------------------------------------------------
# Deterministic "parameters": the 28x28 Hadamard matrix from hadamard_sizes[28]
# (loaded into RowParallelLinear(28, 28).weight as bf16) and the Sylvester
# Hadamard matrix implementing the FHT transform.
# ---------------------------------------------------------------------------
_H28_ROWS = [
    "++++++++++++++" "-+++++++++++++",
    "+++-++----++-+" "+-+-++----++-+",
    "++++-++----++-" "++-+-++----++-",
    "+-+++-++----++" "+-+-+-++----++",
    "++-+++-++----+" "++-+-+-++----+",
    "+++-+++-++----" "+++-+-+-++----",
    "+-++-+++-++---" "+-++-+-+-++---",
    "+--++-+++-++--" "+--++-+-+-++--",
    "+---++-+++-++-" "+---++-+-+-++-",
    "+----++-+++-++" "+----++-+-+-++",
    "++----++-+++-+" "++----++-+-+-+",
    "+++----++-+++-" "+++----++-+-+-",
    "+-++----++-+++" "+-++----++-+-+",
    "++-++----++-++" "++-++----++-+-",
    "-+++++++++++++" "--------------",
    "+-+-++----++-+" "---+--++++--+-",
    "++-+-++----++-" "----+--++++--+",
    "+-+-+-++----++" "-+---+--++++--",
    "++-+-+-++----+" "--+---+--++++-",
    "+++-+-+-++----" "---+---+--++++",
    "+-++-+-+-++---" "-+--+---+--+++",
    "+--++-+-+-++--" "-++--+---+--++",
    "+---++-+-+-++-" "-+++--+---+--+",
    "+----++-+-+-++" "-++++--+---+--",
    "++----++-+-+-+" "--++++--+---+-",
    "+++----++-+-+-" "---++++--+---+",
    "+-++----++-+-+" "-+--++++--+---",
    "++-++----++-+-" "--+--++++--+--",
]


def hadamard_28() -> np.ndarray:
    assert len(_H28_ROWS) == 28
    for r in _H28_ROWS:
        assert len(r) == 28
    return np.array(
        [[1.0 if ch == "+" else -1.0 for ch in row] for row in _H28_ROWS],
        dtype=np.float32,
    )


def sylvester_hadamard(n: int) -> np.ndarray:
    """Hadamard matrix in natural (Sylvester) order — the ordering used by FHT."""
    assert n & (n - 1) == 0, "Sylvester Hadamard needs a power-of-two size"
    H = np.ones((1, 1), dtype=np.float32)
    while H.shape[0] < n:
        H = np.block([[H, H], [H, -H]])
    return H


TB_SUB = 8  # tokens mixed per stage-2 block (I_8 (x) H_28 -> 224-deep MXU contraction)


def _round_up(a: int, m: int) -> int:
    return ((a + m - 1) // m) * m


def _hw_config():
    """(tb_max, min_steps, vmem_limit_bytes) by VMEM capacity (v5e/v6e vs v7x)."""
    tb_max, min_steps, vmem_limit = 64, 4, 48 * 1024 * 1024  # safe fallback
    try:
        info = pltpu.get_tpu_info()
        vmem = getattr(info, "vmem_capacity_bytes", None)
        if vmem is not None:
            if int(vmem) >= 96 * 1024 * 1024:
                # v5e / v6e class: 128 MiB VMEM, single TensorCore.
                tb_max, min_steps, vmem_limit = 128, 3, 80 * 1024 * 1024
            else:
                # v7x class: 64 MiB VMEM per TC, 2 TCs -> want >= 3 steps per core.
                tb_max, min_steps, vmem_limit = 64, 6, 48 * 1024 * 1024
    except Exception:
        pass
    return tb_max, min_steps, vmem_limit


def _choose_tb(T: int, bytes_per_token: int, tb_sub: int, tb_max: int, min_steps: int) -> int:
    """Tokens per grid step: each step should move >= ~2 MiB; keep >= min_steps steps
    when the problem is big enough; cap at tb_max; always a multiple of tb_sub."""
    min_tb = _round_up(max(tb_sub, -(-(2 << 20) // bytes_per_token)), tb_sub)
    if T <= min_tb:
        return _round_up(T, tb_sub)  # one grid step (tiny problem)
    tb = _round_up(max(min_tb, -(-T // min_steps)), tb_sub)
    return min(tb, _round_up(tb_max, tb_sub))


# ---------------------------------------------------------------------------
# Pallas kernel: one grid step processes tb tokens as (R = tb*28, C = 512) rows.
# ---------------------------------------------------------------------------
def _quarot_kernel(x_ref, hc_ref, bk_ref, o_ref, f_ref, *, rsub, valid_rows):
    x = x_ref[...]
    R, C = x.shape
    half = C // 2

    if valid_rows is not None:
        # Ragged last block: zero the padded (uninitialized VMEM) rows so the zero
        # entries of the block-diagonal stage-2 weight never multiply NaN/Inf garbage.
        row = jax.lax.broadcasted_iota(jnp.int32, (R, 1), 0) + pl.program_id(0) * R
        x = jnp.where(row < valid_rows, x, jnp.zeros_like(x))

    # Stage 1 — FHT via H_C = H_2 (x) H_{C/2} (Sylvester): VPU butterfly on the two
    # lane halves, then two MXU matmuls against the pre-scaled H_{C/2}.  Both halves
    # are written into one (R, C) VMEM scratch so stage 2 runs at N = C and the final
    # store is a single full-width vst.
    xl = x[:, :half]
    xh = x[:, half:]
    hc = hc_ref[...]
    f_ref[:, :half] = jnp.dot(
        xl + xh, hc, preferred_element_type=jnp.float32).astype(f_ref.dtype)
    f_ref[:, half:] = jnp.dot(
        xl - xh, hc, preferred_element_type=jnp.float32).astype(f_ref.dtype)

    # Stage 2 — mix the K=28 chunks of each token with H_28: one batched matmul with
    # the resident block-diagonal weight (I_{tb_sub} (x) H_28) per group of tb_sub
    # tokens (mixing never crosses token boundaries), then one full-width store.
    nsub = R // rsub
    f = f_ref[...].reshape(nsub, rsub, C)
    y = jnp.einsum("gij,gjc->gic", bk_ref[...], f,
                   preferred_element_type=jnp.float32)
    o_ref[...] = y.astype(o_ref.dtype).reshape(R, C)


def quarot_r4_forward(x, h_k, chunk_size, scale, *, tb_sub=TB_SUB):
    """QuaRotR4 forward (world_size == 1).

    x: (..., hidden) with hidden = K * chunk_size;  h_k: (K, K) Hadamard weight;
    scale = 1/sqrt(hidden).
    """
    og_shape = x.shape
    K = int(h_k.shape[0])
    C = int(chunk_size)
    Ch = C // 2
    total = x.size
    assert total % (K * C) == 0, "element count must be divisible by K * chunk_size"
    T = total // (K * C)
    assert T >= 1
    rows = T * K
    xr = x.reshape(rows, C)  # one FHT chunk per row (free view)

    # --- generation-aware block sizing ---------------------------------------
    tb_max, min_steps, vmem_limit = _hw_config()
    bytes_per_token = 2 * K * C * x.dtype.itemsize  # in + out HBM traffic per token
    tb = _choose_tb(T, bytes_per_token, tb_sub, tb_max, min_steps)
    R = tb * K
    rsub = tb_sub * K
    nsub = tb // tb_sub

    # --- ragged-tail handling --------------------------------------------------
    valid_rows = None
    if T % tb != 0:
        if T < tb:
            # Single partial block: zero-pad host-side (tiny copy) so the block never
            # exceeds the array and no in-kernel masking is needed.
            xr = jnp.pad(xr, ((0, R - rows), (0, 0)))
        else:
            # Multi-step ragged last block: mask in-kernel (avoids copying x in HBM).
            valid_rows = rows
    in_rows = xr.shape[0]
    num_steps = in_rows // R if in_rows % R == 0 else pl.cdiv(in_rows, R)

    # --- resident constants ----------------------------------------------------
    # Scale folded into H_{C/2} on the host (f32 multiply, then cast to x.dtype).
    hc = jnp.asarray(sylvester_hadamard(Ch) * float(scale), dtype=x.dtype)
    # Stage-2 operator I_{tb_sub} (x) H_28, broadcast over the per-step groups.
    bk = jnp.kron(np.eye(tb_sub, dtype=np.float32),
                  np.asarray(jnp.asarray(h_k, dtype=jnp.float32))).astype(x.dtype)
    bk_b = jnp.broadcast_to(bk, (nsub, rsub, rsub))

    flops = rows * (4 * Ch * Ch + 2 * rsub * C)
    bytes_accessed = (2 * rows * C * x.dtype.itemsize
                      + hc.size * hc.dtype.itemsize
                      + bk_b.size * bk_b.dtype.itemsize)

    out = pl.pallas_call(
        partial(_quarot_kernel, rsub=rsub, valid_rows=valid_rows),
        out_shape=jax.ShapeDtypeStruct((in_rows, C), x.dtype),
        grid_spec=pltpu.PrefetchScalarGridSpec(
            num_scalar_prefetch=0,
            grid=(num_steps,),
            in_specs=[
                pl.BlockSpec((R, C), lambda i: (i, 0)),            # activations
                pl.BlockSpec((Ch, Ch), lambda i: (0, 0)),          # scaled H_{C/2}
                pl.BlockSpec((nsub, rsub, rsub), lambda i: (0, 0, 0)),  # I (x) H_28
            ],
            out_specs=pl.BlockSpec((R, C), lambda i: (i, 0)),
            scratch_shapes=[pltpu.VMEM((R, C), x.dtype)],          # stage-1 result
        ),
        compiler_params=pltpu.CompilerParams(
            dimension_semantics=("parallel",),
            vmem_limit_bytes=int(vmem_limit),
        ),
        cost_estimate=pl.CostEstimate(
            flops=int(flops), transcendentals=0, bytes_accessed=int(bytes_accessed)),
    )(xr, hc, bk_b)

    if out.shape[0] != rows:
        out = out[:rows]
    return out.reshape(og_shape)


# TODO(synk): tensor-parallel path (matrix_multiply_via_linear with world_size > 1,
# rank slicing) is not implemented — this kernel covers the world_size == 1 branch.

if __name__ == "__main__":
    SIZE_K = 28
    SIZE_FHT = 512                      # FHT_512 branch (Llama-8B style)
    HIDDEN = SIZE_K * SIZE_FHT          # actual_input_size = 14336
    B, S = 2, 16                        # small batch/seq -> T = 32 tokens

    h_k = jnp.asarray(hadamard_28(), dtype=jnp.bfloat16)   # hadamard_k.weight (bf16)
    scale = 1.0 / math.sqrt(HIDDEN)                         # 1/sqrt(actual_input_size)

    key = jax.random.PRNGKey(0)
    x = jax.random.normal(key, (B, S, HIDDEN), dtype=jnp.float32).astype(jnp.bfloat16)

    y = quarot_r4_forward(x, h_k, SIZE_FHT, scale)
    y = jax.block_until_ready(y)

    # Pure-JAX reference mirroring the torch forward (FHT, bf16 round, H_28 matmul).
    h_c = jnp.asarray(sylvester_hadamard(SIZE_FHT), dtype=jnp.float32)
    xf = x.reshape(-1, SIZE_FHT).astype(jnp.float32)
    fht = (xf @ h_c) * scale
    fht = fht.astype(jnp.bfloat16).reshape(-1, SIZE_K, SIZE_FHT)
    ref = jnp.einsum("kj,tjc->tkc", h_k.astype(jnp.float32), fht.astype(jnp.float32))
    ref = ref.astype(jnp.bfloat16).reshape(x.shape)

    err = float(jnp.max(jnp.abs(y.astype(jnp.float32) - ref.astype(jnp.float32))))
    assert y.shape == x.shape and y.dtype == x.dtype
    assert err < 0.1, f"max abs error too large: {err}"
    print("KERNEL_OK")
</pallas_src>

<mosaic_0001>
module attributes {stable_mosaic.version = 11 : i64} {
  func.func @_quarot_kernel(%arg0: i32, %arg1: memref<896x512xbf16, #tpu.memory_space<vmem>>, %arg2: memref<256x256xbf16, #tpu.memory_space<vmem>>, %arg3: memref<4x224x224xbf16, #tpu.memory_space<vmem>>, %arg4: memref<896x512xbf16, #tpu.memory_space<vmem>>, %arg5: memref<896x512xbf16, #tpu.memory_space<vmem>>) attributes {dimension_semantics = [#tpu.dimension_semantics<parallel>], iteration_bounds = array<i64: 1>, scalar_prefetch = 0 : i64, scratch_operands = 1 : i64, tpu.core_type = #tpu.core_type<tc>, window_params = [{transform_indices = @transform_0, window_bounds = array<i64: 896, 512>}, {pipeline_mode = #tpu.pipeline_mode<synchronous>, transform_indices = @transform_1, window_bounds = array<i64: 256, 256>}, {pipeline_mode = #tpu.pipeline_mode<synchronous>, transform_indices = @transform_2, window_bounds = array<i64: 4, 224, 224>}, {transform_indices = @transform_3, window_bounds = array<i64: 896, 512>}]} {
    %c0 = arith.constant 0 : index
    %c0_0 = arith.constant 0 : index
    %0 = vector.load %arg1[%c0, %c0_0] : memref<896x512xbf16, #tpu.memory_space<vmem>>, vector<896x512xbf16>
    %1 = vector.extract_strided_slice %0 {offsets = [0, 0], sizes = [896, 256], strides = [1, 1]} : vector<896x512xbf16> to vector<896x256xbf16>
    %2 = vector.extract_strided_slice %0 {offsets = [0, 256], sizes = [896, 256], strides = [1, 1]} : vector<896x512xbf16> to vector<896x256xbf16>
    %c0_1 = arith.constant 0 : index
    %c0_2 = arith.constant 0 : index
    %3 = vector.load %arg2[%c0_1, %c0_2] : memref<256x256xbf16, #tpu.memory_space<vmem>>, vector<256x256xbf16>
    %4 = arith.addf %1, %2 : vector<896x256xbf16>
    %cst = arith.constant dense<0.000000e+00> : vector<896x256xf32>
    %5 = tpu.matmul %4, %3, %cst {dimension_numbers = #tpu.dot_dimension_numbers<[1], [0], [0], [1], [0, 0, 1, 1], [], []>} : vector<896x256xbf16>, vector<256x256xbf16>, vector<896x256xf32> -> vector<896x256xf32>
    %6 = arith.truncf %5 : vector<896x256xf32> to vector<896x256xbf16>
    %c0_3 = arith.constant 0 : index
    %c0_4 = arith.constant 0 : index
    %7 = vector.load %arg5[%c0_3, %c0_4] : memref<896x512xbf16, #tpu.memory_space<vmem>>, vector<896x256xbf16>
    tpu.vector_store %arg5[%c0_3, %c0_4], %6 {strides = array<i32>} : memref<896x512xbf16, #tpu.memory_space<vmem>>, vector<896x256xbf16>,
    %8 = arith.subf %1, %2 : vector<896x256xbf16>
    %cst_5 = arith.constant dense<0.000000e+00> : vector<896x256xf32>
    %9 = tpu.matmul %8, %3, %cst_5 {dimension_numbers = #tpu.dot_dimension_numbers<[1], [0], [0], [1], [0, 0, 1, 1], [], []>} : vector<896x256xbf16>, vector<256x256xbf16>, vector<896x256xf32> -> vector<896x256xf32>
    %10 = arith.truncf %9 : vector<896x256xf32> to vector<896x256xbf16>
    %c0_6 = arith.constant 0 : index
    %c256 = arith.constant 256 : index
    %11 = vector.load %arg5[%c0_6, %c256] : memref<896x512xbf16, #tpu.memory_space<vmem>>, vector<896x256xbf16>
    tpu.vector_store %arg5[%c0_6, %c256], %10 {strides = array<i32>} : memref<896x512xbf16, #tpu.memory_space<vmem>>, vector<896x256xbf16>,
    %c0_7 = arith.constant 0 : index
    %c0_8 = arith.constant 0 : index
    %12 = vector.load %arg5[%c0_7, %c0_8] : memref<896x512xbf16, #tpu.memory_space<vmem>>, vector<896x512xbf16>
    %13 = vector.shape_cast %12 : vector<896x512xbf16> to vector<4x224x512xbf16>
    %c0_9 = arith.constant 0 : index
    %c0_10 = arith.constant 0 : index
    %c0_11 = arith.constant 0 : index
    %14 = vector.load %arg3[%c0_9, %c0_10, %c0_11] : memref<4x224x224xbf16, #tpu.memory_space<vmem>>, vector<4x224x224xbf16>
    "tpu.trace_start"() <{level = 10 : i32, message = "gij,gjc->gic"}> : () -> ()
    %cst_12 = arith.constant dense<0.000000e+00> : vector<4x224x512xf32>
    %15 = tpu.matmul %14, %13, %cst_12 {dimension_numbers = #tpu.dot_dimension_numbers<[2], [1], [1], [2], [0, 0, 0, 1, 1, 2], [0], [0]>} : vector<4x224x224xbf16>, vector<4x224x512xbf16>, vector<4x224x512xf32> -> vector<4x224x512xf32>
    "tpu.trace_stop"() : () -> ()
    %16 = arith.truncf %15 : vector<4x224x512xf32> to vector<4x224x512xbf16>
    %17 = vector.shape_cast %16 : vector<4x224x512xbf16> to vector<896x512xbf16>
    %c0_13 = arith.constant 0 : index
    %c0_14 = arith.constant 0 : index
    %18 = vector.load %arg4[%c0_13, %c0_14] : memref<896x512xbf16, #tpu.memory_space<vmem>>, vector<896x512xbf16>
    tpu.vector_store %arg4[%c0_13, %c0_14], %17 {strides = array<i32>} : memref<896x512xbf16, #tpu.memory_space<vmem>>, vector<896x512xbf16>,
    return
  }
  func.func @transform_0(%arg0: i32) -> (i32, i32) {
    %c0_i32 = arith.constant 0 : i32
    %c0_i32_0 = arith.constant 0 : i32
    return %arg0, %c0_i32 : i32, i32
  }
  func.func @transform_1(%arg0: i32) -> (i32, i32) {
    %c0_i32 = arith.constant 0 : i32
    %c0_i32_0 = arith.constant 0 : i32
    %c0_i32_1 = arith.constant 0 : i32
    return %c0_i32, %c0_i32_0 : i32, i32
  }
  func.func @transform_2(%arg0: i32) -> (i32, i32, i32) {
    %c0_i32 = arith.constant 0 : i32
    %c0_i32_0 = arith.constant 0 : i32
    %c0_i32_1 = arith.constant 0 : i32
    %c0_i32_2 = arith.constant 0 : i32
    return %c0_i32, %c0_i32_0, %c0_i32_1 : i32, i32, i32
  }
  func.func @transform_3(%arg0: i32) -> (i32, i32) {
    %c0_i32 = arith.constant 0 : i32
    %c0_i32_0 = arith.constant 0 : i32
    return %arg0, %c0_i32 : i32, i32
  }
}

</mosaic_0001>

<bundles_post_ra>
// kernel: tpu_custom_call.1
= control target key start
LH: loop header
LB: loop body
LE: loop exit
PB: predicated region body
PF: predicated region fallthrough
CT: control target
= control target key end

     0   :  { %8 = vsyncpa [#allocation4], 0  ;;  %s10386_s0 = inlined_call_operand.hbm [shape: bf16[896,512], index: 0, kind: input, shape index: {}]   ;;  %s10387_s1 = inlined_call_operand.hbm [shape: bf16[256,256], index: 1, kind: input, shape index: {}]   ;;  %s10388_s2 = inlined_call_operand.hbm [shape: bf16[4,224,224], index: 2, kind: input, shape index: {}]   ;;  %s10389_s3 = inlined_call_operand.hbm [shape: bf16[896,512], index: 3, kind: output, shape index: {}]  }
   0x1   :  { %9 = vsyncpa [#allocation7], 0 }
   0x2   :  { %10 = vsyncpa [#allocation5], 0  ;;  %s8676_s12 = smov [#allocation6]   ;;  %s8582_s16 = scalar_lea.hbm %s10387_s1, 4096 }
   0x3   :  { %s28_s13 = sshll.u32 %s8676_s12, 4  ;;  %p8583_p0 = scmp.ne.s32.totalorder %s10387_s1, %s8582_s16  ;;  %s29_s13 = int_to_ptr.vmem [resolvable:$true] %s28_s13 }
   0x4   :  { %p8586_p1 = scmp.lt.u32.totalorder %s8582_s16, %s10387_s1 }
   0x6   :  { %p8588_p2 = pnand %p8586_p1, %p8583_p0 }
   0x8   :  { %8591 = shalt.err (!%p8588_p2)
}
   0x9   :  { %s8592_s21 = scalar_lea.vmem %s29_s13, 4096  ;;  %p8597_p4 = scmp.lt.s32.totalorder %s29_s13, %s29_s13 }
   0xa   :  { %p8593_p3 = scmp.ne.s32.totalorder %s29_s13, %s8592_s21  ;;  %p8598_p5 = scmp.lt.s32.totalorder %s8592_s21, %s8592_s21 }
   0xc   :  { %p8599_p6 = por %p8598_p5, %p8597_p4 }
   0xe   :  { %p8600_p7 = pnand %p8599_p6, %p8593_p3 }
  0x10   :  { %8603 = shalt.err (!%p8600_p7)
}
  0x11   :  { %s8677_s22 = smov 128   ;;  %s8678_s23 = smov 8  }
  0x12   :  { %34 = dma.hbm_to_vmem [thread:$0]  %s10387_s1, 4096, %s29_s13, [#allocation7], %s8677_s22, %s8677_s22, %s8678_s23  }
  0x13   :  { %s8679_s26 = smov [#allocation3]   ;;  %s8604_s30 = scalar_lea.hbm %s10386_s0, 28672 }
  0x14   :  { %s16_s27 = sshll.u32 %s8679_s26, 4  ;;  %p8605_p8 = scmp.ne.s32.totalorder %s10386_s0, %s8604_s30  ;;  %s17_s27 = int_to_ptr.vmem [resolvable:$true] %s16_s27 }
  0x15   :  { %p8608_p9 = scmp.lt.u32.totalorder %s8604_s30, %s10386_s0 }
  0x17   :  { %p8610_p10 = pnand %p8608_p9, %p8605_p8 }
  0x19   :  { %8613 = shalt.err (!%p8610_p10)
}
  0x1a   :  { %s8614_s8 = scalar_lea.vmem %s17_s27, 28672  ;;  %p8619_p12 = scmp.lt.s32.totalorder %s17_s27, %s17_s27 }
  0x1b   :  { %p8615_p11 = scmp.ne.s32.totalorder %s17_s27, %s8614_s8  ;;  %p8620_p13 = scmp.lt.s32.totalorder %s8614_s8, %s8614_s8 }
  0x1d   :  { %p8621_p0 = por %p8620_p13, %p8619_p12 }
  0x1f   :  { %p8622_p1 = pnand %p8621_p0, %p8615_p11 }
  0x21   :  { %8625 = shalt.err (!%p8622_p1)
}
  0x22   :  { %s8680_s1 = smov 256   ;;  %s8681_s9 = smov 16  }
  0x23   :  { %22 = dma.hbm_to_vmem [thread:$0]  %s10386_s0, 28672, %s17_s27, [#allocation4], %s8680_s1, %s8680_s1, %s8681_s9  }
  0x24   :  { %s8682_s12 = smov [#allocation8]   ;;  %s8626_s16 = scalar_lea.hbm %s10388_s2, 14336 }
  0x25   :  { %s40_s13 = sshll.u32 %s8682_s12, 4  ;;  %p8627_p2 = scmp.ne.s32.totalorder %s10388_s2, %s8626_s16  ;;  %s41_s13 = int_to_ptr.vmem [resolvable:$true] %s40_s13 }
  0x26   :  { %p8630_p3 = scmp.lt.u32.totalorder %s8626_s16, %s10388_s2 }
  0x28   :  { %p8632_p4 = pnand %p8630_p3, %p8627_p2 }
  0x2a   :  { %8635 = shalt.err (!%p8632_p4)
}
  0x2b   :  { %s8636_s21 = scalar_lea.vmem %s41_s13, 14336  ;;  %p8641_p6 = scmp.lt.s32.totalorder %s41_s13, %s41_s13 }
  0x2c   :  { %p8637_p5 = scmp.ne.s32.totalorder %s41_s13, %s8636_s21  ;;  %p8642_p7 = scmp.lt.s32.totalorder %s8636_s21, %s8636_s21 }
  0x2e   :  { %p8643_p8 = por %p8642_p7, %p8641_p6 }
  0x30   :  { %p8644_p9 = pnand %p8643_p8, %p8637_p5 }
  0x32   :  { %8647 = shalt.err (!%p8644_p9)
}
  0x33   :  { %46 = dma.hbm_to_vmem [thread:$0]  %s10388_s2, 14336, %s41_s13, [#allocation7], %s8677_s22, %s8677_s22, %s8678_s23  }
  0x34   :  { %8670 = dma.done.wait [#allocation4], 28672  }
  0x35   :  { %8671 = vsyncadd [#allocation4], 4294938624 }
  0x36   :  { %8672 = dma.done.wait [#allocation7], 18432  }
  0x37   :  { %8673 = vsyncadd [#allocation7], 4294948864  ;;  %v8366_v0 = vld [vmem:[#allocation6 + $0x4] ss:$8 sps:$4 sm:$0xff]   ;;  %v8368_v1 = vld [vmem:[#allocation6] ss:$8 sps:$4 sm:$0xff]  }
  0x38   :  { %1145 = vmatprep.subr.bf16.mxu0 %v8366_v0  ;;  %2634 = vmatprep.subr.bf16.mxu1 %v8366_v0  ;;  %v8369_v2 = vld [vmem:[#allocation6 + $0x14] ss:$8 sps:$4 sm:$0xff]   ;;  %v8371_v3 = vld [vmem:[#allocation6 + $0x10] ss:$8 sps:$4 sm:$0xff]   ;;  %v8372_v4 = vld [vmem:[#allocation6 + $0x24] ss:$8 sps:$4 sm:$0xff]  }
  0x39   :  { %1146 = vmatpush1.bf16.msra.mxu0 %v8368_v1  ;;  %2635 = vmatpush1.bf16.msra.mxu1 %v8368_v1  ;;  %v8374_v5 = vld [vmem:[#allocation6 + $0x20] ss:$8 sps:$4 sm:$0xff]   ;;  %v8375_v6 = vld [vmem:[#allocation6 + $0x34] ss:$8 sps:$4 sm:$0xff]   ;;  %v8377_v7 = vld [vmem:[#allocation6 + $0x30] ss:$8 sps:$4 sm:$0xff]  }
  0x3a   :  { %1147 = vmatprep.subr.bf16.mxu0 %v8369_v2  ;;  %2636 = vmatprep.subr.bf16.mxu1 %v8369_v2  ;;  %v8378_v8 = vld [vmem:[#allocation6 + $0x44] ss:$8 sps:$4 sm:$0xff]   ;;  %v8380_v9 = vld [vmem:[#allocation6 + $0x40] ss:$8 sps:$4 sm:$0xff]   ;;  %v8381_v10 = vld [vmem:[#allocation6 + $0x54] ss:$8 sps:$4 sm:$0xff]  }
  0x3b   :  { %v8383_v11 = vld [vmem:[#allocation6 + $0x50] ss:$8 sps:$4 sm:$0xff]   ;;  %v8384_v12 = vld [vmem:[#allocation6 + $0x64] ss:$8 sps:$4 sm:$0xff]   ;;  %v8386_v19 = vld [vmem:[#allocation6 + $0x60] ss:$8 sps:$4 sm:$0xff]  }
  0x3c   :  { %v57_v13 = vld [vmem:[#allocation3] sm:$0xff]  ;;  %v58_v14 = vld [vmem:[#allocation3 + $0x8] sm:$0xff]  ;;  %v59_v15 = vld [vmem:[#allocation3 + $0x10] sm:$0xff]  ;;  %vm3913_vm0 = vcmask 785408   ;;  %s8683_s2 = smov [#allocation9]  }
  0x3d   :  { %1148 = vmatpush1.bf16.msra.mxu0 %v8371_v3  ;;  %2637 = vmatpush1.bf16.msra.mxu1 %v8371_v3  ;;  %v60_v16 = vld [vmem:[#allocation3 + $0x18] sm:$0xff]  ;;  %v8749_v17 = vadd.bf16 %v58_v14, %v57_v13  ;;  %v8751_v18 = vsub.bf16 %v57_v13, %v58_v14  ;;  %v8390_v26 = vld [vmem:[#allocation6 + $0x84] ss:$8 sps:$4 sm:$0xff]   ;;  %v8392_v27 = vld [vmem:[#allocation6 + $0x80] ss:$8 sps:$4 sm:$0xff]   ;;  %s7417_s22 = sshll.u32 %s8683_s2, 4  ;;  %s7418_s22 = int_to_ptr.vmem [resolvable:$true] %s7417_s22 }
  0x3e   :  { %1149 = vmatprep.subr.bf16.mxu0 %v8372_v4  ;;  %2638 = vmatprep.subr.bf16.mxu1 %v8372_v4  ;;  %v8753_v20 = vadd.bf16 %v60_v16, %v59_v15  ;;  %v8755_v21 = vsub.bf16 %v59_v15, %v60_v16  ;;  %v8387_v22 = vld [vmem:[#allocation6 + $0x74] ss:$8 sps:$4 sm:$0xff]   ;;  %v8389_v25 = vld [vmem:[#allocation6 + $0x70] ss:$8 sps:$4 sm:$0xff]   ;;  %v8396_v30 = vld [vmem:[#allocation6 + $0xa4] ss:$8 sps:$4 sm:$0xff]   ;;  %p8653_p11 = scmp.lt.s32.totalorder %s7418_s22, %s7418_s22 }
  0x3f   :  { %v8393_v28 = vld [vmem:[#allocation6 + $0x94] ss:$8 sps:$4 sm:$0xff]   ;;  %v8395_v29 = vld [vmem:[#allocation6 + $0x90] ss:$8 sps:$4 sm:$0xff]   ;;  %v8398_v31 = vld [vmem:[#allocation6 + $0xa0] ss:$8 sps:$4 sm:$0xff]  }
  0x40   :  { %v7431_v23 = vcombine.high %v8749_v17, %v8753_v20  ;;  %v7575_v24 = vcombine.high %v8751_v18, %v8755_v21  ;;  %v8399_v32 = vld [vmem:[#allocation6 + $0xb4] ss:$8 sps:$4 sm:$0xff]   ;;  %v8401_v33 = vld [vmem:[#allocation6 + $0xb0] ss:$8 sps:$4 sm:$0xff]   ;;  %v8402_v34 = vld [vmem:[#allocation6 + $0xc4] ss:$8 sps:$4 sm:$0xff]   ;;  %v7430_v52 = vcombine.low %v8749_v17, %v8753_v20  ;;  %v7574_v53 = vcombine.low %v8751_v18, %v8755_v21 }
  0x41   :  { %1150 = vmatpush1.bf16.msra.mxu0 %v8374_v5  ;;  %2639 = vmatpush1.bf16.msra.mxu1 %v8374_v5  ;;  %v8404_v35 = vld [vmem:[#allocation6 + $0xc0] ss:$8 sps:$4 sm:$0xff]   ;;  %v8405_v36 = vld [vmem:[#allocation6 + $0xd4] ss:$8 sps:$4 sm:$0xff]   ;;  %v8407_v37 = vld [vmem:[#allocation6 + $0xd0] ss:$8 sps:$4 sm:$0xff]  }
  0x42   :  { %1151 = vmatprep.subr.bf16.mxu0 %v8375_v6  ;;  %2640 = vmatprep.subr.bf16.mxu1 %v8375_v6  ;;  %v8408_v38 = vld [vmem:[#allocation6 + $0xe4] ss:$8 sps:$4 sm:$0xff]   ;;  %v8410_v39 = vld [vmem:[#allocation6 + $0xe0] ss:$8 sps:$4 sm:$0xff]   ;;  %v8411_v42 = vld [vmem:[#allocation6 + $0xf4] ss:$8 sps:$4 sm:$0xff]  }
  0x43   :  { %1177 = vmatprep.mubr.bf16.mxu0 %v7431_v23  ;;  %2666 = vmatprep.mubr.bf16.mxu1 %v7575_v24  ;;  %v61_v40 = vld [vmem:[#allocation3 + $0x20] sm:$0xff]  ;;  %v62_v41 = vld [vmem:[#allocation3 + $0x28] sm:$0xff]  ;;  %v63_v43 = vld [vmem:[#allocation3 + $0x30] sm:$0xff]  ;;  %s8648_s23 = scalar_lea.vmem %s7418_s22, 28672 }
  0x44   :  { %v64_v44 = vld [vmem:[#allocation3 + $0x38] sm:$0xff]  ;;  %v315_v46 = vadd.bf16 %v62_v41, %v61_v40  ;;  %v1964_v48 = vsub.bf16 %v61_v40, %v62_v41  ;;  %v65_v50 = vld [vmem:[#allocation3 + $0x40] sm:$0xff]  ;;  %v66_v51 = vld [vmem:[#allocation3 + $0x48] sm:$0xff]  ;;  %p8649_p10 = scmp.ne.s32.totalorder %s7418_s22, %s8648_s23  ;;  %p8654_p12 = scmp.lt.s32.totalorder %s8648_s23, %s8648_s23 }
  0x45   :  { %1152 = vmatpush1.bf16.msra.mxu0 %v8377_v7  ;;  %2641 = vmatpush1.bf16.msra.mxu1 %v8377_v7  ;;  %v8413_v45 = vld [vmem:[#allocation6 + $0xf0] ss:$8 sps:$4 sm:$0xff]   ;;  %v316_v47 = vadd.bf16 %v64_v44, %v63_v43  ;;  %v1965_v49 = vsub.bf16 %v63_v43, %v64_v44  ;;  %v317_v58 = vadd.bf16 %v66_v51, %v65_v50  ;;  %v69_v62 = vld [vmem:[#allocation3 + $0x60] sm:$0xff]  ;;  %v70_v63 = vld [vmem:[#allocation3 + $0x68] sm:$0xff] }
  0x46   :  { %1153 = vmatprep.subr.bf16.mxu0 %v8378_v8  ;;  %2642 = vmatprep.subr.bf16.mxu1 %v8378_v8  ;;  %v67_v54 = vld [vmem:[#allocation3 + $0x50] sm:$0xff]  ;;  %v68_v55 = vld [vmem:[#allocation3 + $0x58] sm:$0xff]  ;;  %v1966_v60 = vsub.bf16 %v65_v50, %v66_v51  ;;  %v319_v6 = vadd.bf16 %v70_v63, %v69_v62  ;;  %v1968_v8 = vsub.bf16 %v69_v62, %v70_v63  ;;  %v85_v50 = vld [vmem:[#allocation3 + $0xe0] sm:$0xff]  ;;  %p8655_p13 = por %p8654_p12, %p8653_p11 }
  0x47   :  { %v7433_v56 = vcombine.high %v315_v46, %v316_v47  ;;  %v7577_v57 = vcombine.high %v1964_v48, %v1965_v49  ;;  %v318_v59 = vadd.bf16 %v68_v55, %v67_v54  ;;  %v1967_v61 = vsub.bf16 %v67_v54, %v68_v55  ;;  %v71_v2 = vld [vmem:[#allocation3 + $0x70] sm:$0xff]  ;;  %v72_v3 = vld [vmem:[#allocation3 + $0x78] sm:$0xff]  ;;  %v86_v51 = vld [vmem:[#allocation3 + $0xe8] sm:$0xff] }
  0x48   :  { %v7432_v0 = vcombine.low %v315_v46, %v316_v47  ;;  %v7576_v1 = vcombine.low %v1964_v48, %v1965_v49  ;;  %v320_v7 = vadd.bf16 %v72_v3, %v71_v2  ;;  %v75_v14 = vld [vmem:[#allocation3 + $0x90] sm:$0xff]  ;;  %v76_v15 = vld [vmem:[#allocation3 + $0x98] sm:$0xff]  ;;  %v327_v54 = vadd.bf16 %v86_v51, %v85_v50  ;;  %v89_v62 = vld [vmem:[#allocation3 + $0x100] sm:$0xff]  ;;  %p8656_p0 = pnand %p8655_p13, %p8649_p10 }
  0x49   :  { %1154 = vmatpush1.bf16.msra.mxu0 %v8380_v9  ;;  %2643 = vmatpush1.bf16.msra.mxu1 %v8380_v9  ;;  %v7435_v4 = vcombine.high %v317_v58, %v318_v59  ;;  %v7579_v5 = vcombine.high %v1966_v60, %v1967_v61  ;;  %v1969_v9 = vsub.bf16 %v71_v2, %v72_v3  ;;  %v83_v40 = vld [vmem:[#allocation3 + $0xd0] sm:$0xff]  ;;  %v84_v41 = vld [vmem:[#allocation3 + $0xd8] sm:$0xff]  ;;  %v90_v63 = vld [vmem:[#allocation3 + $0x108] sm:$0xff] }
  0x4a   :  { %1155 = vmatprep.subr.bf16.mxu0 %v8381_v10  ;;  %2644 = vmatprep.subr.bf16.mxu1 %v8381_v10  ;;  %v73_v10 = vld [vmem:[#allocation3 + $0x80] sm:$0xff]  ;;  %v7578_v13 = vcombine.low %v1966_v60, %v1967_v61  ;;  %v7437_v16 = vcombine.high %v319_v6, %v320_v7  ;;  %v1971_v21 = vsub.bf16 %v75_v14, %v76_v15 }
  0x4b   :  { %v7581_v17 = vcombine.high %v1968_v8, %v1969_v9  ;;  %v7580_v23 = vcombine.low %v1968_v8, %v1969_v9  ;;  %v326_v43 = vadd.bf16 %v84_v41, %v83_v40  ;;  %v329_v2 = vadd.bf16 %v90_v63, %v89_v62 }
  0x4d   :  { %1156 = vmatpush1.bf16.msra.mxu0 %v8383_v11  ;;  %2645 = vmatpush1.bf16.msra.mxu1 %v8383_v11  ;;  %v74_v11 = vld [vmem:[#allocation3 + $0x88] sm:$0xff] }
  0x4e   :  { %1157 = vmatprep.subr.bf16.mxu0 %v8384_v12  ;;  %2646 = vmatprep.subr.bf16.mxu1 %v8384_v12  ;;  %v7434_v12 = vcombine.low %v317_v58, %v318_v59  ;;  %v321_v18 = vadd.bf16 %v74_v11, %v73_v10  ;;  %v1970_v20 = vsub.bf16 %v73_v10, %v74_v11  ;;  %v93_v10 = vld [vmem:[#allocation3 + $0x120] sm:$0xff]  ;;  %v94_v11 = vld [vmem:[#allocation3 + $0x128] sm:$0xff] }
  0x51   :  { %1158 = vmatpush1.bf16.msra.mxu0 %v8386_v19  ;;  %2647 = vmatpush1.bf16.msra.mxu1 %v8386_v19  ;;  %v322_v19 = vadd.bf16 %v76_v15, %v75_v14  ;;  %v331_v14 = vadd.bf16 %v94_v11, %v93_v10 }
  0x52   :  { %1159 = vmatprep.subr.bf16.mxu0 %v8387_v22  ;;  %2648 = vmatprep.subr.bf16.mxu1 %v8387_v22  ;;  %v7436_v22 = vcombine.low %v319_v6, %v320_v7 }
  0x53   :  { %v7439_v24 = vcombine.high %v321_v18, %v322_v19 }
  0x55   :  { %1160 = vmatpush1.bf16.msra.mxu0 %v8389_v25  ;;  %2649 = vmatpush1.bf16.msra.mxu1 %v8389_v25  ;;  %v7583_v25 = vcombine.high %v1970_v20, %v1971_v21 }
  0x56   :  { %1161 = vmatprep.subr.bf16.mxu0 %v8390_v26  ;;  %2650 = vmatprep.subr.bf16.mxu1 %v8390_v26  ;;  %v77_v26 = vld [vmem:[#allocation3 + $0xa0] sm:$0xff] }
  0x59   :  { %1162 = vmatpush1.bf16.msra.mxu0 %v8392_v27  ;;  %2651 = vmatpush1.bf16.msra.mxu1 %v8392_v27  ;;  %v78_v27 = vld [vmem:[#allocation3 + $0xa8] sm:$0xff] }
  0x5a   :  { %1163 = vmatprep.subr.bf16.mxu0 %v8393_v28  ;;  %2652 = vmatprep.subr.bf16.mxu1 %v8393_v28  ;;  %v79_v28 = vld [vmem:[#allocation3 + $0xb0] sm:$0xff] }
  0x5d   :  { %1164 = vmatpush1.bf16.msra.mxu0 %v8395_v29  ;;  %2653 = vmatpush1.bf16.msra.mxu1 %v8395_v29  ;;  %v80_v29 = vld [vmem:[#allocation3 + $0xb8] sm:$0xff] }
  0x5e   :  { %1165 = vmatprep.subr.bf16.mxu0 %v8396_v30  ;;  %2654 = vmatprep.subr.bf16.mxu1 %v8396_v30  ;;  %v323_v30 = vadd.bf16 %v78_v27, %v77_v26 }
  0x61   :  { %1166 = vmatpush1.bf16.msra.mxu0 %v8398_v31  ;;  %2655 = vmatpush1.bf16.msra.mxu1 %v8398_v31  ;;  %v324_v31 = vadd.bf16 %v80_v29, %v79_v28 }
  0x62   :  { %1167 = vmatprep.subr.bf16.mxu0 %v8399_v32  ;;  %2656 = vmatprep.subr.bf16.mxu1 %v8399_v32  ;;  %v1972_v32 = vsub.bf16 %v77_v26, %v78_v27 }
  0x63   :  { %v7440_v46 = vcombine.low %v323_v30, %v324_v31 }
  0x65   :  { %1168 = vmatpush1.bf16.msra.mxu0 %v8401_v33  ;;  %2657 = vmatpush1.bf16.msra.mxu1 %v8401_v33  ;;  %v1973_v33 = vsub.bf16 %v79_v28, %v80_v29 }
  0x66   :  { %1169 = vmatprep.subr.bf16.mxu0 %v8402_v34  ;;  %2658 = vmatprep.subr.bf16.mxu1 %v8402_v34  ;;  %v7438_v34 = vcombine.low %v321_v18, %v322_v19 }
  0x67   :  { %v7584_v47 = vcombine.low %v1972_v32, %v1973_v33 }
  0x69   :  { %1170 = vmatpush1.bf16.msra.mxu0 %v8404_v35  ;;  %2659 = vmatpush1.bf16.msra.mxu1 %v8404_v35  ;;  %v7582_v35 = vcombine.low %v1970_v20, %v1971_v21 }
  0x6a   :  { %1171 = vmatprep.subr.bf16.mxu0 %v8405_v36  ;;  %2660 = vmatprep.subr.bf16.mxu1 %v8405_v36  ;;  %v7441_v36 = vcombine.high %v323_v30, %v324_v31 }
  0x6d   :  { %1172 = vmatpush1.bf16.msra.mxu0 %v8407_v37  ;;  %2661 = vmatpush1.bf16.msra.mxu1 %v8407_v37  ;;  %v7585_v37 = vcombine.high %v1972_v32, %v1973_v33 }
  0x6e   :  { %1173 = vmatprep.subr.bf16.mxu0 %v8408_v38  ;;  %2662 = vmatprep.subr.bf16.mxu1 %v8408_v38  ;;  %v81_v38 = vld [vmem:[#allocation3 + $0xc0] sm:$0xff] }
  0x71   :  { %1174 = vmatpush1.bf16.msra.mxu0 %v8410_v39  ;;  %2663 = vmatpush1.bf16.msra.mxu1 %v8410_v39  ;;  %v82_v39 = vld [vmem:[#allocation3 + $0xc8] sm:$0xff] }
  0x72   :  { %1175 = vmatprep.subr.bf16.mxu0 %v8411_v42  ;;  %2664 = vmatprep.subr.bf16.mxu1 %v8411_v42  ;;  %v325_v42 = vadd.bf16 %v82_v39, %v81_v38  ;;  %v1974_v44 = vsub.bf16 %v81_v38, %v82_v39 }
  0x74   :  { %v7443_v48 = vcombine.high %v325_v42, %v326_v43  ;;  %v7442_v58 = vcombine.low %v325_v42, %v326_v43 }
  0x75   :  { %1176 = vmatpush1.bf16.msra.mxu0 %v8413_v45  ;;  %2665 = vmatpush1.bf16.msra.mxu1 %v8413_v45  ;;  %v1975_v45 = vsub.bf16 %v83_v40, %v84_v41 }
  0x77   :  { %v7587_v49 = vcombine.high %v1974_v44, %v1975_v45  ;;  %v7586_v59 = vcombine.low %v1974_v44, %v1975_v45 }
  0x78   :  { %1178 = vmatmul.mubr.bf16.vlgmr.msra.gmra.mrb[0].mxu0 %v7430_v52  ;;  %2667 = vmatmul.mubr.bf16.vlgmr.msra.gmra.mrb[0].mxu1 %v7574_v53  ;;  %v87_v52 = vld [vmem:[#allocation3 + $0xf0] sm:$0xff]  ;;  %v88_v53 = vld [vmem:[#allocation3 + $0xf8] sm:$0xff] }
  0x79   :  { %1187 = vmatprep.mubr.bf16.mxu0 %v7433_v56  ;;  %2676 = vmatprep.mubr.bf16.mxu1 %v7577_v57  ;;  %v328_v55 = vadd.bf16 %v88_v53, %v87_v52  ;;  %v1976_v56 = vsub.bf16 %v85_v50, %v86_v51  ;;  %v1977_v57 = vsub.bf16 %v87_v52, %v88_v53 }
  0x7b   :  { %v7445_v60 = vcombine.high %v327_v54, %v328_v55  ;;  %v7589_v61 = vcombine.high %v1976_v56, %v1977_v57  ;;  %v7444_v6 = vcombine.low %v327_v54, %v328_v55  ;;  %v7588_v7 = vcombine.low %v1976_v56, %v1977_v57 }
  0x80   :  { %1188 = vmatmul.mubr.bf16.gmra.mrb[4].mxu0 %v7432_v0  ;;  %2677 = vmatmul.mubr.bf16.gmra.mrb[4].mxu1 %v7576_v1  ;;  %v91_v0 = vld [vmem:[#allocation3 + $0x110] sm:$0xff]  ;;  %v92_v1 = vld [vmem:[#allocation3 + $0x118] sm:$0xff] }
  0x81   :  { %1197 = vmatprep.mubr.bf16.mxu0 %v7435_v4  ;;  %2686 = vmatprep.mubr.bf16.mxu1 %v7579_v5  ;;  %v330_v3 = vadd.bf16 %v92_v1, %v91_v0  ;;  %v1978_v4 = vsub.bf16 %v89_v62, %v90_v63  ;;  %v1979_v5 = vsub.bf16 %v91_v0, %v92_v1 }
  0x83   :  { %v7447_v8 = vcombine.high %v329_v2, %v330_v3  ;;  %v7591_v9 = vcombine.high %v1978_v4, %v1979_v5  ;;  %v7446_v18 = vcombine.low %v329_v2, %v330_v3  ;;  %v7590_v19 = vcombine.low %v1978_v4, %v1979_v5 }
  0x88   :  { %1198 = vmatmul.mubr.bf16.gmra.mrb[8].mxu0 %v7434_v12  ;;  %2687 = vmatmul.mubr.bf16.gmra.mrb[8].mxu1 %v7578_v13  ;;  %v95_v12 = vld [vmem:[#allocation3 + $0x130] sm:$0xff]  ;;  %v96_v13 = vld [vmem:[#allocation3 + $0x138] sm:$0xff] }
  0x89   :  { %1207 = vmatprep.mubr.bf16.mxu0 %v7437_v16  ;;  %2696 = vmatprep.mubr.bf16.mxu1 %v7581_v17  ;;  %v332_v15 = vadd.bf16 %v96_v13, %v95_v12  ;;  %v1980_v16 = vsub.bf16 %v93_v10, %v94_v11  ;;  %v1981_v17 = vsub.bf16 %v95_v12, %v96_v13 }
  0x8b   :  { %v7449_v20 = vcombine.high %v331_v14, %v332_v15  ;;  %v7593_v21 = vcombine.high %v1980_v16, %v1981_v17  ;;  %v7448_v30 = vcombine.low %v331_v14, %v332_v15  ;;  %v7592_v31 = vcombine.low %v1980_v16, %v1981_v17 }
  0x90   :  { %1208 = vmatmul.mubr.bf16.gmra.mrb[12].mxu0 %v7436_v22  ;;  %2697 = vmatmul.mubr.bf16.gmra.mrb[12].mxu1 %v7580_v23  ;;  %v97_v22 = vld [vmem:[#allocation3 + $0x140] sm:$0xff]  ;;  %v98_v23 = vld [vmem:[#allocation3 + $0x148] sm:$0xff] }
  0x91   :  { %1217 = vmatprep.mubr.bf16.mxu0 %v7439_v24  ;;  %2706 = vmatprep.mubr.bf16.mxu1 %v7583_v25  ;;  %v99_v24 = vld [vmem:[#allocation3 + $0x150] sm:$0xff]  ;;  %v100_v25 = vld [vmem:[#allocation3 + $0x158] sm:$0xff]  ;;  %v333_v26 = vadd.bf16 %v98_v23, %v97_v22  ;;  %v1982_v28 = vsub.bf16 %v97_v22, %v98_v23 }
  0x92   :  { %v334_v27 = vadd.bf16 %v100_v25, %v99_v24  ;;  %v1983_v29 = vsub.bf16 %v99_v24, %v100_v25 }
  0x94   :  { %v7451_v32 = vcombine.high %v333_v26, %v334_v27  ;;  %v7595_v33 = vcombine.high %v1982_v28, %v1983_v29  ;;  %v7450_v42 = vcombine.low %v333_v26, %v334_v27  ;;  %v7594_v43 = vcombine.low %v1982_v28, %v1983_v29 }
  0x98   :  { %1218 = vmatmul.mubr.bf16.gmra.mrb[16].mxu0 %v7438_v34  ;;  %2707 = vmatmul.mubr.bf16.gmra.mrb[16].mxu1 %v7582_v35  ;;  %v101_v34 = vld [vmem:[#allocation3 + $0x160] sm:$0xff]  ;;  %v102_v35 = vld [vmem:[#allocation3 + $0x168] sm:$0xff] }
  0x99   :  { %1227 = vmatprep.mubr.bf16.mxu0 %v7441_v36  ;;  %2716 = vmatprep.mubr.bf16.mxu1 %v7585_v37  ;;  %v103_v36 = vld [vmem:[#allocation3 + $0x170] sm:$0xff]  ;;  %v104_v37 = vld [vmem:[#allocation3 + $0x178] sm:$0xff]  ;;  %v335_v38 = vadd.bf16 %v102_v35, %v101_v34  ;;  %v1984_v40 = vsub.bf16 %v101_v34, %v102_v35 }
  0x9a   :  { %v336_v39 = vadd.bf16 %v104_v37, %v103_v36  ;;  %v1985_v41 = vsub.bf16 %v103_v36, %v104_v37 }
  0x9c   :  { %v7453_v44 = vcombine.high %v335_v38, %v336_v39  ;;  %v7597_v45 = vcombine.high %v1984_v40, %v1985_v41  ;;  %v7452_v54 = vcombine.low %v335_v38, %v336_v39  ;;  %v7596_v55 = vcombine.low %v1984_v40, %v1985_v41 }
  0xa0   :  { %1228 = vmatmul.mubr.bf16.gmra.mrb[20].mxu0 %v7440_v46  ;;  %2717 = vmatmul.mubr.bf16.gmra.mrb[20].mxu1 %v7584_v47  ;;  %v105_v46 = vld [vmem:[#allocation3 + $0x180] sm:$0xff]  ;;  %v106_v47 = vld [vmem:[#allocation3 + $0x188] sm:$0xff] }
  0xa1   :  { %1237 = vmatprep.mubr.bf16.mxu0 %v7443_v48  ;;  %2726 = vmatprep.mubr.bf16.mxu1 %v7587_v49  ;;  %v107_v48 = vld [vmem:[#allocation3 + $0x190] sm:$0xff]  ;;  %v108_v49 = vld [vmem:[#allocation3 + $0x198] sm:$0xff]  ;;  %v337_v50 = vadd.bf16 %v106_v47, %v105_v46  ;;  %v1986_v52 = vsub.bf16 %v105_v46, %v106_v47 }
  0xa2   :  { %v338_v51 = vadd.bf16 %v108_v49, %v107_v48  ;;  %v1987_v53 = vsub.bf16 %v107_v48, %v108_v49 }
  0xa4   :  { %v7455_v56 = vcombine.high %v337_v50, %v338_v51  ;;  %v7599_v57 = vcombine.high %v1986_v52, %v1987_v53  ;;  %v7454_v2 = vcombine.low %v337_v50, %v338_v51  ;;  %v7598_v3 = vcombine.low %v1986_v52, %v1987_v53 }
  0xa8   :  { %1238 = vmatmul.mubr.bf16.gmra.mrb[24].mxu0 %v7442_v58  ;;  %2727 = vmatmul.mubr.bf16.gmra.mrb[24].mxu1 %v7586_v59  ;;  %v109_v58 = vld [vmem:[#allocation3 + $0x1a0] sm:$0xff]  ;;  %v110_v59 = vld [vmem:[#allocation3 + $0x1a8] sm:$0xff] }
  0xa9   :  { %1247 = vmatprep.mubr.bf16.mxu0 %v7445_v60  ;;  %2736 = vmatprep.mubr.bf16.mxu1 %v7589_v61  ;;  %v111_v60 = vld [vmem:[#allocation3 + $0x1b0] sm:$0xff]  ;;  %v112_v61 = vld [vmem:[#allocation3 + $0x1b8] sm:$0xff]  ;;  %v339_v62 = vadd.bf16 %v110_v59, %v109_v58  ;;  %v1988_v0 = vsub.bf16 %v109_v58, %v110_v59 }
  0xaa   :  { %v340_v63 = vadd.bf16 %v112_v61, %v111_v60  ;;  %v1989_v1 = vsub.bf16 %v111_v60, %v112_v61 }
  0xac   :  { %v7457_v4 = vcombine.high %v339_v62, %v340_v63  ;;  %v7601_v5 = vcombine.high %v1988_v0, %v1989_v1  ;;  %v7456_v14 = vcombine.low %v339_v62, %v340_v63  ;;  %v7600_v15 = vcombine.low %v1988_v0, %v1989_v1 }
  0xb0   :  { %1248 = vmatmul.mubr.bf16.gmra.mrb[28].mxu0 %v7444_v6  ;;  %2737 = vmatmul.mubr.bf16.gmra.mrb[28].mxu1 %v7588_v7  ;;  %v113_v6 = vld [vmem:[#allocation3 + $0x1c0] sm:$0xff]  ;;  %v114_v7 = vld [vmem:[#allocation3 + $0x1c8] sm:$0xff] }
  0xb1   :  { %1257 = vmatprep.mubr.bf16.mxu0 %v7447_v8  ;;  %2746 = vmatprep.mubr.bf16.mxu1 %v7591_v9  ;;  %v115_v8 = vld [vmem:[#allocation3 + $0x1d0] sm:$0xff]  ;;  %v116_v9 = vld [vmem:[#allocation3 + $0x1d8] sm:$0xff]  ;;  %v341_v10 = vadd.bf16 %v114_v7, %v113_v6  ;;  %v1990_v12 = vsub.bf16 %v113_v6, %v114_v7 }
  0xb2   :  { %v342_v11 = vadd.bf16 %v116_v9, %v115_v8  ;;  %v1991_v13 = vsub.bf16 %v115_v8, %v116_v9 }
  0xb4   :  { %v7459_v16 = vcombine.high %v341_v10, %v342_v11  ;;  %v7603_v17 = vcombine.high %v1990_v12, %v1991_v13  ;;  %v7458_v26 = vcombine.low %v341_v10, %v342_v11  ;;  %v7602_v27 = vcombine.low %v1990_v12, %v1991_v13 }
  0xb8   :  { %1258 = vmatmul.mubr.bf16.gmra.mrb[32].mxu0 %v7446_v18  ;;  %2747 = vmatmul.mubr.bf16.gmra.mrb[32].mxu1 %v7590_v19  ;;  %v117_v18 = vld [vmem:[#allocation3 + $0x1e0] sm:$0xff]  ;;  %v118_v19 = vld [vmem:[#allocation3 + $0x1e8] sm:$0xff] }
  0xb9   :  { %1267 = vmatprep.mubr.bf16.mxu0 %v7449_v20  ;;  %2756 = vmatprep.mubr.bf16.mxu1 %v7593_v21  ;;  %v119_v20 = vld [vmem:[#allocation3 + $0x1f0] sm:$0xff]  ;;  %v120_v21 = vld [vmem:[#allocation3 + $0x1f8] sm:$0xff]  ;;  %v343_v22 = vadd.bf16 %v118_v19, %v117_v18  ;;  %v1992_v24 = vsub.bf16 %v117_v18, %v118_v19 }
  0xba   :  { %v344_v23 = vadd.bf16 %v120_v21, %v119_v20  ;;  %v1993_v25 = vsub.bf16 %v119_v20, %v120_v21 }
  0xbc   :  { %v7461_v28 = vcombine.high %v343_v22, %v344_v23  ;;  %v7605_v29 = vcombine.high %v1992_v24, %v1993_v25  ;;  %v7460_v38 = vcombine.low %v343_v22, %v344_v23  ;;  %v7604_v39 = vcombine.low %v1992_v24, %v1993_v25 }
  0xc0   :  { %1268 = vmatmul.mubr.bf16.gmra.mrb[36].mxu0 %v7448_v30  ;;  %2757 = vmatmul.mubr.bf16.gmra.mrb[36].mxu1 %v7592_v31  ;;  %v121_v30 = vld [vmem:[#allocation3 + $0x200] sm:$0xff]  ;;  %v122_v31 = vld [vmem:[#allocation3 + $0x208] sm:$0xff] }
  0xc1   :  { %1277 = vmatprep.mubr.bf16.mxu0 %v7451_v32  ;;  %2766 = vmatprep.mubr.bf16.mxu1 %v7595_v33  ;;  %v123_v32 = vld [vmem:[#allocation3 + $0x210] sm:$0xff]  ;;  %v124_v33 = vld [vmem:[#allocation3 + $0x218] sm:$0xff]  ;;  %v345_v34 = vadd.bf16 %v122_v31, %v121_v30  ;;  %v1994_v36 = vsub.bf16 %v121_v30, %v122_v31 }
  0xc2   :  { %v346_v35 = vadd.bf16 %v124_v33, %v123_v32  ;;  %v1995_v37 = vsub.bf16 %v123_v32, %v124_v33 }
  0xc4   :  { %v7463_v40 = vcombine.high %v345_v34, %v346_v35  ;;  %v7607_v41 = vcombine.high %v1994_v36, %v1995_v37  ;;  %v7462_v50 = vcombine.low %v345_v34, %v346_v35  ;;  %v7606_v51 = vcombine.low %v1994_v36, %v1995_v37 }
  0xc8   :  { %1278 = vmatmul.mubr.bf16.gmra.mrb[40].mxu0 %v7450_v42  ;;  %2767 = vmatmul.mubr.bf16.gmra.mrb[40].mxu1 %v7594_v43  ;;  %v125_v42 = vld [vmem:[#allocation3 + $0x220] sm:$0xff]  ;;  %v126_v43 = vld [vmem:[#allocation3 + $0x228] sm:$0xff] }
  0xc9   :  { %1287 = vmatprep.mubr.bf16.mxu0 %v7453_v44  ;;  %2776 = vmatprep.mubr.bf16.mxu1 %v7597_v45  ;;  %v127_v44 = vld [vmem:[#allocation3 + $0x230] sm:$0xff]  ;;  %v128_v45 = vld [vmem:[#allocation3 + $0x238] sm:$0xff]  ;;  %v347_v46 = vadd.bf16 %v126_v43, %v125_v42  ;;  %v1996_v48 = vsub.bf16 %v125_v42, %v126_v43 }
  0xca   :  { %v348_v47 = vadd.bf16 %v128_v45, %v127_v44  ;;  %v1997_v49 = vsub.bf16 %v127_v44, %v128_v45 }
  0xcc   :  { %v7465_v52 = vcombine.high %v347_v46, %v348_v47  ;;  %v7609_v53 = vcombine.high %v1996_v48, %v1997_v49  ;;  %v7464_v62 = vcombine.low %v347_v46, %v348_v47  ;;  %v7608_v63 = vcombine.low %v1996_v48, %v1997_v49 }
  0xd0   :  { %1288 = vmatmul.mubr.bf16.gmra.mrb[44].mxu0 %v7452_v54  ;;  %2777 = vmatmul.mubr.bf16.gmra.mrb[44].mxu1 %v7596_v55  ;;  %v129_v54 = vld [vmem:[#allocation3 + $0x240] sm:$0xff]  ;;  %v130_v55 = vld [vmem:[#allocation3 + $0x248] sm:$0xff] }
  0xd1   :  { %1297 = vmatprep.mubr.bf16.mxu0 %v7455_v56  ;;  %2786 = vmatprep.mubr.bf16.mxu1 %v7599_v57  ;;  %v131_v56 = vld [vmem:[#allocation3 + $0x250] sm:$0xff]  ;;  %v132_v57 = vld [vmem:[#allocation3 + $0x258] sm:$0xff]  ;;  %v349_v58 = vadd.bf16 %v130_v55, %v129_v54  ;;  %v1998_v60 = vsub.bf16 %v129_v54, %v130_v55 }
  0xd2   :  { %v350_v59 = vadd.bf16 %v132_v57, %v131_v56  ;;  %v1999_v61 = vsub.bf16 %v131_v56, %v132_v57 }
  0xd4   :  { %v7467_v0 = vcombine.high %v349_v58, %v350_v59  ;;  %v7611_v1 = vcombine.high %v1998_v60, %v1999_v61  ;;  %v7466_v10 = vcombine.low %v349_v58, %v350_v59  ;;  %v7610_v11 = vcombine.low %v1998_v60, %v1999_v61 }
  0xd8   :  { %1298 = vmatmul.mubr.bf16.gmra.mrb[48].mxu0 %v7454_v2  ;;  %2787 = vmatmul.mubr.bf16.gmra.mrb[48].mxu1 %v7598_v3  ;;  %v133_v2 = vld [vmem:[#allocation3 + $0x260] sm:$0xff]  ;;  %v134_v3 = vld [vmem:[#allocation3 + $0x268] sm:$0xff] }
  0xd9   :  { %1307 = vmatprep.mubr.bf16.mxu0 %v7457_v4  ;;  %2796 = vmatprep.mubr.bf16.mxu1 %v7601_v5  ;;  %v135_v4 = vld [vmem:[#allocation3 + $0x270] sm:$0xff]  ;;  %v136_v5 = vld [vmem:[#allocation3 + $0x278] sm:$0xff]  ;;  %v351_v6 = vadd.bf16 %v134_v3, %v133_v2  ;;  %v2000_v8 = vsub.bf16 %v133_v2, %v134_v3 }
  0xda   :  { %v352_v7 = vadd.bf16 %v136_v5, %v135_v4  ;;  %v2001_v9 = vsub.bf16 %v135_v4, %v136_v5 }
  0xdc   :  { %v7469_v12 = vcombine.high %v351_v6, %v352_v7  ;;  %v7613_v13 = vcombine.high %v2000_v8, %v2001_v9  ;;  %v7468_v22 = vcombine.low %v351_v6, %v352_v7  ;;  %v7612_v23 = vcombine.low %v2000_v8, %v2001_v9 }
  0xe0   :  { %1308 = vmatmul.mubr.bf16.gmra.mrb[52].mxu0 %v7456_v14  ;;  %2797 = vmatmul.mubr.bf16.gmra.mrb[52].mxu1 %v7600_v15  ;;  %v137_v14 = vld [vmem:[#allocation3 + $0x280] sm:$0xff]  ;;  %v138_v15 = vld [vmem:[#allocation3 + $0x288] sm:$0xff] }
  0xe1   :  { %1317 = vmatprep.mubr.bf16.mxu0 %v7459_v16  ;;  %2806 = vmatprep.mubr.bf16.mxu1 %v7603_v17  ;;  %v139_v16 = vld [vmem:[#allocation3 + $0x290] sm:$0xff]  ;;  %v140_v17 = vld [vmem:[#allocation3 + $0x298] sm:$0xff]  ;;  %v353_v18 = vadd.bf16 %v138_v15, %v137_v14  ;;  %v2002_v20 = vsub.bf16 %v137_v14, %v138_v15 }
  0xe2   :  { %v354_v19 = vadd.bf16 %v140_v17, %v139_v16  ;;  %v2003_v21 = vsub.bf16 %v139_v16, %v140_v17 }
  0xe4   :  { %v7471_v24 = vcombine.high %v353_v18, %v354_v19  ;;  %v7615_v25 = vcombine.high %v2002_v20, %v2003_v21  ;;  %v7470_v34 = vcombine.low %v353_v18, %v354_v19  ;;  %v7614_v35 = vcombine.low %v2002_v20, %v2003_v21 }
  0xe8   :  { %1318 = vmatmul.mubr.bf16.gmra.mrb[56].mxu0 %v7458_v26  ;;  %2807 = vmatmul.mubr.bf16.gmra.mrb[56].mxu1 %v7602_v27  ;;  %v141_v26 = vld [vmem:[#allocation3 + $0x2a0] sm:$0xff]  ;;  %v142_v27 = vld [vmem:[#allocation3 + $0x2a8] sm:$0xff] }
  0xe9   :  { %1327 = vmatprep.mubr.bf16.mxu0 %v7461_v28  ;;  %2816 = vmatprep.mubr.bf16.mxu1 %v7605_v29  ;;  %v143_v28 = vld [vmem:[#allocation3 + $0x2b0] sm:$0xff]  ;;  %v144_v29 = vld [vmem:[#allocation3 + $0x2b8] sm:$0xff]  ;;  %v355_v30 = vadd.bf16 %v142_v27, %v141_v26  ;;  %v2004_v32 = vsub.bf16 %v141_v26, %v142_v27 }
  0xea   :  { %v356_v31 = vadd.bf16 %v144_v29, %v143_v28  ;;  %v2005_v33 = vsub.bf16 %v143_v28, %v144_v29 }
  0xec   :  { %v7473_v36 = vcombine.high %v355_v30, %v356_v31  ;;  %v7617_v37 = vcombine.high %v2004_v32, %v2005_v33  ;;  %v7472_v46 = vcombine.low %v355_v30, %v356_v31  ;;  %v7616_v47 = vcombine.low %v2004_v32, %v2005_v33 }
  0xf0   :  { %1328 = vmatmul.mubr.bf16.gmra.mrb[60].mxu0 %v7460_v38  ;;  %2817 = vmatmul.mubr.bf16.gmra.mrb[60].mxu1 %v7604_v39  ;;  %v145_v38 = vld [vmem:[#allocation3 + $0x2c0] sm:$0xff]  ;;  %v146_v39 = vld [vmem:[#allocation3 + $0x2c8] sm:$0xff] }
  0xf1   :  { %1337 = vmatprep.mubr.bf16.mxu0 %v7463_v40  ;;  %2826 = vmatprep.mubr.bf16.mxu1 %v7607_v41  ;;  %v147_v40 = vld [vmem:[#allocation3 + $0x2d0] sm:$0xff]  ;;  %v148_v41 = vld [vmem:[#allocation3 + $0x2d8] sm:$0xff]  ;;  %v357_v42 = vadd.bf16 %v146_v39, %v145_v38  ;;  %v2006_v44 = vsub.bf16 %v145_v38, %v146_v39 }
  0xf2   :  { %v358_v43 = vadd.bf16 %v148_v41, %v147_v40  ;;  %v2007_v45 = vsub.bf16 %v147_v40, %v148_v41 }
  0xf4   :  { %v7475_v48 = vcombine.high %v357_v42, %v358_v43  ;;  %v7619_v49 = vcombine.high %v2006_v44, %v2007_v45  ;;  %v7474_v58 = vcombine.low %v357_v42, %v358_v43  ;;  %v7618_v59 = vcombine.low %v2006_v44, %v2007_v45 }
  0xf8   :  { %1338 = vmatmul.mubr.bf16.gmra.mrb[64].mxu0 %v7462_v50  ;;  %2827 = vmatmul.mubr.bf16.gmra.mrb[64].mxu1 %v7606_v51  ;;  %v149_v50 = vld [vmem:[#allocation3 + $0x2e0] sm:$0xff]  ;;  %v150_v51 = vld [vmem:[#allocation3 + $0x2e8] sm:$0xff] }
  0xf9   :  { %1347 = vmatprep.mubr.bf16.mxu0 %v7465_v52  ;;  %2836 = vmatprep.mubr.bf16.mxu1 %v7609_v53  ;;  %v151_v52 = vld [vmem:[#allocation3 + $0x2f0] sm:$0xff]  ;;  %v152_v53 = vld [vmem:[#allocation3 + $0x2f8] sm:$0xff]  ;;  %v359_v54 = vadd.bf16 %v150_v51, %v149_v50  ;;  %v2008_v56 = vsub.bf16 %v149_v50, %v150_v51 }
  0xfa   :  { %v360_v55 = vadd.bf16 %v152_v53, %v151_v52  ;;  %v2009_v57 = vsub.bf16 %v151_v52, %v152_v53 }
  0xfc   :  { %v7477_v60 = vcombine.high %v359_v54, %v360_v55  ;;  %v7621_v61 = vcombine.high %v2008_v56, %v2009_v57  ;;  %v7476_v6 = vcombine.low %v359_v54, %v360_v55  ;;  %v7620_v7 = vcombine.low %v2008_v56, %v2009_v57 }
 0x100   :  { %1348 = vmatmul.mubr.bf16.gmra.mrb[68].mxu0 %v7464_v62  ;;  %2837 = vmatmul.mubr.bf16.gmra.mrb[68].mxu1 %v7608_v63  ;;  %v153_v62 = vld [vmem:[#allocation3 + $0x300] sm:$0xff]  ;;  %v154_v63 = vld [vmem:[#allocation3 + $0x308] sm:$0xff] }
 0x101   :  { %1357 = vmatprep.mubr.bf16.mxu0 %v7467_v0  ;;  %2846 = vmatprep.mubr.bf16.mxu1 %v7611_v1  ;;  %v155_v0 = vld [vmem:[#allocation3 + $0x310] sm:$0xff]  ;;  %v156_v1 = vld [vmem:[#allocation3 + $0x318] sm:$0xff]  ;;  %v361_v2 = vadd.bf16 %v154_v63, %v153_v62  ;;  %v2010_v4 = vsub.bf16 %v153_v62, %v154_v63 }
 0x102   :  { %v362_v3 = vadd.bf16 %v156_v1, %v155_v0  ;;  %v2011_v5 = vsub.bf16 %v155_v0, %v156_v1 }
 0x104   :  { %v7479_v8 = vcombine.high %v361_v2, %v362_v3  ;;  %v7623_v9 = vcombine.high %v2010_v4, %v2011_v5  ;;  %v7478_v18 = vcombine.low %v361_v2, %v362_v3  ;;  %v7622_v19 = vcombine.low %v2010_v4, %v2011_v5 }
 0x108   :  { %1358 = vmatmul.mubr.bf16.gmra.mrb[72].mxu0 %v7466_v10  ;;  %2847 = vmatmul.mubr.bf16.gmra.mrb[72].mxu1 %v7610_v11  ;;  %v157_v10 = vld [vmem:[#allocation3 + $0x320] sm:$0xff]  ;;  %v158_v11 = vld [vmem:[#allocation3 + $0x328] sm:$0xff] }
 0x109   :  { %1367 = vmatprep.mubr.bf16.mxu0 %v7469_v12  ;;  %2856 = vmatprep.mubr.bf16.mxu1 %v7613_v13  ;;  %v159_v12 = vld [vmem:[#allocation3 + $0x330] sm:$0xff]  ;;  %v160_v13 = vld [vmem:[#allocation3 + $0x338] sm:$0xff]  ;;  %v363_v14 = vadd.bf16 %v158_v11, %v157_v10  ;;  %v2012_v16 = vsub.bf16 %v157_v10, %v158_v11 }
 0x10a   :  { %v364_v15 = vadd.bf16 %v160_v13, %v159_v12  ;;  %v2013_v17 = vsub.bf16 %v159_v12, %v160_v13 }
 0x10c   :  { %v7481_v20 = vcombine.high %v363_v14, %v364_v15  ;;  %v7625_v21 = vcombine.high %v2012_v16, %v2013_v17  ;;  %v7480_v30 = vcombine.low %v363_v14, %v364_v15  ;;  %v7624_v31 = vcombine.low %v2012_v16, %v2013_v17 }
 0x110   :  { %1368 = vmatmul.mubr.bf16.gmra.mrb[76].mxu0 %v7468_v22  ;;  %2857 = vmatmul.mubr.bf16.gmra.mrb[76].mxu1 %v7612_v23  ;;  %v161_v22 = vld [vmem:[#allocation3 + $0x340] sm:$0xff]  ;;  %v162_v23 = vld [vmem:[#allocation3 + $0x348] sm:$0xff] }
 0x111   :  { %1377 = vmatprep.mubr.bf16.mxu0 %v7471_v24  ;;  %2866 = vmatprep.mubr.bf16.mxu1 %v7615_v25  ;;  %v163_v24 = vld [vmem:[#allocation3 + $0x350] sm:$0xff]  ;;  %v164_v25 = vld [vmem:[#allocation3 + $0x358] sm:$0xff]  ;;  %v365_v26 = vadd.bf16 %v162_v23, %v161_v22  ;;  %v2014_v28 = vsub.bf16 %v161_v22, %v162_v23 }
 0x112   :  { %v366_v27 = vadd.bf16 %v164_v25, %v163_v24  ;;  %v2015_v29 = vsub.bf16 %v163_v24, %v164_v25 }
 0x114   :  { %v7483_v32 = vcombine.high %v365_v26, %v366_v27  ;;  %v7627_v33 = vcombine.high %v2014_v28, %v2015_v29  ;;  %v7482_v42 = vcombine.low %v365_v26, %v366_v27  ;;  %v7626_v43 = vcombine.low %v2014_v28, %v2015_v29 }
 0x118   :  { %1378 = vmatmul.mubr.bf16.gmra.mrb[80].mxu0 %v7470_v34  ;;  %2867 = vmatmul.mubr.bf16.gmra.mrb[80].mxu1 %v7614_v35  ;;  %v165_v34 = vld [vmem:[#allocation3 + $0x360] sm:$0xff]  ;;  %v166_v35 = vld [vmem:[#allocation3 + $0x368] sm:$0xff] }
 0x119   :  { %1387 = vmatprep.mubr.bf16.mxu0 %v7473_v36  ;;  %2876 = vmatprep.mubr.bf16.mxu1 %v7617_v37  ;;  %v167_v36 = vld [vmem:[#allocation3 + $0x370] sm:$0xff]  ;;  %v168_v37 = vld [vmem:[#allocation3 + $0x378] sm:$0xff]  ;;  %v367_v38 = vadd.bf16 %v166_v35, %v165_v34  ;;  %v2016_v40 = vsub.bf16 %v165_v34, %v166_v35 }
 0x11a   :  { %v368_v39 = vadd.bf16 %v168_v37, %v167_v36  ;;  %v2017_v41 = vsub.bf16 %v167_v36, %v168_v37 }
 0x11c   :  { %v7485_v44 = vcombine.high %v367_v38, %v368_v39  ;;  %v7629_v45 = vcombine.high %v2016_v40, %v2017_v41 }
 0x120   :  { %1388 = vmatmul.mubr.bf16.gmra.mrb[84].mxu0 %v7472_v46  ;;  %2877 = vmatmul.mubr.bf16.gmra.mrb[84].mxu1 %v7616_v47  ;;  %v169_v46 = vld [vmem:[#allocation3 + $0x380] sm:$0xff]  ;;  %v170_v47 = vld [vmem:[#allocation3 + $0x388] sm:$0xff] }
 0x121   :  { %1397 = vmatprep.mubr.bf16.mxu0 %v7475_v48  ;;  %2886 = vmatprep.mubr.bf16.mxu1 %v7619_v49  ;;  %v171_v48 = vld [vmem:[#allocation3 + $0x390] sm:$0xff]  ;;  %v172_v49 = vld [vmem:[#allocation3 + $0x398] sm:$0xff]  ;;  %v369_v52 = vadd.bf16 %v170_v47, %v169_v46  ;;  %v2018_v54 = vsub.bf16 %v169_v46, %v170_v47 }
 0x122   :  { %v370_v53 = vadd.bf16 %v172_v49, %v171_v48  ;;  %v2019_v55 = vsub.bf16 %v171_v48, %v172_v49 }
 0x124   :  { %v7487_v4 = vcombine.high %v369_v52, %v370_v53  ;;  %v7631_v5 = vcombine.high %v2018_v54, %v2019_v55 }
 0x128   :  { %1398 = vmatmul.mubr.bf16.gmra.mrb[88].mxu0 %v7474_v58  ;;  %2887 = vmatmul.mubr.bf16.gmra.mrb[88].mxu1 %v7618_v59  ;;  %v7484_v58 = vcombine.low %v367_v38, %v368_v39  ;;  %v7628_v59 = vcombine.low %v2016_v40, %v2017_v41 }
 0x129   :  { %1407 = vmatprep.mubr.bf16.mxu0 %v7477_v60  ;;  %2896 = vmatprep.mubr.bf16.mxu1 %v7621_v61 }
 0x130   :  { %1408 = vmatmul.mubr.bf16.gmra.mrb[92].mxu0 %v7476_v6  ;;  %2897 = vmatmul.mubr.bf16.gmra.mrb[92].mxu1 %v7620_v7  ;;  %v173_v6 = vld [vmem:[#allocation3 + $0x3a0] sm:$0xff]  ;;  %v174_v7 = vld [vmem:[#allocation3 + $0x3a8] sm:$0xff] }
 0x131   :  { %1417 = vmatprep.mubr.bf16.mxu0 %v7479_v8  ;;  %2906 = vmatprep.mubr.bf16.mxu1 %v7623_v9  ;;  %v175_v8 = vld [vmem:[#allocation3 + $0x3b0] sm:$0xff]  ;;  %v176_v9 = vld [vmem:[#allocation3 + $0x3b8] sm:$0xff]  ;;  %v371_v10 = vadd.bf16 %v174_v7, %v173_v6  ;;  %v2020_v14 = vsub.bf16 %v173_v6, %v174_v7 }
 0x132   :  { %v372_v13 = vadd.bf16 %v176_v9, %v175_v8  ;;  %v2021_v15 = vsub.bf16 %v175_v8, %v176_v9 }
 0x134   :  { %v7489_v28 = vcombine.high %v371_v10, %v372_v13  ;;  %v7633_v29 = vcombine.high %v2020_v14, %v2021_v15 }
 0x138   :  { %1418 = vmatmul.mubr.bf16.gmra.mrb[96].mxu0 %v7478_v18  ;;  %2907 = vmatmul.mubr.bf16.gmra.mrb[96].mxu1 %v7622_v19  ;;  %v7486_v18 = vcombine.low %v369_v52, %v370_v53  ;;  %v7630_v19 = vcombine.low %v2018_v54, %v2019_v55  ;;  %v181_v54 = vld [vmem:[#allocation3 + $0x3e0] sm:$0xff]  ;;  %v182_v55 = vld [vmem:[#allocation3 + $0x3e8] sm:$0xff] }
 0x139   :  { %1427 = vmatprep.mubr.bf16.mxu0 %v7481_v20  ;;  %2916 = vmatprep.mubr.bf16.mxu1 %v7625_v21 }
 0x140   :  { %1428 = vmatmul.mubr.bf16.gmra.mrb[100].mxu0 %v7480_v30  ;;  %2917 = vmatmul.mubr.bf16.gmra.mrb[100].mxu1 %v7624_v31  ;;  %v177_v30 = vld [vmem:[#allocation3 + $0x3c0] sm:$0xff]  ;;  %v178_v31 = vld [vmem:[#allocation3 + $0x3c8] sm:$0xff] }
 0x141   :  { %1437 = vmatprep.mubr.bf16.mxu0 %v7483_v32  ;;  %2926 = vmatprep.mubr.bf16.mxu1 %v7627_v33  ;;  %v179_v32 = vld [vmem:[#allocation3 + $0x3d0] sm:$0xff]  ;;  %v180_v33 = vld [vmem:[#allocation3 + $0x3d8] sm:$0xff]  ;;  %v373_v34 = vadd.bf16 %v178_v31, %v177_v30  ;;  %v2022_v38 = vsub.bf16 %v177_v30, %v178_v31  ;;  %v189_v30 = vld [vmem:[#allocation3 + $0x420] sm:$0xff] }
 0x142   :  { %v374_v37 = vadd.bf16 %v180_v33, %v179_v32  ;;  %v2023_v39 = vsub.bf16 %v179_v32, %v180_v33  ;;  %v190_v31 = vld [vmem:[#allocation3 + $0x428] sm:$0xff] }
 0x144   :  { %v7491_v52 = vcombine.high %v373_v34, %v374_v37  ;;  %v7635_v53 = vcombine.high %v2022_v38, %v2023_v39 }
 0x148   :  { %1438 = vmatmul.mubr.bf16.gmra.mrb[104].mxu0 %v7482_v42  ;;  %2927 = vmatmul.mubr.bf16.gmra.mrb[104].mxu1 %v7626_v43  ;;  %v7488_v42 = vcombine.low %v371_v10, %v372_v13  ;;  %v7632_v43 = vcombine.low %v2020_v14, %v2021_v15  ;;  %v185_v14 = vld [vmem:[#allocation3 + $0x400] sm:$0xff]  ;;  %v186_v15 = vld [vmem:[#allocation3 + $0x408] sm:$0xff] }
 0x149   :  { %1447 = vmatprep.mubr.bf16.mxu0 %v7485_v44  ;;  %2936 = vmatprep.mubr.bf16.mxu1 %v7629_v45 }
 0x14b   :  { %v1179_v50 = vpop.f32.mrb[0].mxu0  ;;  %v2668_v51 = vpop.f32.mrb[0].mxu1 }
 0x14c   :  { %v1181_v56 = vpop.f32.mrb[1].mxu0  ;;  %v2670_v57 = vpop.f32.mrb[1].mxu1 }
 0x14d   :  { %v1183_v60 = vpop.f32.mrb[2].mxu0  ;;  %v2672_v61 = vpop.f32.mrb[2].mxu1 }
 0x14e   :  { %v1738_v62 = vpack.c.bf16 %v1183_v60, %v1179_v50  ;;  %v3227_v63 = vpack.c.bf16 %v2672_v61, %v2668_v51  ;;  %v1185_v0 = vpop.f32.mrb[3].mxu0  ;;  %v2674_v1 = vpop.f32.mrb[3].mxu1 }
 0x14f   :  { %v1739_v2 = vpack.c.bf16 %v1185_v0, %v1181_v56  ;;  %v3228_v3 = vpack.c.bf16 %v2674_v1, %v2670_v57  ;;  %v183_v56 = vld [vmem:[#allocation3 + $0x3f0] sm:$0xff]  ;;  %v184_v57 = vld [vmem:[#allocation3 + $0x3f8] sm:$0xff] }
 0x150   :  { %1448 = vmatmul.mubr.bf16.gmra.mrb[108].mxu0 %v7484_v58  ;;  %2937 = vmatmul.mubr.bf16.gmra.mrb[108].mxu1 %v7628_v59  ;;  %v375_v58 = vadd.bf16 %v182_v55, %v181_v54  ;;  %v376_v61 = vadd.bf16 %v184_v57, %v183_v56 }
 0x151   :  { %3956 = vmatprep.subr.bf16.mxu0 %v1739_v2  ;;  %4129 = vmatprep.subr.bf16.mxu1 %v3228_v3  ;;  %v7490_v2 = vcombine.low %v373_v34, %v374_v37  ;;  %v7634_v3 = vcombine.low %v2022_v38, %v2023_v39  ;;  %v192_v37 = vld [vmem:[#allocation3 + $0x438] sm:$0xff] }
 0x152   :  { %3957 = vmatpush1.bf16.msra.mxu0 %v1738_v62  ;;  %4130 = vmatpush1.bf16.msra.mxu1 %v3227_v63  ;;  %v2024_v62 = vsub.bf16 %v181_v54, %v182_v55  ;;  %v2025_v63 = vsub.bf16 %v183_v56, %v184_v57  ;;  %v193_v54 = vld [vmem:[#allocation3 + $0x440] sm:$0xff]  ;;  %v194_v55 = vld [vmem:[#allocation3 + $0x448] sm:$0xff] }
 0x153   :  { %v1189_v11 = vpop.f32.mrb[4].mxu0  ;;  %v2678_v12 = vpop.f32.mrb[4].mxu1  ;;  %1457 = vmatprep.mubr.bf16.mxu0 %v7487_v4  ;;  %2946 = vmatprep.mubr.bf16.mxu1 %v7631_v5 }
 0x154   :  { %v1191_v16 = vpop.f32.mrb[5].mxu0  ;;  %v2680_v17 = vpop.f32.mrb[5].mxu1  ;;  %v7637_v13 = vcombine.high %v2024_v62, %v2025_v63 }
 0x155   :  { %v1193_v20 = vpop.f32.mrb[6].mxu0  ;;  %v2682_v21 = vpop.f32.mrb[6].mxu1 }
 0x156   :  { %v1740_v22 = vpack.c.bf16 %v1193_v20, %v1189_v11  ;;  %v3229_v23 = vpack.c.bf16 %v2682_v21, %v2678_v12  ;;  %v1195_v24 = vpop.f32.mrb[7].mxu0  ;;  %v2684_v25 = vpop.f32.mrb[7].mxu1  ;;  %v7493_v12 = vcombine.high %v375_v58, %v376_v61 }
 0x157   :  { %v1741_v26 = vpack.c.bf16 %v1195_v24, %v1191_v16  ;;  %v3230_v27 = vpack.c.bf16 %v2684_v25, %v2680_v17  ;;  %v187_v16 = vld [vmem:[#allocation3 + $0x410] sm:$0xff]  ;;  %v188_v17 = vld [vmem:[#allocation3 + $0x418] sm:$0xff] }
 0x158   :  { %1458 = vmatmul.mubr.bf16.gmra.mrb[112].mxu0 %v7486_v18  ;;  %2947 = vmatmul.mubr.bf16.gmra.mrb[112].mxu1 %v7630_v19  ;;  %v377_v18 = vadd.bf16 %v186_v15, %v185_v14  ;;  %v378_v21 = vadd.bf16 %v188_v17, %v187_v16 }
 0x159   :  { %3958 = vmatprep.subr.bf16.mxu0 %v1741_v26  ;;  %4131 = vmatprep.subr.bf16.mxu1 %v3230_v27  ;;  %v7492_v26 = vcombine.low %v375_v58, %v376_v61  ;;  %v7636_v27 = vcombine.low %v2024_v62, %v2025_v63  ;;  %v195_v58 = vld [vmem:[#allocation3 + $0x450] sm:$0xff] }
 0x15a   :  { %3959 = vmatpush1.bf16.msra.mxu0 %v1740_v22  ;;  %4132 = vmatpush1.bf16.msra.mxu1 %v3229_v23  ;;  %v2026_v22 = vsub.bf16 %v185_v14, %v186_v15  ;;  %v2027_v23 = vsub.bf16 %v187_v16, %v188_v17  ;;  %v197_v14 = vld [vmem:[#allocation3 + $0x460] sm:$0xff]  ;;  %v198_v15 = vld [vmem:[#allocation3 + $0x468] sm:$0xff] }
 0x15b   :  { %v1199_v35 = vpop.f32.mrb[8].mxu0  ;;  %v2688_v36 = vpop.f32.mrb[8].mxu1  ;;  %1467 = vmatprep.mubr.bf16.mxu0 %v7489_v28  ;;  %2956 = vmatprep.mubr.bf16.mxu1 %v7633_v29 }
 0x15c   :  { %v1201_v40 = vpop.f32.mrb[9].mxu0  ;;  %v2690_v41 = vpop.f32.mrb[9].mxu1 }
 0x15d   :  { %v1203_v44 = vpop.f32.mrb[10].mxu0  ;;  %v2692_v45 = vpop.f32.mrb[10].mxu1 }
 0x15e   :  { %v1742_v46 = vpack.c.bf16 %v1203_v44, %v1199_v35  ;;  %v3231_v47 = vpack.c.bf16 %v2692_v45, %v2688_v36  ;;  %v1205_v48 = vpop.f32.mrb[11].mxu0  ;;  %v2694_v49 = vpop.f32.mrb[11].mxu1  ;;  %v191_v36 = vld [vmem:[#allocation3 + $0x430] sm:$0xff]  ;;  %v2028_v44 = vsub.bf16 %v189_v30, %v190_v31 }
 0x15f   :  { %v1743_v50 = vpack.c.bf16 %v1205_v48, %v1201_v40  ;;  %v3232_v51 = vpack.c.bf16 %v2694_v49, %v2690_v41  ;;  %v7495_v40 = vcombine.high %v377_v18, %v378_v21  ;;  %v7639_v41 = vcombine.high %v2026_v22, %v2027_v23 }
 0x160   :  { %1468 = vmatmul.mubr.bf16.gmra.mrb[116].mxu0 %v7488_v42  ;;  %2957 = vmatmul.mubr.bf16.gmra.mrb[116].mxu1 %v7632_v43  ;;  %v379_v42 = vadd.bf16 %v190_v31, %v189_v30  ;;  %v380_v43 = vadd.bf16 %v192_v37, %v191_v36  ;;  %v2029_v45 = vsub.bf16 %v191_v36, %v192_v37 }
 0x161   :  { %3960 = vmatprep.subr.bf16.mxu0 %v1743_v50  ;;  %4133 = vmatprep.subr.bf16.mxu1 %v3232_v51  ;;  %v7494_v48 = vcombine.low %v377_v18, %v378_v21  ;;  %v7638_v49 = vcombine.low %v2026_v22, %v2027_v23  ;;  %v199_v18 = vld [vmem:[#allocation3 + $0x470] sm:$0xff] }
 0x162   :  { %3961 = vmatpush1.bf16.msra.mxu0 %v1742_v46  ;;  %4134 = vmatpush1.bf16.msra.mxu1 %v3231_v47 }
 0x163   :  { %v1209_v59 = vpop.f32.mrb[12].mxu0  ;;  %v2698_v60 = vpop.f32.mrb[12].mxu1  ;;  %1477 = vmatprep.mubr.bf16.mxu0 %v7491_v52  ;;  %2966 = vmatprep.mubr.bf16.mxu1 %v7635_v53  ;;  %v7497_v52 = vcombine.high %v379_v42, %v380_v43  ;;  %v7641_v53 = vcombine.high %v2028_v44, %v2029_v45 }
 0x164   :  { %v1211_v0 = vpop.f32.mrb[13].mxu0  ;;  %v2700_v1 = vpop.f32.mrb[13].mxu1 }
 0x165   :  { %v1213_v4 = vpop.f32.mrb[14].mxu0  ;;  %v2702_v5 = vpop.f32.mrb[14].mxu1 }
 0x166   :  { %v1744_v6 = vpack.c.bf16 %v1213_v4, %v1209_v59  ;;  %v3233_v7 = vpack.c.bf16 %v2702_v5, %v2698_v60  ;;  %v1215_v8 = vpop.f32.mrb[15].mxu0  ;;  %v2704_v9 = vpop.f32.mrb[15].mxu1  ;;  %v196_v59 = vld [vmem:[#allocation3 + $0x458] sm:$0xff]  ;;  %v2030_v4 = vsub.bf16 %v193_v54, %v194_v55 }
 0x167   :  { %v1745_v10 = vpack.c.bf16 %v1215_v8, %v1211_v0  ;;  %v3234_v11 = vpack.c.bf16 %v2704_v9, %v2700_v1  ;;  %v2031_v5 = vsub.bf16 %v195_v58, %v196_v59  ;;  %v7496_v8 = vcombine.low %v379_v42, %v380_v43  ;;  %v203_v42 = vld [vmem:[#allocation3 + $0x490] sm:$0xff]  ;;  %v204_v43 = vld [vmem:[#allocation3 + $0x498] sm:$0xff] }
 0x168   :  { %1478 = vmatmul.mubr.bf16.gmra.mrb[120].mxu0 %v7490_v2  ;;  %2967 = vmatmul.mubr.bf16.gmra.mrb[120].mxu1 %v7634_v3  ;;  %v381_v2 = vadd.bf16 %v194_v55, %v193_v54  ;;  %v382_v3 = vadd.bf16 %v196_v59, %v195_v58  ;;  %v7640_v9 = vcombine.low %v2028_v44, %v2029_v45 }
 0x169   :  { %3962 = vmatprep.subr.bf16.mxu0 %v1745_v10  ;;  %4135 = vmatprep.subr.bf16.mxu1 %v3234_v11 }
 0x16a   :  { %3963 = vmatpush1.bf16.msra.mxu0 %v1744_v6  ;;  %4136 = vmatpush1.bf16.msra.mxu1 %v3233_v7 }
 0x16b   :  { %v1219_v19 = vpop.f32.mrb[16].mxu0  ;;  %v2708_v20 = vpop.f32.mrb[16].mxu1  ;;  %1487 = vmatprep.mubr.bf16.mxu0 %v7493_v12  ;;  %2976 = vmatprep.mubr.bf16.mxu1 %v7637_v13  ;;  %v7499_v12 = vcombine.high %v381_v2, %v382_v3  ;;  %v7643_v13 = vcombine.high %v2030_v4, %v2031_v5 }
 0x16c   :  { %v1221_v24 = vpop.f32.mrb[17].mxu0  ;;  %v2710_v25 = vpop.f32.mrb[17].mxu1 }
 0x16d   :  { %v1223_v28 = vpop.f32.mrb[18].mxu0  ;;  %v2712_v29 = vpop.f32.mrb[18].mxu1 }
 0x16e   :  { %v1746_v32 = vpack.c.bf16 %v1223_v28, %v1219_v19  ;;  %v3235_v33 = vpack.c.bf16 %v2712_v29, %v2708_v20  ;;  %v1225_v34 = vpop.f32.mrb[19].mxu0  ;;  %v2714_v35 = vpop.f32.mrb[19].mxu1  ;;  %v200_v19 = vld [vmem:[#allocation3 + $0x478] sm:$0xff]  ;;  %v2032_v28 = vsub.bf16 %v197_v14, %v198_v15 }
 0x16f   :  { %v1747_v38 = vpack.c.bf16 %v1225_v34, %v1221_v24  ;;  %v3236_v39 = vpack.c.bf16 %v2714_v35, %v2710_v25  ;;  %v2033_v29 = vsub.bf16 %v199_v18, %v200_v19 }
 0x170   :  { %1488 = vmatmul.mubr.bf16.gmra.mrb[124].mxu0 %v7492_v26  ;;  %2977 = vmatmul.mubr.bf16.gmra.mrb[124].mxu1 %v7636_v27  ;;  %v383_v26 = vadd.bf16 %v198_v15, %v197_v14  ;;  %v384_v27 = vadd.bf16 %v200_v19, %v199_v18 }
 0x171   :  { %3964 = vmatprep.subr.bf16.mxu0 %v1747_v38  ;;  %4137 = vmatprep.subr.bf16.mxu1 %v3236_v39  ;;  %v7645_v37 = vcombine.high %v2032_v28, %v2033_v29  ;;  %v201_v38 = vld [vmem:[#allocation3 + $0x480] sm:$0xff]  ;;  %v202_v39 = vld [vmem:[#allocation3 + $0x488] sm:$0xff] }
 0x172   :  { %3965 = vmatpush1.bf16.msra.mxu0 %v1746_v32  ;;  %4138 = vmatpush1.bf16.msra.mxu1 %v3235_v33  ;;  %v7498_v32 = vcombine.low %v381_v2, %v382_v3  ;;  %v7642_v33 = vcombine.low %v2030_v4, %v2031_v5  ;;  %v7501_v36 = vcombine.high %v383_v26, %v384_v27  ;;  %v207_v2 = vld [vmem:[#allocation3 + $0x4b0] sm:$0xff]  ;;  %v208_v3 = vld [vmem:[#allocation3 + $0x4b8] sm:$0xff] }
 0x173   :  { %1497 = vmatprep.mubr.bf16.mxu0 %v7495_v40  ;;  %2986 = vmatprep.mubr.bf16.mxu1 %v7639_v41  ;;  %v1229_v46 = vpop.f32.mrb[20].mxu0  ;;  %v2718_v47 = vpop.f32.mrb[20].mxu1 }
 0x174   :  { %v1231_v50 = vpop.f32.mrb[21].mxu0  ;;  %v2720_v51 = vpop.f32.mrb[21].mxu1 }
 0x175   :  { %v1233_v56 = vpop.f32.mrb[22].mxu0  ;;  %v2722_v57 = vpop.f32.mrb[22].mxu1 }
 0x176   :  { %v1748_v60 = vpack.c.bf16 %v1233_v56, %v1229_v46  ;;  %v3237_v61 = vpack.c.bf16 %v2722_v57, %v2718_v47  ;;  %v1235_v62 = vpop.f32.mrb[23].mxu0  ;;  %v2724_v63 = vpop.f32.mrb[23].mxu1  ;;  %v7500_v56 = vcombine.low %v383_v26, %v384_v27  ;;  %v7644_v57 = vcombine.low %v2032_v28, %v2033_v29  ;;  %v211_v26 = vld [vmem:[#allocation3 + $0x4d0] sm:$0xff]  ;;  %v212_v27 = vld [vmem:[#allocation3 + $0x4d8] sm:$0xff] }
 0x177   :  { %v1749_v0 = vpack.c.bf16 %v1235_v62, %v1231_v50  ;;  %v3238_v1 = vpack.c.bf16 %v2724_v63, %v2720_v51  ;;  %v385_v50 = vadd.bf16 %v202_v39, %v201_v38  ;;  %v386_v51 = vadd.bf16 %v204_v43, %v203_v42  ;;  %v205_v62 = vld [vmem:[#allocation3 + $0x4a0] sm:$0xff]  ;;  %v206_v63 = vld [vmem:[#allocation3 + $0x4a8] sm:$0xff] }
 0x178   :  { %1498 = vmatmul.mubr.bf16.gmra.mrb[128].mxu0 %v7494_v48  ;;  %2987 = vmatmul.mubr.bf16.gmra.mrb[128].mxu1 %v7638_v49 }
 0x179   :  { %1507 = vmatprep.mubr.bf16.mxu0 %v7497_v52  ;;  %2996 = vmatprep.mubr.bf16.mxu1 %v7641_v53  ;;  %v2034_v52 = vsub.bf16 %v201_v38, %v202_v39  ;;  %v2035_v53 = vsub.bf16 %v203_v42, %v204_v43 }
 0x17a   :  { %3966 = vmatprep.subr.bf16.mxu0 %v1749_v0  ;;  %4139 = vmatprep.subr.bf16.mxu1 %v3238_v1 }
 0x17b   :  { %3967 = vmatpush1.bf16.msra.mxu0 %v1748_v60  ;;  %4140 = vmatpush1.bf16.msra.mxu1 %v3237_v61  ;;  %v1239_v6 = vpop.f32.mrb[24].mxu0  ;;  %v2728_v7 = vpop.f32.mrb[24].mxu1  ;;  %v7503_v60 = vcombine.high %v385_v50, %v386_v51  ;;  %v7647_v61 = vcombine.high %v2034_v52, %v2035_v53 }
 0x17c   :  { %v1241_v10 = vpop.f32.mrb[25].mxu0  ;;  %v2730_v11 = vpop.f32.mrb[25].mxu1 }
 0x17d   :  { %v1243_v16 = vpop.f32.mrb[26].mxu0  ;;  %v2732_v17 = vpop.f32.mrb[26].mxu1 }
 0x17e   :  { %v1750_v20 = vpack.c.bf16 %v1243_v16, %v1239_v6  ;;  %v3239_v21 = vpack.c.bf16 %v2732_v17, %v2728_v7  ;;  %v1245_v22 = vpop.f32.mrb[27].mxu0  ;;  %v2734_v23 = vpop.f32.mrb[27].mxu1  ;;  %v7502_v16 = vcombine.low %v385_v50, %v386_v51  ;;  %v7646_v17 = vcombine.low %v2034_v52, %v2035_v53  ;;  %v215_v50 = vld [vmem:[#allocation3 + $0x4f0] sm:$0xff]  ;;  %v216_v51 = vld [vmem:[#allocation3 + $0x4f8] sm:$0xff] }
 0x17f   :  { %v1751_v24 = vpack.c.bf16 %v1245_v22, %v1241_v10  ;;  %v3240_v25 = vpack.c.bf16 %v2734_v23, %v2730_v11  ;;  %v387_v10 = vadd.bf16 %v206_v63, %v205_v62  ;;  %v388_v11 = vadd.bf16 %v208_v3, %v207_v2  ;;  %v209_v22 = vld [vmem:[#allocation3 + $0x4c0] sm:$0xff]  ;;  %v210_v23 = vld [vmem:[#allocation3 + $0x4c8] sm:$0xff] }
 0x180   :  { %1508 = vmatmul.mubr.bf16.gmra.mrb[132].mxu0 %v7496_v8  ;;  %2997 = vmatmul.mubr.bf16.gmra.mrb[132].mxu1 %v7640_v9 }
 0x181   :  { %1517 = vmatprep.mubr.bf16.mxu0 %v7499_v12  ;;  %3006 = vmatprep.mubr.bf16.mxu1 %v7643_v13  ;;  %v2036_v12 = vsub.bf16 %v205_v62, %v206_v63  ;;  %v2037_v13 = vsub.bf16 %v207_v2, %v208_v3 }
 0x182   :  { %3968 = vmatprep.subr.bf16.mxu0 %v1751_v24  ;;  %4141 = vmatprep.subr.bf16.mxu1 %v3240_v25 }
 0x183   :  { %3969 = vmatpush1.bf16.msra.mxu0 %v1750_v20  ;;  %4142 = vmatpush1.bf16.msra.mxu1 %v3239_v21  ;;  %v1249_v30 = vpop.f32.mrb[28].mxu0  ;;  %v2738_v31 = vpop.f32.mrb[28].mxu1  ;;  %v7505_v20 = vcombine.high %v387_v10, %v388_v11  ;;  %v7649_v21 = vcombine.high %v2036_v12, %v2037_v13 }
 0x184   :  { %v1251_v34 = vpop.f32.mrb[29].mxu0  ;;  %v2740_v35 = vpop.f32.mrb[29].mxu1 }
 0x185   :  { %v1253_v40 = vpop.f32.mrb[30].mxu0  ;;  %v2742_v41 = vpop.f32.mrb[30].mxu1 }
 0x186   :  { %v1752_v44 = vpack.c.bf16 %v1253_v40, %v1249_v30  ;;  %v3241_v45 = vpack.c.bf16 %v2742_v41, %v2738_v31  ;;  %v1255_v46 = vpop.f32.mrb[31].mxu0  ;;  %v2744_v47 = vpop.f32.mrb[31].mxu1  ;;  %v7504_v40 = vcombine.low %v387_v10, %v388_v11  ;;  %v7648_v41 = vcombine.low %v2036_v12, %v2037_v13  ;;  %v219_v10 = vld [vmem:[#allocation3 + $0x510] sm:$0xff]  ;;  %v220_v11 = vld [vmem:[#allocation3 + $0x518] sm:$0xff] }
 0x187   :  { %v1753_v48 = vpack.c.bf16 %v1255_v46, %v1251_v34  ;;  %v3242_v49 = vpack.c.bf16 %v2744_v47, %v2740_v35  ;;  %v389_v34 = vadd.bf16 %v210_v23, %v209_v22  ;;  %v390_v35 = vadd.bf16 %v212_v27, %v211_v26  ;;  %v213_v46 = vld [vmem:[#allocation3 + $0x4e0] sm:$0xff]  ;;  %v214_v47 = vld [vmem:[#allocation3 + $0x4e8] sm:$0xff] }
 0x188   :  { %1518 = vmatmul.mubr.bf16.gmra.mrb[136].mxu0 %v7498_v32  ;;  %3007 = vmatmul.mubr.bf16.gmra.mrb[136].mxu1 %v7642_v33 }
 0x189   :  { %1527 = vmatprep.mubr.bf16.mxu0 %v7501_v36  ;;  %3016 = vmatprep.mubr.bf16.mxu1 %v7645_v37  ;;  %v2038_v36 = vsub.bf16 %v209_v22, %v210_v23  ;;  %v2039_v37 = vsub.bf16 %v211_v26, %v212_v27 }
 0x18a   :  { %3970 = vmatprep.subr.bf16.mxu0 %v1753_v48  ;;  %4143 = vmatprep.subr.bf16.mxu1 %v3242_v49 }
 0x18b   :  { %3971 = vmatpush1.bf16.msra.mxu0 %v1752_v44  ;;  %4144 = vmatpush1.bf16.msra.mxu1 %v3241_v45  ;;  %v1259_v54 = vpop.f32.mrb[32].mxu0  ;;  %v2748_v55 = vpop.f32.mrb[32].mxu1  ;;  %v7507_v44 = vcombine.high %v389_v34, %v390_v35  ;;  %v7651_v45 = vcombine.high %v2038_v36, %v2039_v37 }
 0x18c   :  { %v1261_v58 = vpop.f32.mrb[33].mxu0  ;;  %v2750_v59 = vpop.f32.mrb[33].mxu1 }
 0x18d   :  { %v1263_v0 = vpop.f32.mrb[34].mxu0  ;;  %v2752_v1 = vpop.f32.mrb[34].mxu1 }
 0x18e   :  { %v1754_v4 = vpack.c.bf16 %v1263_v0, %v1259_v54  ;;  %v3243_v5 = vpack.c.bf16 %v2752_v1, %v2748_v55  ;;  %v1265_v6 = vpop.f32.mrb[35].mxu0  ;;  %v2754_v7 = vpop.f32.mrb[35].mxu1  ;;  %v7506_v0 = vcombine.low %v389_v34, %v390_v35  ;;  %v7650_v1 = vcombine.low %v2038_v36, %v2039_v37  ;;  %v223_v34 = vld [vmem:[#allocation3 + $0x530] sm:$0xff]  ;;  %v224_v35 = vld [vmem:[#allocation3 + $0x538] sm:$0xff] }
 0x18f   :  { %v1755_v8 = vpack.c.bf16 %v1265_v6, %v1261_v58  ;;  %v3244_v9 = vpack.c.bf16 %v2754_v7, %v2750_v59  ;;  %v391_v58 = vadd.bf16 %v214_v47, %v213_v46  ;;  %v392_v59 = vadd.bf16 %v216_v51, %v215_v50  ;;  %v217_v6 = vld [vmem:[#allocation3 + $0x500] sm:$0xff]  ;;  %v218_v7 = vld [vmem:[#allocation3 + $0x508] sm:$0xff] }
 0x190   :  { %1528 = vmatmul.mubr.bf16.gmra.mrb[140].mxu0 %v7500_v56  ;;  %3017 = vmatmul.mubr.bf16.gmra.mrb[140].mxu1 %v7644_v57 }
 0x191   :  { %1537 = vmatprep.mubr.bf16.mxu0 %v7503_v60  ;;  %3026 = vmatprep.mubr.bf16.mxu1 %v7647_v61  ;;  %v2040_v60 = vsub.bf16 %v213_v46, %v214_v47  ;;  %v2041_v61 = vsub.bf16 %v215_v50, %v216_v51 }
 0x192   :  { %3972 = vmatprep.subr.bf16.mxu0 %v1755_v8  ;;  %4145 = vmatprep.subr.bf16.mxu1 %v3244_v9 }
 0x193   :  { %3973 = vmatpush1.bf16.msra.mxu0 %v1754_v4  ;;  %4146 = vmatpush1.bf16.msra.mxu1 %v3243_v5  ;;  %v1269_v14 = vpop.f32.mrb[36].mxu0  ;;  %v2758_v15 = vpop.f32.mrb[36].mxu1  ;;  %v7509_v4 = vcombine.high %v391_v58, %v392_v59  ;;  %v7653_v5 = vcombine.high %v2040_v60, %v2041_v61 }
 0x194   :  { %v1271_v18 = vpop.f32.mrb[37].mxu0  ;;  %v2760_v19 = vpop.f32.mrb[37].mxu1 }
 0x195   :  { %v1273_v24 = vpop.f32.mrb[38].mxu0  ;;  %v2762_v25 = vpop.f32.mrb[38].mxu1 }
 0x196   :  { %v1756_v28 = vpack.c.bf16 %v1273_v24, %v1269_v14  ;;  %v3245_v29 = vpack.c.bf16 %v2762_v25, %v2758_v15  ;;  %v1275_v30 = vpop.f32.mrb[39].mxu0  ;;  %v2764_v31 = vpop.f32.mrb[39].mxu1  ;;  %v7508_v24 = vcombine.low %v391_v58, %v392_v59  ;;  %v7652_v25 = vcombine.low %v2040_v60, %v2041_v61  ;;  %v227_v58 = vld [vmem:[#allocation3 + $0x550] sm:$0xff]  ;;  %v228_v59 = vld [vmem:[#allocation3 + $0x558] sm:$0xff] }
 0x197   :  { %v1757_v32 = vpack.c.bf16 %v1275_v30, %v1271_v18  ;;  %v3246_v33 = vpack.c.bf16 %v2764_v31, %v2760_v19  ;;  %v393_v18 = vadd.bf16 %v218_v7, %v217_v6  ;;  %v394_v19 = vadd.bf16 %v220_v11, %v219_v10  ;;  %v221_v30 = vld [vmem:[#allocation3 + $0x520] sm:$0xff]  ;;  %v222_v31 = vld [vmem:[#allocation3 + $0x528] sm:$0xff] }
 0x198   :  { %1538 = vmatmul.mubr.bf16.gmra.mrb[144].mxu0 %v7502_v16  ;;  %3027 = vmatmul.mubr.bf16.gmra.mrb[144].mxu1 %v7646_v17 }
 0x199   :  { %1547 = vmatprep.mubr.bf16.mxu0 %v7505_v20  ;;  %3036 = vmatprep.mubr.bf16.mxu1 %v7649_v21  ;;  %v2042_v20 = vsub.bf16 %v217_v6, %v218_v7  ;;  %v2043_v21 = vsub.bf16 %v219_v10, %v220_v11 }
 0x19a   :  { %3974 = vmatprep.subr.bf16.mxu0 %v1757_v32  ;;  %4147 = vmatprep.subr.bf16.mxu1 %v3246_v33 }
 0x19b   :  { %3975 = vmatpush1.bf16.msra.mxu0 %v1756_v28  ;;  %4148 = vmatpush1.bf16.msra.mxu1 %v3245_v29  ;;  %v1279_v38 = vpop.f32.mrb[40].mxu0  ;;  %v2768_v39 = vpop.f32.mrb[40].mxu1  ;;  %v7511_v28 = vcombine.high %v393_v18, %v394_v19  ;;  %v7655_v29 = vcombine.high %v2042_v20, %v2043_v21 }
 0x19c   :  { %v1281_v42 = vpop.f32.mrb[41].mxu0  ;;  %v2770_v43 = vpop.f32.mrb[41].mxu1 }
 0x19d   :  { %v1283_v48 = vpop.f32.mrb[42].mxu0  ;;  %v2772_v49 = vpop.f32.mrb[42].mxu1 }
 0x19e   :  { %v1758_v52 = vpack.c.bf16 %v1283_v48, %v1279_v38  ;;  %v3247_v53 = vpack.c.bf16 %v2772_v49, %v2768_v39  ;;  %v1285_v54 = vpop.f32.mrb[43].mxu0  ;;  %v2774_v55 = vpop.f32.mrb[43].mxu1  ;;  %v7510_v48 = vcombine.low %v393_v18, %v394_v19  ;;  %v7654_v49 = vcombine.low %v2042_v20, %v2043_v21  ;;  %v231_v18 = vld [vmem:[#allocation3 + $0x570] sm:$0xff]  ;;  %v232_v19 = vld [vmem:[#allocation3 + $0x578] sm:$0xff] }
 0x19f   :  { %v1759_v56 = vpack.c.bf16 %v1285_v54, %v1281_v42  ;;  %v3248_v57 = vpack.c.bf16 %v2774_v55, %v2770_v43  ;;  %v395_v42 = vadd.bf16 %v222_v31, %v221_v30  ;;  %v396_v43 = vadd.bf16 %v224_v35, %v223_v34  ;;  %v225_v54 = vld [vmem:[#allocation3 + $0x540] sm:$0xff]  ;;  %v226_v55 = vld [vmem:[#allocation3 + $0x548] sm:$0xff] }
 0x1a0   :  { %1548 = vmatmul.mubr.bf16.gmra.mrb[148].mxu0 %v7504_v40  ;;  %3037 = vmatmul.mubr.bf16.gmra.mrb[148].mxu1 %v7648_v41 }
 0x1a1   :  { %1557 = vmatprep.mubr.bf16.mxu0 %v7507_v44  ;;  %3046 = vmatprep.mubr.bf16.mxu1 %v7651_v45  ;;  %v2044_v44 = vsub.bf16 %v221_v30, %v222_v31  ;;  %v2045_v45 = vsub.bf16 %v223_v34, %v224_v35 }
 0x1a2   :  { %3976 = vmatprep.subr.bf16.mxu0 %v1759_v56  ;;  %4149 = vmatprep.subr.bf16.mxu1 %v3248_v57 }
 0x1a3   :  { %3977 = vmatpush1.bf16.msra.mxu0 %v1758_v52  ;;  %4150 = vmatpush1.bf16.msra.mxu1 %v3247_v53  ;;  %v1289_v62 = vpop.f32.mrb[44].mxu0  ;;  %v2778_v63 = vpop.f32.mrb[44].mxu1  ;;  %v7513_v52 = vcombine.high %v395_v42, %v396_v43  ;;  %v7657_v53 = vcombine.high %v2044_v44, %v2045_v45 }
 0x1a4   :  { %v1291_v2 = vpop.f32.mrb[45].mxu0  ;;  %v2780_v3 = vpop.f32.mrb[45].mxu1 }
 0x1a5   :  { %v1293_v8 = vpop.f32.mrb[46].mxu0  ;;  %v2782_v9 = vpop.f32.mrb[46].mxu1 }
 0x1a6   :  { %v1760_v12 = vpack.c.bf16 %v1293_v8, %v1289_v62  ;;  %v3249_v13 = vpack.c.bf16 %v2782_v9, %v2778_v63  ;;  %v1295_v14 = vpop.f32.mrb[47].mxu0  ;;  %v2784_v15 = vpop.f32.mrb[47].mxu1  ;;  %v7512_v8 = vcombine.low %v395_v42, %v396_v43  ;;  %v7656_v9 = vcombine.low %v2044_v44, %v2045_v45  ;;  %v235_v42 = vld [vmem:[#allocation3 + $0x590] sm:$0xff]  ;;  %v236_v43 = vld [vmem:[#allocation3 + $0x598] sm:$0xff] }
 0x1a7   :  { %v1761_v16 = vpack.c.bf16 %v1295_v14, %v1291_v2  ;;  %v3250_v17 = vpack.c.bf16 %v2784_v15, %v2780_v3  ;;  %v397_v2 = vadd.bf16 %v226_v55, %v225_v54  ;;  %v398_v3 = vadd.bf16 %v228_v59, %v227_v58  ;;  %v229_v14 = vld [vmem:[#allocation3 + $0x560] sm:$0xff]  ;;  %v230_v15 = vld [vmem:[#allocation3 + $0x568] sm:$0xff] }
 0x1a8   :  { %1558 = vmatmul.mubr.bf16.gmra.mrb[152].mxu0 %v7506_v0  ;;  %3047 = vmatmul.mubr.bf16.gmra.mrb[152].mxu1 %v7650_v1 }
 0x1a9   :  { %1567 = vmatprep.mubr.bf16.mxu0 %v7509_v4  ;;  %3056 = vmatprep.mubr.bf16.mxu1 %v7653_v5  ;;  %v2046_v4 = vsub.bf16 %v225_v54, %v226_v55  ;;  %v2047_v5 = vsub.bf16 %v227_v58, %v228_v59 }
 0x1aa   :  { %3978 = vmatprep.subr.bf16.mxu0 %v1761_v16  ;;  %4151 = vmatprep.subr.bf16.mxu1 %v3250_v17 }
 0x1ab   :  { %3979 = vmatpush1.bf16.msra.mxu0 %v1760_v12  ;;  %4152 = vmatpush1.bf16.msra.mxu1 %v3249_v13  ;;  %v1299_v22 = vpop.f32.mrb[48].mxu0  ;;  %v2788_v23 = vpop.f32.mrb[48].mxu1  ;;  %v7515_v12 = vcombine.high %v397_v2, %v398_v3  ;;  %v7659_v13 = vcombine.high %v2046_v4, %v2047_v5 }
 0x1ac   :  { %v1301_v26 = vpop.f32.mrb[49].mxu0  ;;  %v2790_v27 = vpop.f32.mrb[49].mxu1 }
 0x1ad   :  { %v1303_v32 = vpop.f32.mrb[50].mxu0  ;;  %v2792_v33 = vpop.f32.mrb[50].mxu1 }
 0x1ae   :  { %v1762_v36 = vpack.c.bf16 %v1303_v32, %v1299_v22  ;;  %v3251_v37 = vpack.c.bf16 %v2792_v33, %v2788_v23  ;;  %v1305_v38 = vpop.f32.mrb[51].mxu0  ;;  %v2794_v39 = vpop.f32.mrb[51].mxu1  ;;  %v7514_v32 = vcombine.low %v397_v2, %v398_v3  ;;  %v7658_v33 = vcombine.low %v2046_v4, %v2047_v5  ;;  %v239_v2 = vld [vmem:[#allocation3 + $0x5b0] sm:$0xff]  ;;  %v240_v3 = vld [vmem:[#allocation3 + $0x5b8] sm:$0xff] }
 0x1af   :  { %v1763_v40 = vpack.c.bf16 %v1305_v38, %v1301_v26  ;;  %v3252_v41 = vpack.c.bf16 %v2794_v39, %v2790_v27  ;;  %v399_v26 = vadd.bf16 %v230_v15, %v229_v14  ;;  %v400_v27 = vadd.bf16 %v232_v19, %v231_v18  ;;  %v233_v38 = vld [vmem:[#allocation3 + $0x580] sm:$0xff]  ;;  %v234_v39 = vld [vmem:[#allocation3 + $0x588] sm:$0xff] }
 0x1b0   :  { %1568 = vmatmul.mubr.bf16.gmra.mrb[156].mxu0 %v7508_v24  ;;  %3057 = vmatmul.mubr.bf16.gmra.mrb[156].mxu1 %v7652_v25 }
 0x1b1   :  { %1577 = vmatprep.mubr.bf16.mxu0 %v7511_v28  ;;  %3066 = vmatprep.mubr.bf16.mxu1 %v7655_v29  ;;  %v2048_v28 = vsub.bf16 %v229_v14, %v230_v15  ;;  %v2049_v29 = vsub.bf16 %v231_v18, %v232_v19  ;;  %v2053_v15 = vsub.bf16 %v239_v2, %v240_v3 }
 0x1b2   :  { %3980 = vmatprep.subr.bf16.mxu0 %v1763_v40  ;;  %4153 = vmatprep.subr.bf16.mxu1 %v3252_v41 }
 0x1b3   :  { %3981 = vmatpush1.bf16.msra.mxu0 %v1762_v36  ;;  %4154 = vmatpush1.bf16.msra.mxu1 %v3251_v37  ;;  %v1309_v46 = vpop.f32.mrb[52].mxu0  ;;  %v2798_v47 = vpop.f32.mrb[52].mxu1  ;;  %v7517_v36 = vcombine.high %v399_v26, %v400_v27  ;;  %v7661_v37 = vcombine.high %v2048_v28, %v2049_v29 }
 0x1b4   :  { %v1311_v50 = vpop.f32.mrb[53].mxu0  ;;  %v2800_v51 = vpop.f32.mrb[53].mxu1 }
 0x1b5   :  { %v1313_v56 = vpop.f32.mrb[54].mxu0  ;;  %v2802_v57 = vpop.f32.mrb[54].mxu1 }
 0x1b6   :  { %v1764_v60 = vpack.c.bf16 %v1313_v56, %v1309_v46  ;;  %v3253_v61 = vpack.c.bf16 %v2802_v57, %v2798_v47  ;;  %v1315_v62 = vpop.f32.mrb[55].mxu0  ;;  %v2804_v63 = vpop.f32.mrb[55].mxu1  ;;  %v7516_v56 = vcombine.low %v399_v26, %v400_v27  ;;  %v7660_v57 = vcombine.low %v2048_v28, %v2049_v29  ;;  %v241_v28 = vld [vmem:[#allocation3 + $0x5c0] sm:$0xff]  ;;  %v242_v29 = vld [vmem:[#allocation3 + $0x5c8] sm:$0xff] }
 0x1b7   :  { %v1765_v0 = vpack.c.bf16 %v1315_v62, %v1311_v50  ;;  %v3254_v1 = vpack.c.bf16 %v2804_v63, %v2800_v51  ;;  %v401_v50 = vadd.bf16 %v234_v39, %v233_v38  ;;  %v402_v51 = vadd.bf16 %v236_v43, %v235_v42  ;;  %v237_v62 = vld [vmem:[#allocation3 + $0x5a0] sm:$0xff]  ;;  %v238_v63 = vld [vmem:[#allocation3 + $0x5a8] sm:$0xff] }
 0x1b8   :  { %1578 = vmatmul.mubr.bf16.gmra.mrb[160].mxu0 %v7510_v48  ;;  %3067 = vmatmul.mubr.bf16.gmra.mrb[160].mxu1 %v7654_v49  ;;  %v2052_v14 = vsub.bf16 %v237_v62, %v238_v63 }
 0x1b9   :  { %1587 = vmatprep.mubr.bf16.mxu0 %v7513_v52  ;;  %3076 = vmatprep.mubr.bf16.mxu1 %v7657_v53  ;;  %v2050_v52 = vsub.bf16 %v233_v38, %v234_v39  ;;  %v2051_v53 = vsub.bf16 %v235_v42, %v236_v43 }
 0x1ba   :  { %3982 = vmatprep.subr.bf16.mxu0 %v1765_v0  ;;  %4155 = vmatprep.subr.bf16.mxu1 %v3254_v1  ;;  %v7665_v27 = vcombine.high %v2052_v14, %v2053_v15 }
 0x1bb   :  { %3983 = vmatpush1.bf16.msra.mxu0 %v1764_v60  ;;  %4156 = vmatpush1.bf16.msra.mxu1 %v3253_v61  ;;  %v8765_v6 = vpop.f32.mrb[56].mxu0  ;;  %v8767_v7 = vpop.f32.mrb[56].mxu1  ;;  %v7519_v60 = vcombine.high %v401_v50, %v402_v51  ;;  %v7663_v61 = vcombine.high %v2050_v52, %v2051_v53 }
 0x1bc   :  { %v1321_v10 = vpop.f32.mrb[57].mxu0  ;;  %v2810_v11 = vpop.f32.mrb[57].mxu1 }
 0x1bd   :  { %v8769_v16 = vpop.f32.mrb[58].mxu0  ;;  %v8771_v17 = vpop.f32.mrb[58].mxu1 }
 0x1be   :  { %v1325_v22 = vpop.f32.mrb[59].mxu0  ;;  %v2814_v23 = vpop.f32.mrb[59].mxu1 }
 0x1bf   :  { %v1767_v24 = vpack.c.bf16 %v1325_v22, %v1321_v10  ;;  %v3256_v25 = vpack.c.bf16 %v2814_v23, %v2810_v11  ;;  %v7518_v22 = vcombine.low %v401_v50, %v402_v51  ;;  %v7662_v23 = vcombine.low %v2050_v52, %v2051_v53 }
 0x1c0   :  { %1588 = vmatmul.mubr.bf16.gmra.mrb[164].mxu0 %v7512_v8  ;;  %3077 = vmatmul.mubr.bf16.gmra.mrb[164].mxu1 %v7656_v9  ;;  %v405_v52 = vadd.bf16 %v242_v29, %v241_v28 }
 0x1c1   :  { %1597 = vmatprep.mubr.bf16.mxu0 %v7515_v12  ;;  %3086 = vmatprep.mubr.bf16.mxu1 %v7659_v13  ;;  %v403_v12 = vadd.bf16 %v238_v63, %v237_v62  ;;  %v404_v13 = vadd.bf16 %v240_v3, %v239_v2  ;;  %v7664_v63 = vcombine.low %v2052_v14, %v2053_v15 }
 0x1c2   :  { %4470 = vmatprep.subr.bf16.mxu0 %v1767_v24  ;;  %4643 = vmatprep.subr.bf16.mxu1 %v3256_v25 }
 0x1c3   :  { %v8777_v30 = vpop.f32.mrb[60].mxu0  ;;  %v8779_v31 = vpop.f32.mrb[60].mxu1  ;;  %v7521_v26 = vcombine.high %v403_v12, %v404_v13  ;;  %v7520_v62 = vcombine.low %v403_v12, %v404_v13 }
 0x1c4   :  { %v8781_v34 = vpop.f32.mrb[61].mxu0  ;;  %v8783_v35 = vpop.f32.mrb[61].mxu1 }
 0x1c5   :  { %v8785_v40 = vpop.f32.mrb[62].mxu0  ;;  %v8787_v41 = vpop.f32.mrb[62].mxu1 }
 0x1c6   :  { %v8793_v46 = vpop.f32.mrb[63].mxu0  ;;  %v8795_v47 = vpop.f32.mrb[63].mxu1 }
 0x1c8   :  { %1598 = vmatmul.mubr.bf16.gmra.mrb[168].mxu0 %v7514_v32  ;;  %3087 = vmatmul.mubr.bf16.gmra.mrb[168].mxu1 %v7658_v33 }
 0x1c9   :  { %1607 = vmatprep.mubr.bf16.mxu0 %v7517_v36  ;;  %3096 = vmatprep.mubr.bf16.mxu1 %v7661_v37  ;;  %v243_v36 = vld [vmem:[#allocation3 + $0x5d0] sm:$0xff]  ;;  %v244_v37 = vld [vmem:[#allocation3 + $0x5d8] sm:$0xff] }
 0x1ca   :  { %v406_v53 = vadd.bf16 %v244_v37, %v243_v36 }
 0x1cb   :  { %v8801_v54 = vpop.f32.mrb[64].mxu0  ;;  %v8803_v55 = vpop.f32.mrb[64].mxu1 }
 0x1cc   :  { %v8805_v58 = vpop.f32.mrb[65].mxu0  ;;  %v8807_v59 = vpop.f32.mrb[65].mxu1  ;;  %v7523_v39 = vcombine.high %v405_v52, %v406_v53  ;;  %v7522_v11 = vcombine.low %v405_v52, %v406_v53 }
 0x1cd   :  { %v8809_v0 = vpop.f32.mrb[66].mxu0  ;;  %v8811_v1 = vpop.f32.mrb[66].mxu1 }
 0x1ce   :  { %v8817_v8 = vpop.f32.mrb[67].mxu0  ;;  %v8819_v9 = vpop.f32.mrb[67].mxu1 }
 0x1d0   :  { %1608 = vmatmul.mubr.bf16.gmra.mrb[172].mxu0 %v7516_v56  ;;  %3097 = vmatmul.mubr.bf16.gmra.mrb[172].mxu1 %v7660_v57  ;;  %v2054_v56 = vsub.bf16 %v241_v28, %v242_v29  ;;  %v2055_v57 = vsub.bf16 %v243_v36, %v244_v37  ;;  %v248_v28 = vld [vmem:[#allocation3 + $0x5f8] sm:$0xff] }
 0x1d1   :  { %1617 = vmatprep.mubr.bf16.mxu0 %v7519_v60  ;;  %3106 = vmatprep.mubr.bf16.mxu1 %v7663_v61 }
 0x1d2   :  { %v7667_v38 = vcombine.high %v2054_v56, %v2055_v57  ;;  %v7666_v10 = vcombine.low %v2054_v56, %v2055_v57 }
 0x1d3   :  { %v8825_v18 = vpop.f32.mrb[68].mxu0  ;;  %v8827_v19 = vpop.f32.mrb[68].mxu1 }
 0x1d4   :  { %v8829_v24 = vpop.f32.mrb[69].mxu0  ;;  %v8831_v25 = vpop.f32.mrb[69].mxu1 }
 0x1d5   :  { %v8833_v32 = vpop.f32.mrb[70].mxu0  ;;  %v8835_v33 = vpop.f32.mrb[70].mxu1 }
 0x1d6   :  { %v8841_v42 = vpop.f32.mrb[71].mxu0  ;;  %v8843_v43 = vpop.f32.mrb[71].mxu1 }
 0x1d8   :  { %1618 = vmatmul.mubr.bf16.gmra.mrb[176].mxu0 %v7518_v22  ;;  %3107 = vmatmul.mubr.bf16.gmra.mrb[176].mxu1 %v7662_v23  ;;  %v245_v22 = vld [vmem:[#allocation3 + $0x5e0] sm:$0xff]  ;;  %v246_v23 = vld [vmem:[#allocation3 + $0x5e8] sm:$0xff] }
 0x1d9   :  { %1627 = vmatprep.mubr.bf16.mxu0 %v7521_v26  ;;  %3116 = vmatprep.mubr.bf16.mxu1 %v7665_v27  ;;  %v247_v27 = vld [vmem:[#allocation3 + $0x5f0] sm:$0xff]  ;;  %v407_v37 = vadd.bf16 %v246_v23, %v245_v22  ;;  %v2056_v29 = vsub.bf16 %v245_v22, %v246_v23  ;;  %v252_v22 = vld [vmem:[#allocation3 + $0x618] sm:$0xff] }
 0x1da   :  { %v408_v50 = vadd.bf16 %v248_v28, %v247_v27  ;;  %v2057_v5 = vsub.bf16 %v247_v27, %v248_v28 }
 0x1db   :  { %v8849_v60 = vpop.f32.mrb[72].mxu0  ;;  %v8851_v61 = vpop.f32.mrb[72].mxu1 }
 0x1dc   :  { %v8853_v2 = vpop.f32.mrb[73].mxu0  ;;  %v8855_v3 = vpop.f32.mrb[73].mxu1  ;;  %v7525_v44 = vcombine.high %v407_v37, %v408_v50  ;;  %v7669_v36 = vcombine.high %v2056_v29, %v2057_v5 }
 0x1dd   :  { %v8857_v51 = vpop.f32.mrb[74].mxu0  ;;  %v8859_v26 = vpop.f32.mrb[74].mxu1 }
 0x1de   :  { %v8865_v13 = vpop.f32.mrb[75].mxu0  ;;  %v8867_v14 = vpop.f32.mrb[75].mxu1 }
 0x1e0   :  { %1628 = vmatmul.mubr.bf16.gmra.mrb[180].mxu0 %v7520_v62  ;;  %3117 = vmatmul.mubr.bf16.gmra.mrb[180].mxu1 %v7664_v63  ;;  %v249_v62 = vld [vmem:[#allocation3 + $0x600] sm:$0xff]  ;;  %v250_v63 = vld [vmem:[#allocation3 + $0x608] sm:$0xff] }
 0x1e1   :  { %1637 = vmatprep.mubr.bf16.mxu0 %v7523_v39  ;;  %3126 = vmatprep.mubr.bf16.mxu1 %v7667_v38  ;;  %v251_v39 = vld [vmem:[#allocation3 + $0x610] sm:$0xff]  ;;  %v409_v28 = vadd.bf16 %v250_v63, %v249_v62  ;;  %v2058_v23 = vsub.bf16 %v249_v62, %v250_v63  ;;  %v256_v62 = vld [vmem:[#allocation3 + $0x638] sm:$0xff] }
 0x1e2   :  { %v410_v48 = vadd.bf16 %v252_v22, %v251_v39  ;;  %v2059_v21 = vsub.bf16 %v251_v39, %v252_v22 }
 0x1e3   :  { %v8873_v4 = vpop.f32.mrb[76].mxu0  ;;  %v8875_v12 = vpop.f32.mrb[76].mxu1 }
 0x1e4   :  { %10582 = vst [vmem:[#allocation13_spill] sm:$0xff] %v8873_v4  ;;  %10583 = vst [vmem:[#allocation14_spill] sm:$0xff] %v8875_v12  ;;  %v8877_v45 = vpop.f32.mrb[77].mxu0  ;;  %v8879_v15 = vpop.f32.mrb[77].mxu1  ;;  %v7524_v12 = vcombine.low %v407_v37, %v408_v50  ;;  %v7671_v27 = vcombine.high %v2058_v23, %v2059_v21 }
 0x1e5   :  { %10584 = vst [vmem:[#allocation15_spill] sm:$0xff] %v8877_v45  ;;  %10585 = vst [vmem:[#allocation16_spill] sm:$0xff] %v8879_v15  ;;  %v8881_v49 = vpop.f32.mrb[78].mxu0  ;;  %v8883_v38 = vpop.f32.mrb[78].mxu1 }
 0x1e6   :  { %10586 = vst [vmem:[#allocation17_spill] sm:$0xff] %v8881_v49  ;;  %10587 = vst [vmem:[#allocation18_spill] sm:$0xff] %v8883_v38  ;;  %v8889_v53 = vpop.f32.mrb[79].mxu0  ;;  %v8891_v56 = vpop.f32.mrb[79].mxu1  ;;  %v7668_v38 = vcombine.low %v2056_v29, %v2057_v5  ;;  %v7527_v49 = vcombine.high %v409_v28, %v410_v48 }
 0x1e7   :  { %10588 = vst [vmem:[#allocation19_spill] sm:$0xff] %v8891_v56 }
 0x1e8   :  { %1638 = vmatmul.mubr.bf16.gmra.mrb[184].mxu0 %v7522_v11  ;;  %3127 = vmatmul.mubr.bf16.gmra.mrb[184].mxu1 %v7666_v10  ;;  %v253_v11 = vld [vmem:[#allocation3 + $0x620] sm:$0xff]  ;;  %v254_v10 = vld [vmem:[#allocation3 + $0x628] sm:$0xff] }
 0x1e9   :  { %1647 = vmatprep.mubr.bf16.mxu0 %v7525_v44  ;;  %3136 = vmatprep.mubr.bf16.mxu1 %v7669_v36  ;;  %v255_v36 = vld [vmem:[#allocation3 + $0x630] sm:$0xff]  ;;  %v411_v22 = vadd.bf16 %v254_v10, %v253_v11  ;;  %v2060_v63 = vsub.bf16 %v253_v11, %v254_v10  ;;  %v260_v11 = vld [vmem:[#allocation3 + $0x658] sm:$0xff] }
 0x1ea   :  { %v412_v56 = vadd.bf16 %v256_v62, %v255_v36 }
 0x1eb   :  { %v8897_v20 = vpop.f32.mrb[80].mxu0  ;;  %v8899_v52 = vpop.f32.mrb[80].mxu1 }
 0x1ec   :  { %10589 = vst [vmem:[#allocation20_spill] sm:$0xff] %v8897_v20  ;;  %10590 = vst [vmem:[#allocation21_spill] sm:$0xff] %v8899_v52  ;;  %v8901_v4 = vpop.f32.mrb[81].mxu0  ;;  %v8903_v57 = vpop.f32.mrb[81].mxu1  ;;  %v2061_v20 = vsub.bf16 %v255_v36, %v256_v62  ;;  %v7526_v52 = vcombine.low %v409_v28, %v410_v48 }
 0x1ed   :  { %10591 = vst [vmem:[#allocation22_spill] sm:$0xff] %v8901_v4  ;;  %10592 = vst [vmem:[#allocation23_spill] sm:$0xff] %v8903_v57  ;;  %v8905_v15 = vpop.f32.mrb[82].mxu0  ;;  %v8907_v44 = vpop.f32.mrb[82].mxu1  ;;  %v7529_v4 = vcombine.high %v411_v22, %v412_v56 }
 0x1ee   :  { %10593 = vst [vmem:[#allocation24_spill] sm:$0xff] %v8905_v15  ;;  %10594 = vst [vmem:[#allocation25_spill] sm:$0xff] %v8907_v44  ;;  %v8913_v50 = vpop.f32.mrb[83].mxu0  ;;  %v8915_v29 = vpop.f32.mrb[83].mxu1  ;;  %v7670_v44 = vcombine.low %v2058_v23, %v2059_v21  ;;  %v7673_v39 = vcombine.high %v2060_v63, %v2061_v20 }
 0x1ef   :  { %10595 = vst [vmem:[#allocation26_spill] sm:$0xff] %v8913_v50  ;;  %10596 = vst [vmem:[#allocation27_spill] sm:$0xff] %v8915_v29 }
 0x1f0   :  { %1648 = vmatmul.mubr.bf16.gmra.mrb[188].mxu0 %v7524_v12  ;;  %3137 = vmatmul.mubr.bf16.gmra.mrb[188].mxu1 %v7668_v38  ;;  %v257_v12 = vld [vmem:[#allocation3 + $0x640] sm:$0xff]  ;;  %v258_v38 = vld [vmem:[#allocation3 + $0x648] sm:$0xff] }
 0x1f1   :  { %1657 = vmatprep.mubr.bf16.mxu0 %v7527_v49  ;;  %3146 = vmatprep.mubr.bf16.mxu1 %v7671_v27  ;;  %v259_v27 = vld [vmem:[#allocation3 + $0x650] sm:$0xff]  ;;  %v413_v62 = vadd.bf16 %v258_v38, %v257_v12  ;;  %v2062_v10 = vsub.bf16 %v257_v12, %v258_v38  ;;  %v264_v12 = vld [vmem:[#allocation3 + $0x678] sm:$0xff] }
 0x1f2   :  { %v414_v29 = vadd.bf16 %v260_v11, %v259_v27 }
 0x1f3   :  { %v8921_v15 = vpop.f32.mrb[84].mxu0  ;;  %v8923_v5 = vpop.f32.mrb[84].mxu1 }
 0x1f4   :  { %10597 = vst [vmem:[#allocation28_spill] sm:$0xff] %v8921_v15  ;;  %10598 = vst [vmem:[#allocation29_spill] sm:$0xff] %v8923_v5  ;;  %v8925_v45 = vpop.f32.mrb[85].mxu0  ;;  %v8927_v37 = vpop.f32.mrb[85].mxu1  ;;  %v2063_v15 = vsub.bf16 %v259_v27, %v260_v11  ;;  %v7528_v5 = vcombine.low %v411_v22, %v412_v56 }
 0x1f5   :  { %10599 = vst [vmem:[#allocation30_spill] sm:$0xff] %v8925_v45  ;;  %10600 = vst [vmem:[#allocation31_spill] sm:$0xff] %v8927_v37  ;;  %v8929_v57 = vpop.f32.mrb[86].mxu0  ;;  %v8931_v49 = vpop.f32.mrb[86].mxu1  ;;  %v7531_v45 = vcombine.high %v413_v62, %v414_v29 }
 0x1f6   :  { %10601 = vst [vmem:[#allocation32_spill] sm:$0xff] %v8929_v57  ;;  %10602 = vst [vmem:[#allocation33_spill] sm:$0xff] %v8931_v49  ;;  %v8937_v48 = vpop.f32.mrb[87].mxu0  ;;  %v8939_v23 = vpop.f32.mrb[87].mxu1  ;;  %v7672_v49 = vcombine.low %v2060_v63, %v2061_v20  ;;  %v7675_v36 = vcombine.high %v2062_v10, %v2063_v15 }
 0x1f7   :  { %10603 = vst [vmem:[#allocation34_spill] sm:$0xff] %v8937_v48  ;;  %10604 = vst [vmem:[#allocation35_spill] sm:$0xff] %v8939_v23 }
 0x1f8   :  { %1658 = vmatmul.mubr.bf16.gmra.mrb[192].mxu0 %v7526_v52  ;;  %3147 = vmatmul.mubr.bf16.gmra.mrb[192].mxu1 %v7670_v44  ;;  %v261_v52 = vld [vmem:[#allocation3 + $0x660] sm:$0xff]  ;;  %v262_v44 = vld [vmem:[#allocation3 + $0x668] sm:$0xff] }
 0x1f9   :  { %1667 = vmatprep.mubr.bf16.mxu0 %v7529_v4  ;;  %3156 = vmatprep.mubr.bf16.mxu1 %v7673_v39  ;;  %v263_v39 = vld [vmem:[#allocation3 + $0x670] sm:$0xff]  ;;  %v415_v11 = vadd.bf16 %v262_v44, %v261_v52  ;;  %v2064_v38 = vsub.bf16 %v261_v52, %v262_v44  ;;  %v268_v52 = vld [vmem:[#allocation3 + $0x698] sm:$0xff] }
 0x1fa   :  { %v416_v23 = vadd.bf16 %v264_v12, %v263_v39 }
 0x1fb   :  { %v8945_v57 = vpop.f32.mrb[88].mxu0  ;;  %v8947_v21 = vpop.f32.mrb[88].mxu1 }
 0x1fc   :  { %10605 = vst [vmem:[#allocation36_spill] sm:$0xff] %v8945_v57  ;;  %10606 = vst [vmem:[#allocation37_spill] sm:$0xff] %v8947_v21  ;;  %v8949_v50 = vpop.f32.mrb[89].mxu0  ;;  %v8951_v28 = vpop.f32.mrb[89].mxu1  ;;  %v2065_v57 = vsub.bf16 %v263_v39, %v264_v12  ;;  %v7530_v21 = vcombine.low %v413_v62, %v414_v29 }
 0x1fd   :  { %10607 = vst [vmem:[#allocation38_spill] sm:$0xff] %v8949_v50  ;;  %10608 = vst [vmem:[#allocation39_spill] sm:$0xff] %v8951_v28  ;;  %v8953_v37 = vpop.f32.mrb[90].mxu0  ;;  %v8955_v4 = vpop.f32.mrb[90].mxu1  ;;  %v7533_v50 = vcombine.high %v415_v11, %v416_v23 }
 0x1fe   :  { %10609 = vst [vmem:[#allocation40_spill] sm:$0xff] %v8953_v37  ;;  %10610 = vst [vmem:[#allocation41_spill] sm:$0xff] %v8955_v4  ;;  %v8961_v56 = vpop.f32.mrb[91].mxu0  ;;  %v8963_v63 = vpop.f32.mrb[91].mxu1  ;;  %v7674_v4 = vcombine.low %v2062_v10, %v2063_v15  ;;  %v7677_v27 = vcombine.high %v2064_v38, %v2065_v57 }
 0x1ff   :  { %10611 = vst [vmem:[#allocation42_spill] sm:$0xff] %v8961_v56  ;;  %10612 = vst [vmem:[#allocation43_spill] sm:$0xff] %v8963_v63 }
 0x200   :  { %1668 = vmatmul.mubr.bf16.gmra.mrb[196].mxu0 %v7528_v5  ;;  %3157 = vmatmul.mubr.bf16.gmra.mrb[196].mxu1 %v7672_v49  ;;  %v265_v5 = vld [vmem:[#allocation3 + $0x680] sm:$0xff]  ;;  %v266_v49 = vld [vmem:[#allocation3 + $0x688] sm:$0xff] }
 0x201   :  { %1677 = vmatprep.mubr.bf16.mxu0 %v7531_v45  ;;  %3166 = vmatprep.mubr.bf16.mxu1 %v7675_v36  ;;  %v267_v36 = vld [vmem:[#allocation3 + $0x690] sm:$0xff]  ;;  %v417_v12 = vadd.bf16 %v266_v49, %v265_v5  ;;  %v2066_v44 = vsub.bf16 %v265_v5, %v266_v49  ;;  %v272_v5 = vld [vmem:[#allocation3 + $0x6b8] sm:$0xff] }
 0x202   :  { %v418_v63 = vadd.bf16 %v268_v52, %v267_v36 }
 0x203   :  { %v8969_v37 = vpop.f32.mrb[92].mxu0  ;;  %v8971_v20 = vpop.f32.mrb[92].mxu1 }
 0x204   :  { %10613 = vst [vmem:[#allocation44_spill] sm:$0xff] %v8969_v37  ;;  %10614 = vst [vmem:[#allocation45_spill] sm:$0xff] %v8971_v20  ;;  %v8973_v48 = vpop.f32.mrb[93].mxu0  ;;  %v8975_v22 = vpop.f32.mrb[93].mxu1  ;;  %v2067_v37 = vsub.bf16 %v267_v36, %v268_v52  ;;  %v7532_v20 = vcombine.low %v415_v11, %v416_v23 }
 0x205   :  { %10615 = vst [vmem:[#allocation46_spill] sm:$0xff] %v8973_v48  ;;  %10616 = vst [vmem:[#allocation47_spill] sm:$0xff] %v8975_v22  ;;  %v8977_v28 = vpop.f32.mrb[94].mxu0  ;;  %v8979_v45 = vpop.f32.mrb[94].mxu1  ;;  %v7535_v48 = vcombine.high %v417_v12, %v418_v63 }
 0x206   :  { %10617 = vst [vmem:[#allocation48_spill] sm:$0xff] %v8977_v28  ;;  %10618 = vst [vmem:[#allocation49_spill] sm:$0xff] %v8979_v45  ;;  %v8985_v29 = vpop.f32.mrb[95].mxu0  ;;  %v8987_v10 = vpop.f32.mrb[95].mxu1  ;;  %v7676_v45 = vcombine.low %v2064_v38, %v2065_v57  ;;  %v7679_v39 = vcombine.high %v2066_v44, %v2067_v37 }
 0x207   :  { %10619 = vst [vmem:[#allocation50_spill] sm:$0xff] %v8985_v29  ;;  %10620 = vst [vmem:[#allocation51_spill] sm:$0xff] %v8987_v10 }
 0x208   :  { %1678 = vmatmul.mubr.bf16.gmra.mrb[200].mxu0 %v7530_v21  ;;  %3167 = vmatmul.mubr.bf16.gmra.mrb[200].mxu1 %v7674_v4  ;;  %v269_v21 = vld [vmem:[#allocation3 + $0x6a0] sm:$0xff]  ;;  %v270_v4 = vld [vmem:[#allocation3 + $0x6a8] sm:$0xff] }
 0x209   :  { %1687 = vmatprep.mubr.bf16.mxu0 %v7533_v50  ;;  %3176 = vmatprep.mubr.bf16.mxu1 %v7677_v27  ;;  %v271_v27 = vld [vmem:[#allocation3 + $0x6b0] sm:$0xff]  ;;  %v419_v52 = vadd.bf16 %v270_v4, %v269_v21  ;;  %v2068_v49 = vsub.bf16 %v269_v21, %v270_v4  ;;  %v276_v21 = vld [vmem:[#allocation3 + $0x6d8] sm:$0xff] }
 0x20a   :  { %v420_v10 = vadd.bf16 %v272_v5, %v271_v27 }
 0x20b   :  { %v8993_v28 = vpop.f32.mrb[96].mxu0  ;;  %v8995_v15 = vpop.f32.mrb[96].mxu1 }
 0x20c   :  { %10621 = vst [vmem:[#allocation52_spill] sm:$0xff] %v8993_v28  ;;  %10622 = vst [vmem:[#allocation53_spill] sm:$0xff] %v8995_v15  ;;  %v8997_v56 = vpop.f32.mrb[97].mxu0  ;;  %v8999_v62 = vpop.f32.mrb[97].mxu1  ;;  %v2069_v28 = vsub.bf16 %v271_v27, %v272_v5  ;;  %v7534_v15 = vcombine.low %v417_v12, %v418_v63 }
 0x20d   :  { %10623 = vst [vmem:[#allocation54_spill] sm:$0xff] %v8997_v56  ;;  %10624 = vst [vmem:[#allocation55_spill] sm:$0xff] %v8999_v62  ;;  %v9001_v22 = vpop.f32.mrb[98].mxu0  ;;  %v9003_v50 = vpop.f32.mrb[98].mxu1  ;;  %v7537_v56 = vcombine.high %v419_v52, %v420_v10 }
 0x20e   :  { %10625 = vst [vmem:[#allocation56_spill] sm:$0xff] %v9001_v22  ;;  %10626 = vst [vmem:[#allocation57_spill] sm:$0xff] %v9003_v50  ;;  %v9009_v23 = vpop.f32.mrb[99].mxu0  ;;  %v9011_v38 = vpop.f32.mrb[99].mxu1  ;;  %v7678_v50 = vcombine.low %v2066_v44, %v2067_v37  ;;  %v7681_v36 = vcombine.high %v2068_v49, %v2069_v28 }
 0x20f   :  { %10627 = vst [vmem:[#allocation58_spill] sm:$0xff] %v9009_v23  ;;  %10628 = vst [vmem:[#allocation59_spill] sm:$0xff] %v9011_v38 }
 0x210   :  { %1688 = vmatmul.mubr.bf16.gmra.mrb[204].mxu0 %v7532_v20  ;;  %3177 = vmatmul.mubr.bf16.gmra.mrb[204].mxu1 %v7676_v45  ;;  %v273_v20 = vld [vmem:[#allocation3 + $0x6c0] sm:$0xff]  ;;  %v274_v45 = vld [vmem:[#allocation3 + $0x6c8] sm:$0xff] }
 0x211   :  { %1697 = vmatprep.mubr.bf16.mxu0 %v7535_v48  ;;  %3186 = vmatprep.mubr.bf16.mxu1 %v7679_v39  ;;  %v275_v39 = vld [vmem:[#allocation3 + $0x6d0] sm:$0xff]  ;;  %v421_v5 = vadd.bf16 %v274_v45, %v273_v20  ;;  %v2070_v4 = vsub.bf16 %v273_v20, %v274_v45  ;;  %v280_v20 = vld [vmem:[#allocation3 + $0x6f8] sm:$0xff] }
 0x212   :  { %v422_v38 = vadd.bf16 %v276_v21, %v275_v39 }
 0x213   :  { %v9017_v22 = vpop.f32.mrb[100].mxu0  ;;  %v9019_v57 = vpop.f32.mrb[100].mxu1 }
 0x214   :  { %10629 = vst [vmem:[#allocation60_spill] sm:$0xff] %v9017_v22  ;;  %10630 = vst [vmem:[#allocation61_spill] sm:$0xff] %v9019_v57  ;;  %v9021_v29 = vpop.f32.mrb[101].mxu0  ;;  %v9023_v11 = vpop.f32.mrb[101].mxu1  ;;  %v2071_v22 = vsub.bf16 %v275_v39, %v276_v21  ;;  %v7536_v57 = vcombine.low %v419_v52, %v420_v10 }
 0x215   :  { %10631 = vst [vmem:[#allocation62_spill] sm:$0xff] %v9021_v29  ;;  %10632 = vst [vmem:[#allocation63_spill] sm:$0xff] %v9023_v11  ;;  %v9025_v62 = vpop.f32.mrb[102].mxu0  ;;  %v9027_v48 = vpop.f32.mrb[102].mxu1  ;;  %v7539_v29 = vcombine.high %v421_v5, %v422_v38 }
 0x216   :  { %10633 = vst [vmem:[#allocation64_spill] sm:$0xff] %v9025_v62  ;;  %10634 = vst [vmem:[#allocation65_spill] sm:$0xff] %v9027_v48  ;;  %v9033_v63 = vpop.f32.mrb[103].mxu0  ;;  %v9035_v44 = vpop.f32.mrb[103].mxu1  ;;  %v7680_v48 = vcombine.low %v2068_v49, %v2069_v28  ;;  %v7683_v27 = vcombine.high %v2070_v4, %v2071_v22 }
 0x217   :  { %10635 = vst [vmem:[#allocation66_spill] sm:$0xff] %v9033_v63  ;;  %10636 = vst [vmem:[#allocation67_spill] sm:$0xff] %v9035_v44 }
 0x218   :  { %1698 = vmatmul.mubr.bf16.gmra.mrb[208].mxu0 %v7534_v15  ;;  %3187 = vmatmul.mubr.bf16.gmra.mrb[208].mxu1 %v7678_v50  ;;  %v277_v15 = vld [vmem:[#allocation3 + $0x6e0] sm:$0xff]  ;;  %v278_v50 = vld [vmem:[#allocation3 + $0x6e8] sm:$0xff] }
 0x219   :  { %1707 = vmatprep.mubr.bf16.mxu0 %v7537_v56  ;;  %3196 = vmatprep.mubr.bf16.mxu1 %v7681_v36  ;;  %v279_v36 = vld [vmem:[#allocation3 + $0x6f0] sm:$0xff]  ;;  %v423_v21 = vadd.bf16 %v278_v50, %v277_v15  ;;  %v2072_v45 = vsub.bf16 %v277_v15, %v278_v50 }
 0x21a   :  { %v424_v44 = vadd.bf16 %v280_v20, %v279_v36 }
 0x21b   :  { %v9041_v62 = vpop.f32.mrb[104].mxu0  ;;  %v9043_v37 = vpop.f32.mrb[104].mxu1 }
 0x21c   :  { %10637 = vst [vmem:[#allocation68_spill] sm:$0xff] %v9041_v62  ;;  %10638 = vst [vmem:[#allocation69_spill] sm:$0xff] %v9043_v37  ;;  %v9045_v23 = vpop.f32.mrb[105].mxu0  ;;  %v9047_v12 = vpop.f32.mrb[105].mxu1  ;;  %v2073_v62 = vsub.bf16 %v279_v36, %v280_v20  ;;  %v7538_v37 = vcombine.low %v421_v5, %v422_v38  ;;  %v7540_v36 = vcombine.low %v423_v21, %v424_v44 }
 0x21d   :  { %10639 = vst [vmem:[#allocation70_spill] sm:$0xff] %v9045_v23  ;;  %v9049_v11 = vpop.f32.mrb[106].mxu0  ;;  %v9051_v56 = vpop.f32.mrb[106].mxu1  ;;  %v7541_v23 = vcombine.high %v423_v21, %v424_v44 }
 0x21e   :  { %10640 = vst [vmem:[#allocation71_spill] sm:$0xff] %v9049_v11  ;;  %10641 = vst [vmem:[#allocation72_spill] sm:$0xff] %v9051_v56  ;;  %v9057_v10 = vpop.f32.mrb[107].mxu0  ;;  %v9059_v49 = vpop.f32.mrb[107].mxu1  ;;  %v7682_v56 = vcombine.low %v2070_v4, %v2071_v22  ;;  %v7685_v39 = vcombine.high %v2072_v45, %v2073_v62  ;;  %v7684_v20 = vcombine.low %v2072_v45, %v2073_v62  ;;  %v8417_v45 = vld [vmem:[#allocation8 + $0x14] ss:$8 sps:$4 sm:$0xff]  }
 0x220   :  { %1708 = vmatmul.mubr.bf16.gmra.mrb[212].mxu0 %v7536_v57  ;;  %3197 = vmatmul.mubr.bf16.gmra.mrb[212].mxu1 %v7680_v48 }
 0x221   :  { %1717 = vmatprep.mubr.bf16.mxu0 %v7539_v29  ;;  %3206 = vmatprep.mubr.bf16.mxu1 %v7683_v27 }
 0x223   :  { %v9065_v11 = vpop.f32.mrb[108].mxu0  ;;  %v9067_v28 = vpop.f32.mrb[108].mxu1 }
 0x224   :  { %10642 = vst [vmem:[#allocation73_spill] sm:$0xff] %v9067_v28  ;;  %v9069_v63 = vpop.f32.mrb[109].mxu0  ;;  %v9071_v52 = vpop.f32.mrb[109].mxu1  ;;  %v8416_v28 = vld [vmem:[#allocation8 + $0x4] ss:$8 sps:$4 sm:$0xff]  }
 0x225   :  { %v9073_v57 = vpop.f32.mrb[110].mxu0  ;;  %v9075_v48 = vpop.f32.mrb[110].mxu1 }
 0x226   :  { %10643 = vst [vmem:[#allocation74_spill] sm:$0xff] %v9075_v48  ;;  %v9081_v15 = vpop.f32.mrb[111].mxu0  ;;  %v9083_v38 = vpop.f32.mrb[111].mxu1 }
 0x228   :  { %1718 = vmatmul.mubr.bf16.gmra.mrb[216].mxu0 %v7538_v37  ;;  %3207 = vmatmul.mubr.bf16.gmra.mrb[216].mxu1 %v7682_v56  ;;  %v8414_v37 = vld [vmem:[#allocation8] ss:$8 sps:$4 sm:$0xff]  }
 0x229   :  { %1727 = vmatprep.mubr.bf16.mxu0 %v7541_v23  ;;  %3216 = vmatprep.mubr.bf16.mxu1 %v7685_v39 }
 0x22b   :  { %v9089_v5 = vpop.f32.mrb[112].mxu0  ;;  %v9091_v50 = vpop.f32.mrb[112].mxu1 }
 0x22c   :  { %10644 = vst [vmem:[#allocation75_spill] sm:$0xff] %v9089_v5  ;;  %10645 = vst [vmem:[#allocation76_spill] sm:$0xff] %v9091_v50  ;;  %v9093_v27 = vpop.f32.mrb[113].mxu0  ;;  %v9095_v29 = vpop.f32.mrb[113].mxu1  ;;  %v10712_v5 = vld [vmem:[#allocation38_spill] sm:$0xff] }
 0x22d   :  { %10646 = vst [vmem:[#allocation77_spill] sm:$0xff] %v9095_v29  ;;  %v9097_v48 = vpop.f32.mrb[114].mxu0  ;;  %v9099_v22 = vpop.f32.mrb[114].mxu1  ;;  %v10649_v29 = vpack.c.bf16 %v8769_v16, %v8765_v6  ;;  %v8419_v16 = vld [vmem:[#allocation8 + $0x10] ss:$8 sps:$4 sm:$0xff]  }
 0x22e   :  { %10647 = vst [vmem:[#allocation78_spill] sm:$0xff] %v9097_v48  ;;  %10648 = vst [vmem:[#allocation79_spill] sm:$0xff] %v9099_v22  ;;  %v9105_v56 = vpop.f32.mrb[115].mxu0  ;;  %v9107_v44 = vpop.f32.mrb[115].mxu1  ;;  %v10652_v48 = vpack.c.bf16 %v8795_v47, %v8783_v35 }
 0x230   :  { %1728 = vmatmul.mubr.bf16.gmra.mrb[220].mxu0 %v7540_v36  ;;  %3217 = vmatmul.mubr.bf16.gmra.mrb[220].mxu1 %v7684_v20  ;;  %v10650_v36 = vpack.c.bf16 %v8771_v17, %v8767_v7  ;;  %v10653_v17 = vpack.c.bf16 %v8785_v40, %v8777_v30 }
 0x231   :  { %7714 = vmatprep.mubr.msk.bf16.mxu0 %vm3913_vm0, %v8416_v28  ;;  %7728 = vmatprep.mubr.msk.bf16.mxu1 %vm3913_vm0, %v8416_v28  ;;  %v10651_v28 = vpack.c.bf16 %v8793_v46, %v8781_v34  ;;  %v10654_v34 = vpack.c.bf16 %v8787_v41, %v8779_v31  ;;  %v8420_v46 = vld [vmem:[#allocation8 + $0x24] ss:$8 sps:$4 sm:$0xff]  }
 0x233   :  { %v9115_v39 = vpop.f32.mrb[116].mxu0  ;;  %v9117_v21 = vpop.f32.mrb[116].mxu1 }
 0x234   :  { %v9119_v23 = vpop.f32.mrb[117].mxu0  ;;  %v9121_v4 = vpop.f32.mrb[117].mxu1 }
 0x235   :  { %v9123_v50 = vpop.f32.mrb[118].mxu0  ;;  %v9125_v62 = vpop.f32.mrb[118].mxu1 }
 0x236   :  { %v9131_v20 = vpop.f32.mrb[119].mxu0  ;;  %v9133_v22 = vpop.f32.mrb[119].mxu1 }
 0x238   :  { %3989 = vmatmul.mubr.bf16.vlgmr.msra.gmra.mrb[224].mxu0 %v8414_v37  ;;  %4162 = vmatmul.mubr.bf16.vlgmr.msra.gmra.mrb[224].mxu1 %v8414_v37 }
 0x239   :  { %4471 = vmatpush1.bf16.msra.mxu0 %v10649_v29  ;;  %4644 = vmatpush1.bf16.msra.mxu1 %v10650_v36  ;;  %v10711_v36 = vld [vmem:[#allocation42_spill] sm:$0xff] }
 0x23a   :  { %7715 = vmatprep.mubr.msk.bf16.mxu0 %vm3913_vm0, %v8417_v45  ;;  %7729 = vmatprep.mubr.msk.bf16.mxu1 %vm3913_vm0, %v8417_v45  ;;  %v10656_v45 = vpack.c.bf16 %v8819_v9, %v8807_v59  ;;  %v10657_v59 = vpack.c.bf16 %v8809_v0, %v8801_v54  ;;  %v10659_v9 = vpack.c.bf16 %v8841_v42, %v8829_v24  ;;  %v8423_v0 = vld [vmem:[#allocation8 + $0x34] ss:$8 sps:$4 sm:$0xff]  }
 0x23b   :  { %4472 = vmatprep.subr.bf16.mxu0 %v10651_v28  ;;  %4645 = vmatprep.subr.bf16.mxu1 %v10652_v48  ;;  %v9153_v37 = vpop.f32.mrb[120].mxu0  ;;  %v9155_v6 = vpop.f32.mrb[120].mxu1  ;;  %v10655_v48 = vpack.c.bf16 %v8817_v8, %v8805_v58  ;;  %v10658_v8 = vpack.c.bf16 %v8811_v1, %v8803_v55  ;;  %v10660_v28 = vpack.c.bf16 %v8843_v43, %v8831_v25  ;;  %v10680_v43 = vld [vmem:[#allocation22_spill] sm:$0xff] }
 0x23c   :  { %v9157_v29 = vpop.f32.mrb[121].mxu0  ;;  %v9159_v7 = vpop.f32.mrb[121].mxu1  ;;  %v10661_v24 = vpack.c.bf16 %v8833_v32, %v8825_v18  ;;  %v10662_v25 = vpack.c.bf16 %v8835_v33, %v8827_v19  ;;  %v10664_v18 = vpack.c.bf16 %v8867_v14, %v8855_v3  ;;  %v10665_v33 = vpack.c.bf16 %v8857_v51, %v8849_v60  ;;  %v10667_v3 = vld [vmem:[#allocation15_spill] sm:$0xff]  ;;  %v8426_v60 = vld [vmem:[#allocation8 + $0x44] ss:$8 sps:$4 sm:$0xff]  }
 0x23d   :  { %4473 = vmatpush1.bf16.msra.mxu0 %v10653_v17  ;;  %4646 = vmatpush1.bf16.msra.mxu1 %v10654_v34  ;;  %v9167_v35 = vpop.f32.mrb[122].mxu0  ;;  %v9169_v47 = vpop.f32.mrb[122].mxu1  ;;  %v8422_v34 = vld [vmem:[#allocation8 + $0x20] ss:$8 sps:$4 sm:$0xff]   ;;  %v10669_v14 = vld [vmem:[#allocation19_spill] sm:$0xff] }
 0x23e   :  { %4474 = vmatprep.subr.bf16.mxu0 %v10655_v48  ;;  %4647 = vmatprep.subr.bf16.mxu1 %v10656_v45  ;;  %v9181_v40 = vpop.f32.mrb[123].mxu0  ;;  %v9183_v41 = vpop.f32.mrb[123].mxu1 }
 0x240   :  { %3999 = vmatmul.mubr.bf16.gmra.mrb[228].mxu0 %v8419_v16  ;;  %4172 = vmatmul.mubr.bf16.gmra.mrb[228].mxu1 %v8419_v16 }
 0x241   :  { %7716 = vmatprep.mubr.msk.bf16.mxu0 %vm3913_vm0, %v8420_v46  ;;  %7730 = vmatprep.mubr.msk.bf16.mxu1 %vm3913_vm0, %v8420_v46 }
 0x242   :  { %4475 = vmatpush1.bf16.msra.mxu0 %v10657_v59  ;;  %4648 = vmatpush1.bf16.msra.mxu1 %v10658_v8  ;;  %v10663_v59 = vpack.c.bf16 %v8865_v13, %v8853_v2  ;;  %v10666_v2 = vpack.c.bf16 %v8859_v26, %v8851_v61  ;;  %v10668_v13 = vpack.c.bf16 %v8889_v53, %v10667_v3  ;;  %v10670_v8 = vld [vmem:[#allocation16_spill] sm:$0xff]  ;;  %v10673_v53 = vld [vmem:[#allocation17_spill] sm:$0xff] }
 0x243   :  { %4476 = vmatprep.subr.bf16.mxu0 %v10659_v9  ;;  %4649 = vmatprep.subr.bf16.mxu1 %v10660_v28  ;;  %v9203_v16 = vpop.f32.mrb[124].mxu0  ;;  %v9205_v17 = vpop.f32.mrb[124].mxu1  ;;  %v10671_v9 = vpack.c.bf16 %v10669_v14, %v10670_v8 }
 0x244   :  { %v9207_v46 = vpop.f32.mrb[125].mxu0  ;;  %v9209_v54 = vpop.f32.mrb[125].mxu1 }
 0x245   :  { %v9211_v55 = vpop.f32.mrb[126].mxu0  ;;  %v9213_v1 = vpop.f32.mrb[126].mxu1 }
 0x246   :  { %4477 = vmatpush1.bf16.msra.mxu0 %v10661_v24  ;;  %4650 = vmatpush1.bf16.msra.mxu1 %v10662_v25  ;;  %v9225_v48 = vpop.f32.mrb[127].mxu0  ;;  %v9227_v45 = vpop.f32.mrb[127].mxu1  ;;  %v10674_v25 = vld [vmem:[#allocation13_spill] sm:$0xff] }
 0x247   :  { %4478 = vmatprep.subr.bf16.mxu0 %v10663_v59  ;;  %4651 = vmatprep.subr.bf16.mxu1 %v10664_v18  ;;  %v10675_v59 = vpack.c.bf16 %v10673_v53, %v10674_v25  ;;  %v10676_v18 = vld [vmem:[#allocation18_spill] sm:$0xff]  ;;  %v10682_v53 = vld [vmem:[#allocation27_spill] sm:$0xff] }
 0x248   :  { %4009 = vmatmul.mubr.bf16.gmra.mrb[232].mxu0 %v8422_v34  ;;  %4182 = vmatmul.mubr.bf16.gmra.mrb[232].mxu1 %v8422_v34  ;;  %v10683_v25 = vld [vmem:[#allocation23_spill] sm:$0xff] }
 0x249   :  { %7717 = vmatprep.mubr.msk.bf16.mxu0 %vm3913_vm0, %v8423_v0  ;;  %7731 = vmatprep.mubr.msk.bf16.mxu1 %vm3913_vm0, %v8423_v0  ;;  %v8425_v0 = vld [vmem:[#allocation8 + $0x30] ss:$8 sps:$4 sm:$0xff]  }
 0x24a   :  { %4479 = vmatpush1.bf16.msra.mxu0 %v10665_v33  ;;  %4652 = vmatpush1.bf16.msra.mxu1 %v10666_v2  ;;  %v10677_v33 = vld [vmem:[#allocation14_spill] sm:$0xff] }
 0x24b   :  { %4480 = vmatprep.subr.bf16.mxu0 %v10668_v13  ;;  %4653 = vmatprep.subr.bf16.mxu1 %v10671_v9  ;;  %v9253_v28 = vpop.f32.mrb[128].mxu0  ;;  %v9255_v34 = vpop.f32.mrb[128].mxu1  ;;  %v10678_v2 = vpack.c.bf16 %v10676_v18, %v10677_v33  ;;  %v10679_v9 = vld [vmem:[#allocation26_spill] sm:$0xff]  ;;  %v10686_v13 = vld [vmem:[#allocation20_spill] sm:$0xff]  ;;  %v10694_v18 = vld [vmem:[#allocation35_spill] sm:$0xff] }
 0x24c   :  { %10672 = vst [vmem:[#allocation15_spill] sm:$0xff] %v9255_v34  ;;  %v9257_v24 = vpop.f32.mrb[129].mxu0  ;;  %v9259_v51 = vpop.f32.mrb[129].mxu1  ;;  %v10681_v42 = vpack.c.bf16 %v10679_v9, %v10680_v43  ;;  %v10689_v9 = vld [vmem:[#allocation21_spill] sm:$0xff]  ;;  %v10695_v33 = vld [vmem:[#allocation31_spill] sm:$0xff]  ;;  %v10713_v34 = vpack.c.bf16 %v10711_v36, %v10712_v5 }
 0x24d   :  { %v9261_v61 = vpop.f32.mrb[130].mxu0  ;;  %v9263_v26 = vpop.f32.mrb[130].mxu1  ;;  %v10696_v32 = vpack.c.bf16 %v10694_v18, %v10695_v33  ;;  %v10706_v18 = vld [vmem:[#allocation33_spill] sm:$0xff] }
 0x24e   :  { %4481 = vmatpush1.bf16.msra.mxu0 %v10675_v59  ;;  %4654 = vmatpush1.bf16.msra.mxu1 %v10678_v2  ;;  %v9275_v14 = vpop.f32.mrb[131].mxu0  ;;  %v9277_v8 = vpop.f32.mrb[131].mxu1  ;;  %v10684_v59 = vpack.c.bf16 %v10682_v53, %v10683_v25  ;;  %v10685_v2 = vld [vmem:[#allocation24_spill] sm:$0xff]  ;;  %v10691_v25 = vld [vmem:[#allocation34_spill] sm:$0xff]  ;;  %v10720_v36 = vld [vmem:[#allocation41_spill] sm:$0xff] }
 0x24f   :  { %4482 = vmatprep.subr.bf16.mxu0 %v10681_v42  ;;  %v10687_v43 = vpack.c.bf16 %v10685_v2, %v10686_v13  ;;  %v10688_v42 = vld [vmem:[#allocation25_spill] sm:$0xff]  ;;  %v8429_v2 = vld [vmem:[#allocation8 + $0x54] ss:$8 sps:$4 sm:$0xff]  }
 0x250   :  { %4655 = vmatprep.subr.bf16.mxu1 %v10684_v59  ;;  %4019 = vmatmul.mubr.bf16.gmra.mrb[236].mxu0 %v8425_v0  ;;  %v10690_v53 = vpack.c.bf16 %v10688_v42, %v10689_v9  ;;  %v10692_v59 = vld [vmem:[#allocation30_spill] sm:$0xff]  ;;  %v10703_v9 = vld [vmem:[#allocation32_spill] sm:$0xff] }
 0x251   :  { %4192 = vmatmul.mubr.bf16.gmra.mrb[236].mxu1 %v8425_v0  ;;  %7718 = vmatprep.mubr.msk.bf16.mxu0 %vm3913_vm0, %v8426_v60  ;;  %v10693_v3 = vpack.c.bf16 %v10691_v25, %v10692_v59  ;;  %v10718_v59 = vld [vmem:[#allocation36_spill] sm:$0xff] }
 0x252   :  { %7732 = vmatprep.mubr.msk.bf16.mxu1 %vm3913_vm0, %v8426_v60  ;;  %4483 = vmatpush1.bf16.msra.mxu0 %v10687_v43  ;;  %v8428_v60 = vld [vmem:[#allocation8 + $0x40] ss:$8 sps:$4 sm:$0xff]  }
 0x253   :  { %4656 = vmatpush1.bf16.msra.mxu1 %v10690_v53  ;;  %4484 = vmatprep.subr.bf16.mxu0 %v10693_v3  ;;  %v9303_v0 = vpop.f32.mrb[132].mxu0  ;;  %v9305_v19 = vpop.f32.mrb[132].mxu1  ;;  %v10704_v3 = vld [vmem:[#allocation28_spill] sm:$0xff] }
 0x254   :  { %4657 = vmatprep.subr.bf16.mxu1 %v10696_v32  ;;  %10697 = vst [vmem:[#allocation19_spill] sm:$0xff] %v9303_v0  ;;  %10698 = vst [vmem:[#allocation16_spill] sm:$0xff] %v9305_v19  ;;  %v9307_v31 = vpop.f32.mrb[133].mxu0  ;;  %v9309_v13 = vpop.f32.mrb[133].mxu1  ;;  %v10705_v53 = vpack.c.bf16 %v10703_v9, %v10704_v3  ;;  %v10707_v32 = vld [vmem:[#allocation29_spill] sm:$0xff]  ;;  %v10714_v9 = vld [vmem:[#allocation43_spill] sm:$0xff] }
 0x255   :  { %10699 = vst [vmem:[#allocation17_spill] sm:$0xff] %v9307_v31  ;;  %10700 = vst [vmem:[#allocation13_spill] sm:$0xff] %v9309_v13  ;;  %v9311_v43 = vpop.f32.mrb[134].mxu0  ;;  %v9313_v42 = vpop.f32.mrb[134].mxu1  ;;  %v10708_v33 = vpack.c.bf16 %v10706_v18, %v10707_v32  ;;  %v10715_v3 = vld [vmem:[#allocation39_spill] sm:$0xff]  ;;  %v10743_v31 = vld [vmem:[#allocation54_spill] sm:$0xff] }
 0x256   :  { %10701 = vst [vmem:[#allocation18_spill] sm:$0xff] %v9311_v43  ;;  %10702 = vst [vmem:[#allocation14_spill] sm:$0xff] %v9313_v42  ;;  %4485 = vmatpush1.bf16.msra.mxu0 %v10705_v53  ;;  %v9325_v30 = vpop.f32.mrb[135].mxu0  ;;  %v9327_v58 = vpop.f32.mrb[135].mxu1  ;;  %v10716_v53 = vpack.c.bf16 %v10714_v9, %v10715_v3  ;;  %v10723_v3 = vld [vmem:[#allocation50_spill] sm:$0xff]  ;;  %v10726_v18 = vld [vmem:[#allocation51_spill] sm:$0xff] }
 0x257   :  { %4658 = vmatpush1.bf16.msra.mxu1 %v10708_v33  ;;  %10709 = vst [vmem:[#allocation26_spill] sm:$0xff] %v9325_v30  ;;  %10710 = vst [vmem:[#allocation22_spill] sm:$0xff] %v9327_v58  ;;  %4486 = vmatprep.subr.bf16.mxu0 %v10713_v34  ;;  %v10717_v33 = vld [vmem:[#allocation40_spill] sm:$0xff]  ;;  %v10721_v34 = vld [vmem:[#allocation37_spill] sm:$0xff] }
 0x258   :  { %4659 = vmatprep.subr.bf16.mxu1 %v10716_v53  ;;  %4029 = vmatmul.mubr.bf16.gmra.mrb[240].mxu0 %v8428_v60  ;;  %v10719_v5 = vpack.c.bf16 %v10717_v33, %v10718_v59  ;;  %v10722_v9 = vpack.c.bf16 %v10720_v36, %v10721_v34  ;;  %v10724_v53 = vld [vmem:[#allocation46_spill] sm:$0xff]  ;;  %v10727_v32 = vld [vmem:[#allocation47_spill] sm:$0xff]  ;;  %v10735_v34 = vld [vmem:[#allocation48_spill] sm:$0xff] }
 0x259   :  { %4202 = vmatmul.mubr.bf16.gmra.mrb[240].mxu1 %v8428_v60  ;;  %7719 = vmatprep.mubr.msk.bf16.mxu0 %vm3913_vm0, %v8429_v2  ;;  %v10725_v25 = vpack.c.bf16 %v10723_v3, %v10724_v53  ;;  %v10728_v19 = vpack.c.bf16 %v10726_v18, %v10727_v32  ;;  %v8432_v33 = vld [vmem:[#allocation8 + $0x64] ss:$8 sps:$4 sm:$0xff]   ;;  %v10749_v53 = vld [vmem:[#allocation52_spill] sm:$0xff] }
 0x25a   :  { %7733 = vmatprep.mubr.msk.bf16.mxu1 %vm3913_vm0, %v8429_v2  ;;  %4487 = vmatpush1.bf16.msra.mxu0 %v10719_v5  ;;  %v8431_v2 = vld [vmem:[#allocation8 + $0x50] ss:$8 sps:$4 sm:$0xff]   ;;  %v10738_v18 = vld [vmem:[#allocation49_spill] sm:$0xff]  ;;  %v10742_v58 = vld [vmem:[#allocation58_spill] sm:$0xff] }
 0x25b   :  { %4660 = vmatpush1.bf16.msra.mxu1 %v10722_v9  ;;  %4488 = vmatprep.subr.bf16.mxu0 %v10725_v25  ;;  %v9353_v60 = vpop.f32.mrb[136].mxu0  ;;  %v9355_v42 = vpop.f32.mrb[136].mxu1  ;;  %v10736_v25 = vld [vmem:[#allocation44_spill] sm:$0xff]  ;;  %v10744_v30 = vpack.c.bf16 %v10742_v58, %v10743_v31  ;;  %v10752_v58 = vld [vmem:[#allocation53_spill] sm:$0xff] }
 0x25c   :  { %4661 = vmatprep.subr.bf16.mxu1 %v10728_v19  ;;  %10729 = vst [vmem:[#allocation27_spill] sm:$0xff] %v9353_v60  ;;  %10730 = vst [vmem:[#allocation23_spill] sm:$0xff] %v9355_v42  ;;  %v9357_v0 = vpop.f32.mrb[137].mxu0  ;;  %v9359_v59 = vpop.f32.mrb[137].mxu1  ;;  %v10737_v9 = vpack.c.bf16 %v10735_v34, %v10736_v25  ;;  %v10739_v19 = vld [vmem:[#allocation45_spill] sm:$0xff]  ;;  %v10745_v34 = vld [vmem:[#allocation59_spill] sm:$0xff] }
 0x25d   :  { %10731 = vst [vmem:[#allocation24_spill] sm:$0xff] %v9357_v0  ;;  %10732 = vst [vmem:[#allocation20_spill] sm:$0xff] %v9359_v59  ;;  %v9361_v5 = vpop.f32.mrb[138].mxu0  ;;  %v9363_v36 = vpop.f32.mrb[138].mxu1  ;;  %v10740_v32 = vpack.c.bf16 %v10738_v18, %v10739_v19  ;;  %v10746_v25 = vld [vmem:[#allocation55_spill] sm:$0xff] }
 0x25e   :  { %10733 = vst [vmem:[#allocation25_spill] sm:$0xff] %v9361_v5  ;;  %10734 = vst [vmem:[#allocation21_spill] sm:$0xff] %v9363_v36  ;;  %4489 = vmatpush1.bf16.msra.mxu0 %v10737_v9  ;;  %v9375_v43 = vpop.f32.mrb[139].mxu0  ;;  %v9377_v13 = vpop.f32.mrb[139].mxu1  ;;  %v10747_v9 = vpack.c.bf16 %v10745_v34, %v10746_v25  ;;  %v10754_v25 = vld [vmem:[#allocation66_spill] sm:$0xff]  ;;  %v10757_v18 = vld [vmem:[#allocation67_spill] sm:$0xff] }
 0x25f   :  { %4662 = vmatpush1.bf16.msra.mxu1 %v10740_v32  ;;  %10741 = vst [vmem:[#allocation34_spill] sm:$0xff] %v9377_v13  ;;  %4490 = vmatprep.subr.bf16.mxu0 %v10744_v30  ;;  %v10748_v32 = vld [vmem:[#allocation56_spill] sm:$0xff]  ;;  %v10751_v30 = vld [vmem:[#allocation57_spill] sm:$0xff]  ;;  %v10758_v19 = vld [vmem:[#allocation63_spill] sm:$0xff] }
 0x260   :  { %4663 = vmatprep.subr.bf16.mxu1 %v10747_v9  ;;  %4039 = vmatmul.mubr.bf16.gmra.mrb[244].mxu0 %v8431_v2  ;;  %v10750_v31 = vpack.c.bf16 %v10748_v32, %v10749_v53  ;;  %v10753_v34 = vpack.c.bf16 %v10751_v30, %v10752_v58  ;;  %v10755_v9 = vld [vmem:[#allocation62_spill] sm:$0xff]  ;;  %v10759_v42 = vpack.c.bf16 %v10757_v18, %v10758_v19  ;;  %v8435_v32 = vld [vmem:[#allocation8 + $0x74] ss:$8 sps:$4 sm:$0xff]   ;;  %v10763_v18 = vld [vmem:[#allocation65_spill] sm:$0xff] }
 0x261   :  { %4212 = vmatmul.mubr.bf16.gmra.mrb[244].mxu1 %v8431_v2  ;;  %7720 = vmatprep.mubr.msk.bf16.mxu0 %vm3913_vm0, %v8432_v33  ;;  %v10756_v3 = vpack.c.bf16 %v10754_v25, %v10755_v9  ;;  %v10760_v58 = vld [vmem:[#allocation64_spill] sm:$0xff]  ;;  %v10766_v13 = vld [vmem:[#allocation70_spill] sm:$0xff]  ;;  %v10782_v25 = vpack.c.bf16 %v9105_v56, %v9093_v27 }
 0x262   :  { %7734 = vmatprep.mubr.msk.bf16.mxu1 %vm3913_vm0, %v8432_v33  ;;  %4491 = vmatpush1.bf16.msra.mxu0 %v10750_v31  ;;  %v8434_v33 = vld [vmem:[#allocation8 + $0x60] ss:$8 sps:$4 sm:$0xff]   ;;  %v10767_v0 = vpack.c.bf16 %v9057_v10, %v10766_v13 }
 0x263   :  { %4664 = vmatpush1.bf16.msra.mxu1 %v10753_v34  ;;  %4492 = vmatprep.subr.bf16.mxu0 %v10756_v3  ;;  %v9403_v2 = vpop.f32.mrb[140].mxu0  ;;  %v9405_v36 = vpop.f32.mrb[140].mxu1  ;;  %v10761_v3 = vld [vmem:[#allocation60_spill] sm:$0xff]  ;;  %v10773_v13 = vld [vmem:[#allocation69_spill] sm:$0xff] }
 0x264   :  { %4665 = vmatprep.subr.bf16.mxu1 %v10759_v42  ;;  %v9407_v60 = vpop.f32.mrb[141].mxu0  ;;  %v9409_v53 = vpop.f32.mrb[141].mxu1  ;;  %v10762_v34 = vpack.c.bf16 %v10760_v58, %v10761_v3  ;;  %v10764_v42 = vld [vmem:[#allocation61_spill] sm:$0xff]  ;;  %v10768_v58 = vpack.c.bf16 %v9059_v49, %v9047_v12  ;;  %v10775_v49 = vpack.c.bf16 %v9081_v15, %v9069_v63  ;;  %v10778_v63 = vpack.c.bf16 %v9073_v57, %v9065_v11 }
 0x265   :  { %v9411_v31 = vpop.f32.mrb[142].mxu0  ;;  %v9413_v30 = vpop.f32.mrb[142].mxu1  ;;  %v10765_v19 = vpack.c.bf16 %v10763_v18, %v10764_v42  ;;  %v10769_v18 = vld [vmem:[#allocation71_spill] sm:$0xff]  ;;  %v10770_v42 = vld [vmem:[#allocation68_spill] sm:$0xff]  ;;  %v10780_v15 = vld [vmem:[#allocation73_spill] sm:$0xff] }
 0x266   :  { %4493 = vmatpush1.bf16.msra.mxu0 %v10762_v34  ;;  %v9425_v5 = vpop.f32.mrb[143].mxu0  ;;  %v9427_v59 = vpop.f32.mrb[143].mxu1  ;;  %v10771_v10 = vpack.c.bf16 %v10769_v18, %v10770_v42  ;;  %v8440_v42 = vld [vmem:[#allocation8 + $0x84] ss:$8 sps:$4 sm:$0xff]   ;;  %v8438_v56 = vld [vmem:[#allocation8 + $0x80] ss:$8 sps:$4 sm:$0xff]  }
 0x267   :  { %4666 = vmatpush1.bf16.msra.mxu1 %v10765_v19  ;;  %4494 = vmatprep.subr.bf16.mxu0 %v10767_v0  ;;  %v10772_v0 = vld [vmem:[#allocation72_spill] sm:$0xff]  ;;  %v10776_v19 = vpack.c.bf16 %v9083_v38, %v9071_v52  ;;  %v10779_v52 = vld [vmem:[#allocation74_spill] sm:$0xff]  ;;  %v10783_v11 = vld [vmem:[#allocation77_spill] sm:$0xff] }
 0x268   :  { %4667 = vmatprep.subr.bf16.mxu1 %v10768_v58  ;;  %4049 = vmatmul.mubr.bf16.gmra.mrb[248].mxu0 %v8434_v33  ;;  %v10774_v12 = vpack.c.bf16 %v10772_v0, %v10773_v13  ;;  %v10781_v38 = vpack.c.bf16 %v10779_v52, %v10780_v15  ;;  %v10784_v57 = vpack.c.bf16 %v9107_v44, %v10783_v11 }
 0x269   :  { %4222 = vmatmul.mubr.bf16.gmra.mrb[248].mxu1 %v8434_v33  ;;  %7721 = vmatprep.mubr.msk.bf16.mxu0 %vm3913_vm0, %v8435_v32 }
 0x26a   :  { %7735 = vmatprep.mubr.msk.bf16.mxu1 %vm3913_vm0, %v8435_v32  ;;  %4495 = vmatpush1.bf16.msra.mxu0 %v10771_v10  ;;  %v8437_v32 = vld [vmem:[#allocation8 + $0x70] ss:$8 sps:$4 sm:$0xff]  }
 0x26b   :  { %4668 = vmatpush1.bf16.msra.mxu1 %v10774_v12  ;;  %4496 = vmatprep.subr.bf16.mxu0 %v10775_v49  ;;  %v9453_v33 = vpop.f32.mrb[144].mxu0  ;;  %v9455_v58 = vpop.f32.mrb[144].mxu1 }
 0x26c   :  { %4669 = vmatprep.subr.bf16.mxu1 %v10776_v19  ;;  %10777 = vst [vmem:[#allocation30_spill] sm:$0xff] %v9455_v58  ;;  %v9457_v9 = vpop.f32.mrb[145].mxu0  ;;  %v9459_v18 = vpop.f32.mrb[145].mxu1 }
 0x26d   :  { %v9461_v10 = vpop.f32.mrb[146].mxu0  ;;  %v9463_v0 = vpop.f32.mrb[146].mxu1 }
 0x26e   :  { %4497 = vmatpush1.bf16.msra.mxu0 %v10778_v63  ;;  %v9475_v49 = vpop.f32.mrb[147].mxu0  ;;  %v9477_v19 = vpop.f32.mrb[147].mxu1 }
 0x26f   :  { %4670 = vmatpush1.bf16.msra.mxu1 %v10781_v38  ;;  %4984 = vmatprep.subr.bf16.mxu0 %v10782_v25  ;;  %v8443_v38 = vld [vmem:[#allocation8 + $0x94] ss:$8 sps:$4 sm:$0xff]  }
 0x270   :  { %5157 = vmatprep.subr.bf16.mxu1 %v10784_v57  ;;  %4059 = vmatmul.mubr.bf16.gmra.mrb[252].mxu0 %v8437_v32 }
 0x271   :  { %4232 = vmatmul.mubr.bf16.gmra.mrb[252].mxu1 %v8437_v32  ;;  %7722 = vmatprep.mubr.msk.bf16.mxu0 %vm3913_vm0, %v8440_v42 }
 0x272   :  { %7736 = vmatprep.mubr.msk.bf16.mxu1 %vm3913_vm0, %v8440_v42  ;;  %v8441_v42 = vld [vmem:[#allocation8 + $0x90] ss:$8 sps:$4 sm:$0xff]  }
 0x273   :  { %v9491_v15 = vpop.f32.mrb[148].mxu0  ;;  %v9493_v27 = vpop.f32.mrb[148].mxu1 }
 0x274   :  { %10785 = vst [vmem:[#allocation35_spill] sm:$0xff] %v9491_v15  ;;  %10786 = vst [vmem:[#allocation31_spill] sm:$0xff] %v9493_v27  ;;  %v9495_v25 = vpop.f32.mrb[149].mxu0  ;;  %v9497_v44 = vpop.f32.mrb[149].mxu1 }
 0x275   :  { %10787 = vst [vmem:[#allocation32_spill] sm:$0xff] %v9495_v25  ;;  %10788 = vst [vmem:[#allocation28_spill] sm:$0xff] %v9497_v44  ;;  %v9499_v11 = vpop.f32.mrb[150].mxu0  ;;  %v9501_v57 = vpop.f32.mrb[150].mxu1  ;;  %v10835_v25 = vld [vmem:[#allocation78_spill] sm:$0xff] }
 0x276   :  { %10789 = vst [vmem:[#allocation33_spill] sm:$0xff] %v9499_v11  ;;  %10790 = vst [vmem:[#allocation29_spill] sm:$0xff] %v9501_v57  ;;  %v9507_v12 = vpop.f32.mrb[151].mxu0  ;;  %v9509_v13 = vpop.f32.mrb[151].mxu1  ;;  %v8446_v57 = vld [vmem:[#allocation8 + $0xa4] ss:$8 sps:$4 sm:$0xff]  }
 0x277   :  { %10791 = vst [vmem:[#allocation42_spill] sm:$0xff] %v9507_v12  ;;  %10792 = vst [vmem:[#allocation38_spill] sm:$0xff] %v9509_v13  ;;  %v10836_v12 = vld [vmem:[#allocation75_spill] sm:$0xff] }
 0x278   :  { %4069 = vmatmul.mubr.bf16.gmra.mrb[0].mxu0 %v8438_v56  ;;  %v10837_v58 = vpack.c.bf16 %v10835_v25, %v10836_v12 }
 0x279   :  { %4242 = vmatmul.mubr.bf16.gmra.mrb[0].mxu1 %v8438_v56  ;;  %7723 = vmatprep.mubr.msk.bf16.mxu0 %vm3913_vm0, %v8443_v38 }
 0x27a   :  { %7737 = vmatprep.mubr.msk.bf16.mxu1 %vm3913_vm0, %v8443_v38  ;;  %v8444_v38 = vld [vmem:[#allocation8 + $0xa0] ss:$8 sps:$4 sm:$0xff]  }
 0x27b   :  { %v9517_v32 = vpop.f32.mrb[152].mxu0  ;;  %v9519_v34 = vpop.f32.mrb[152].mxu1 }
 0x27c   :  { %10793 = vst [vmem:[#allocation43_spill] sm:$0xff] %v9517_v32  ;;  %10794 = vst [vmem:[#allocation39_spill] sm:$0xff] %v9519_v34  ;;  %v9521_v3 = vpop.f32.mrb[153].mxu0  ;;  %v9523_v27 = vpop.f32.mrb[153].mxu1 }
 0x27d   :  { %10795 = vst [vmem:[#allocation40_spill] sm:$0xff] %v9521_v3  ;;  %10796 = vst [vmem:[#allocation36_spill] sm:$0xff] %v9523_v27  ;;  %v9525_v52 = vpop.f32.mrb[154].mxu0  ;;  %v9527_v15 = vpop.f32.mrb[154].mxu1 }
 0x27e   :  { %10797 = vst [vmem:[#allocation41_spill] sm:$0xff] %v9525_v52  ;;  %10798 = vst [vmem:[#allocation37_spill] sm:$0xff] %v9527_v15  ;;  %v9533_v63 = vpop.f32.mrb[155].mxu0  ;;  %v9535_v11 = vpop.f32.mrb[155].mxu1  ;;  %v8449_v52 = vld [vmem:[#allocation8 + $0xb4] ss:$8 sps:$4 sm:$0xff]  }
 0x27f   :  { %10799 = vst [vmem:[#allocation50_spill] sm:$0xff] %v9533_v63  ;;  %10800 = vst [vmem:[#allocation46_spill] sm:$0xff] %v9535_v11 }
 0x280   :  { %4079 = vmatmul.mubr.bf16.gmra.mrb[4].mxu0 %v8441_v42 }
 0x281   :  { %4252 = vmatmul.mubr.bf16.gmra.mrb[4].mxu1 %v8441_v42  ;;  %7724 = vmatprep.mubr.msk.bf16.mxu0 %vm3913_vm0, %v8446_v57 }
 0x282   :  { %7738 = vmatprep.mubr.msk.bf16.mxu1 %vm3913_vm0, %v8446_v57  ;;  %v8447_v57 = vld [vmem:[#allocation8 + $0xb0] ss:$8 sps:$4 sm:$0xff]  }
 0x283   :  { %v9543_v56 = vpop.f32.mrb[156].mxu0  ;;  %v9545_v32 = vpop.f32.mrb[156].mxu1 }
 0x284   :  { %10801 = vst [vmem:[#allocation51_spill] sm:$0xff] %v9543_v56  ;;  %10802 = vst [vmem:[#allocation47_spill] sm:$0xff] %v9545_v32  ;;  %v9547_v34 = vpop.f32.mrb[157].mxu0  ;;  %v9549_v15 = vpop.f32.mrb[157].mxu1 }
 0x285   :  { %10803 = vst [vmem:[#allocation48_spill] sm:$0xff] %v9547_v34  ;;  %10804 = vst [vmem:[#allocation44_spill] sm:$0xff] %v9549_v15  ;;  %v9551_v44 = vpop.f32.mrb[158].mxu0  ;;  %v9553_v3 = vpop.f32.mrb[158].mxu1 }
 0x286   :  { %10805 = vst [vmem:[#allocation49_spill] sm:$0xff] %v9551_v44  ;;  %10806 = vst [vmem:[#allocation45_spill] sm:$0xff] %v9553_v3  ;;  %v9559_v13 = vpop.f32.mrb[159].mxu0  ;;  %v9561_v27 = vpop.f32.mrb[159].mxu1  ;;  %v8452_v44 = vld [vmem:[#allocation8 + $0xc4] ss:$8 sps:$4 sm:$0xff]  }
 0x287   :  { %10807 = vst [vmem:[#allocation58_spill] sm:$0xff] %v9559_v13  ;;  %10808 = vst [vmem:[#allocation54_spill] sm:$0xff] %v9561_v27 }
 0x288   :  { %4089 = vmatmul.mubr.bf16.gmra.mrb[8].mxu0 %v8444_v38 }
 0x289   :  { %4262 = vmatmul.mubr.bf16.gmra.mrb[8].mxu1 %v8444_v38  ;;  %7725 = vmatprep.mubr.msk.bf16.mxu0 %vm3913_vm0, %v8449_v52 }
 0x28a   :  { %7739 = vmatprep.mubr.msk.bf16.mxu1 %vm3913_vm0, %v8449_v52  ;;  %v8450_v52 = vld [vmem:[#allocation8 + $0xc0] ss:$8 sps:$4 sm:$0xff]  }
 0x28b   :  { %v9569_v42 = vpop.f32.mrb[160].mxu0  ;;  %v9571_v56 = vpop.f32.mrb[160].mxu1 }
 0x28c   :  { %10809 = vst [vmem:[#allocation59_spill] sm:$0xff] %v9569_v42  ;;  %10810 = vst [vmem:[#allocation55_spill] sm:$0xff] %v9571_v56  ;;  %v9573_v32 = vpop.f32.mrb[161].mxu0  ;;  %v9575_v3 = vpop.f32.mrb[161].mxu1 }
 0x28d   :  { %10811 = vst [vmem:[#allocation56_spill] sm:$0xff] %v9573_v32  ;;  %10812 = vst [vmem:[#allocation52_spill] sm:$0xff] %v9575_v3  ;;  %v9577_v11 = vpop.f32.mrb[162].mxu0  ;;  %v9579_v34 = vpop.f32.mrb[162].mxu1 }
 0x28e   :  { %10813 = vst [vmem:[#allocation57_spill] sm:$0xff] %v9577_v11  ;;  %10814 = vst [vmem:[#allocation53_spill] sm:$0xff] %v9579_v34  ;;  %v9585_v63 = vpop.f32.mrb[163].mxu0  ;;  %v9587_v15 = vpop.f32.mrb[163].mxu1  ;;  %v8455_v11 = vld [vmem:[#allocation8 + $0xd4] ss:$8 sps:$4 sm:$0xff]  }
 0x28f   :  { %10815 = vst [vmem:[#allocation66_spill] sm:$0xff] %v9585_v63  ;;  %10816 = vst [vmem:[#allocation62_spill] sm:$0xff] %v9587_v15 }
 0x290   :  { %4099 = vmatmul.mubr.bf16.gmra.mrb[12].mxu0 %v8447_v57 }
 0x291   :  { %4272 = vmatmul.mubr.bf16.gmra.mrb[12].mxu1 %v8447_v57  ;;  %7726 = vmatprep.mubr.msk.bf16.mxu0 %vm3913_vm0, %v8452_v44 }
 0x292   :  { %7740 = vmatprep.mubr.msk.bf16.mxu1 %vm3913_vm0, %v8452_v44  ;;  %v8453_v44 = vld [vmem:[#allocation8 + $0xd0] ss:$8 sps:$4 sm:$0xff]  }
 0x293   :  { %v9595_v38 = vpop.f32.mrb[164].mxu0  ;;  %v9597_v42 = vpop.f32.mrb[164].mxu1 }
 0x294   :  { %10817 = vst [vmem:[#allocation67_spill] sm:$0xff] %v9595_v38  ;;  %10818 = vst [vmem:[#allocation63_spill] sm:$0xff] %v9597_v42  ;;  %v9599_v56 = vpop.f32.mrb[165].mxu0  ;;  %v9601_v34 = vpop.f32.mrb[165].mxu1 }
 0x295   :  { %10819 = vst [vmem:[#allocation64_spill] sm:$0xff] %v9599_v56  ;;  %10820 = vst [vmem:[#allocation60_spill] sm:$0xff] %v9601_v34  ;;  %v9603_v27 = vpop.f32.mrb[166].mxu0  ;;  %v9605_v32 = vpop.f32.mrb[166].mxu1 }
 0x296   :  { %10821 = vst [vmem:[#allocation65_spill] sm:$0xff] %v9603_v27  ;;  %10822 = vst [vmem:[#allocation61_spill] sm:$0xff] %v9605_v32  ;;  %v9611_v13 = vpop.f32.mrb[167].mxu0  ;;  %v9613_v3 = vpop.f32.mrb[167].mxu1  ;;  %v8458_v27 = vld [vmem:[#allocation8 + $0xe4] ss:$8 sps:$4 sm:$0xff]  }
 0x297   :  { %10823 = vst [vmem:[#allocation70_spill] sm:$0xff] %v9611_v13  ;;  %10824 = vst [vmem:[#allocation71_spill] sm:$0xff] %v9613_v3  ;;  %v8461_v13 = vld [vmem:[#allocation8 + $0xf4] ss:$8 sps:$4 sm:$0xff]  }
 0x298   :  { %4109 = vmatmul.mubr.bf16.gmra.mrb[16].mxu0 %v8450_v52 }
 0x299   :  { %4282 = vmatmul.mubr.bf16.gmra.mrb[16].mxu1 %v8450_v52  ;;  %7727 = vmatprep.mubr.msk.bf16.mxu0 %vm3913_vm0, %v8455_v11 }
 0x29a   :  { %7741 = vmatprep.mubr.msk.bf16.mxu1 %vm3913_vm0, %v8455_v11  ;;  %v8456_v11 = vld [vmem:[#allocation8 + $0xe0] ss:$8 sps:$4 sm:$0xff]  }
 0x29b   :  { %v9621_v57 = vpop.f32.mrb[168].mxu0  ;;  %v9623_v38 = vpop.f32.mrb[168].mxu1 }
 0x29c   :  { %10825 = vst [vmem:[#allocation68_spill] sm:$0xff] %v9621_v57  ;;  %10826 = vst [vmem:[#allocation72_spill] sm:$0xff] %v9623_v38  ;;  %v9625_v42 = vpop.f32.mrb[169].mxu0  ;;  %v9627_v32 = vpop.f32.mrb[169].mxu1 }
 0x29d   :  { %10827 = vst [vmem:[#allocation69_spill] sm:$0xff] %v9625_v42  ;;  %10828 = vst [vmem:[#allocation74_spill] sm:$0xff] %v9627_v32  ;;  %v9629_v15 = vpop.f32.mrb[170].mxu0  ;;  %v9631_v56 = vpop.f32.mrb[170].mxu1 }
 0x29e   :  { %10829 = vst [vmem:[#allocation73_spill] sm:$0xff] %v9629_v15  ;;  %10830 = vst [vmem:[#allocation77_spill] sm:$0xff] %v9631_v56  ;;  %v9637_v63 = vpop.f32.mrb[171].mxu0  ;;  %v9639_v34 = vpop.f32.mrb[171].mxu1 }
 0x29f   :  { %10831 = vst [vmem:[#allocation80_spill] sm:$0xff] %v9637_v63  ;;  %10832 = vst [vmem:[#allocation81_spill] sm:$0xff] %v9639_v34  ;;  %v10842_v63 = vpack.c.bf16 %v9133_v22, %v9121_v4 }
 0x2a0   :  { %4119 = vmatmul.mubr.bf16.gmra.mrb[20].mxu0 %v8453_v44 }
 0x2a1   :  { %4292 = vmatmul.mubr.bf16.gmra.mrb[20].mxu1 %v8453_v44  ;;  %7770 = vmatprep.mubr.msk.bf16.mxu0 %vm3913_vm0, %v8458_v27  ;;  %v10838_v44 = vld [vmem:[#allocation79_spill] sm:$0xff] }
 0x2a2   :  { %7784 = vmatprep.mubr.msk.bf16.mxu1 %vm3913_vm0, %v8458_v27  ;;  %v10841_v27 = vpack.c.bf16 %v9131_v20, %v9119_v23  ;;  %v10844_v23 = vpack.c.bf16 %v9125_v62, %v9117_v21  ;;  %v8464_v20 = vld [vmem:[#allocation8 + $0x104] ss:$8 sps:$4 sm:$0xff]  }
 0x2a3   :  { %v9647_v52 = vpop.f32.mrb[172].mxu0  ;;  %v9649_v57 = vpop.f32.mrb[172].mxu1 }
 0x2a4   :  { %10833 = vst [vmem:[#allocation82_spill] sm:$0xff] %v9647_v52  ;;  %v9651_v38 = vpop.f32.mrb[173].mxu0  ;;  %v9653_v56 = vpop.f32.mrb[173].mxu1  ;;  %v10839_v52 = vld [vmem:[#allocation76_spill] sm:$0xff] }
 0x2a5   :  { %v9655_v15 = vpop.f32.mrb[174].mxu0  ;;  %v9657_v3 = vpop.f32.mrb[174].mxu1 }
 0x2a6   :  { %10834 = vst [vmem:[#allocation83_spill] sm:$0xff] %v9655_v15  ;;  %v9663_v32 = vpop.f32.mrb[175].mxu0  ;;  %v9665_v34 = vpop.f32.mrb[175].mxu1  ;;  %v10840_v15 = vpack.c.bf16 %v10838_v44, %v10839_v52  ;;  %v10846_v52 = vpack.c.bf16 %v9183_v41, %v9159_v7  ;;  %v10847_v7 = vpack.c.bf16 %v9167_v35, %v9153_v37  ;;  %v10849_v41 = vpack.c.bf16 %v9225_v48, %v9207_v46  ;;  %v8467_v35 = vld [vmem:[#allocation8 + $0x114] ss:$8 sps:$4 sm:$0xff]  }
 0x2a7   :  { %v10851_v46 = vpack.c.bf16 %v9211_v55, %v9203_v16  ;;  %v10854_v16 = vpack.c.bf16 %v9277_v8, %v9259_v51  ;;  %v10859_v8 = vld [vmem:[#allocation17_spill] sm:$0xff]  ;;  %v10870_v48 = vld [vmem:[#allocation24_spill] sm:$0xff] }
 0x2a8   :  { %4503 = vmatmul.mubr.bf16.vlgmr.msra.gmra.mrb[24].mxu0 %v8456_v11  ;;  %v10871_v55 = vpack.c.bf16 %v9375_v43, %v10870_v48  ;;  %v10878_v48 = vld [vmem:[#allocation21_spill] sm:$0xff] }
 0x2a9   :  { %4676 = vmatmul.mubr.bf16.vlgmr.msra.gmra.mrb[24].mxu1 %v8456_v11  ;;  %4985 = vmatpush1.bf16.msra.mxu0 %v10837_v58  ;;  %v8459_v58 = vld [vmem:[#allocation8 + $0xf0] ss:$8 sps:$4 sm:$0xff]  }
 0x2aa   :  { %5158 = vmatpush1.bf16.msra.mxu1 %v10840_v15  ;;  %7771 = vmatprep.mubr.msk.bf16.mxu0 %vm3913_vm0, %v8461_v13 }
 0x2ab   :  { %7785 = vmatprep.mubr.msk.bf16.mxu1 %vm3913_vm0, %v8461_v13  ;;  %4986 = vmatprep.subr.bf16.mxu0 %v10841_v27  ;;  %v9685_v11 = vpop.f32.mrb[176].mxu0  ;;  %v9687_v12 = vpop.f32.mrb[176].mxu1  ;;  %v10843_v13 = vpack.c.bf16 %v9123_v50, %v9115_v39  ;;  %v10850_v27 = vpack.c.bf16 %v9227_v45, %v9209_v54  ;;  %v10852_v54 = vpack.c.bf16 %v9213_v1, %v9205_v17 }
 0x2ac   :  { %5159 = vmatprep.subr.bf16.mxu1 %v10842_v63  ;;  %v9689_v25 = vpop.f32.mrb[177].mxu0  ;;  %v9691_v15 = vpop.f32.mrb[177].mxu1  ;;  %v10845_v63 = vpack.c.bf16 %v9181_v40, %v9157_v29  ;;  %v10848_v40 = vpack.c.bf16 %v9169_v47, %v9155_v6  ;;  %v10855_v1 = vpack.c.bf16 %v9261_v61, %v9253_v28  ;;  %v8470_v61 = vld [vmem:[#allocation8 + $0x124] ss:$8 sps:$4 sm:$0xff]  }
 0x2ad   :  { %4987 = vmatpush1.bf16.msra.mxu0 %v10843_v13  ;;  %v9699_v22 = vpop.f32.mrb[178].mxu0  ;;  %v9701_v4 = vpop.f32.mrb[178].mxu1 }
 0x2ae   :  { %5160 = vmatpush1.bf16.msra.mxu1 %v10844_v23  ;;  %4988 = vmatprep.subr.bf16.mxu0 %v10845_v63  ;;  %v9713_v39 = vpop.f32.mrb[179].mxu0  ;;  %v9715_v21 = vpop.f32.mrb[179].mxu1  ;;  %v8462_v23 = vld [vmem:[#allocation8 + $0x100] ss:$8 sps:$4 sm:$0xff]  }
 0x2af   :  { %5161 = vmatprep.subr.bf16.mxu1 %v10846_v52 }
 0x2b0   :  { %4513 = vmatmul.mubr.bf16.gmra.mrb[28].mxu0 %v8459_v58 }
 0x2b1   :  { %4686 = vmatmul.mubr.bf16.gmra.mrb[28].mxu1 %v8459_v58  ;;  %7772 = vmatprep.mubr.msk.bf16.mxu0 %vm3913_vm0, %v8464_v20 }
 0x2b2   :  { %7786 = vmatprep.mubr.msk.bf16.mxu1 %vm3913_vm0, %v8464_v20  ;;  %4989 = vmatpush1.bf16.msra.mxu0 %v10847_v7  ;;  %v10853_v7 = vpack.c.bf16 %v9275_v14, %v9257_v24  ;;  %v10856_v24 = vld [vmem:[#allocation15_spill] sm:$0xff]  ;;  %v10858_v14 = vld [vmem:[#allocation26_spill] sm:$0xff] }
 0x2b3   :  { %5162 = vmatpush1.bf16.msra.mxu1 %v10848_v40  ;;  %4990 = vmatprep.subr.bf16.mxu0 %v10849_v41  ;;  %v9735_v58 = vpop.f32.mrb[180].mxu0  ;;  %v9737_v13 = vpop.f32.mrb[180].mxu1  ;;  %v10857_v51 = vpack.c.bf16 %v9263_v26, %v10856_v24  ;;  %v10860_v40 = vpack.c.bf16 %v10858_v14, %v10859_v8  ;;  %v10861_v41 = vld [vmem:[#allocation22_spill] sm:$0xff]  ;;  %v10865_v24 = vld [vmem:[#allocation19_spill] sm:$0xff]  ;;  %v10868_v8 = vld [vmem:[#allocation16_spill] sm:$0xff] }
 0x2b4   :  { %5163 = vmatprep.subr.bf16.mxu1 %v10850_v27  ;;  %v9739_v20 = vpop.f32.mrb[181].mxu0  ;;  %v9741_v37 = vpop.f32.mrb[181].mxu1  ;;  %v10862_v27 = vld [vmem:[#allocation13_spill] sm:$0xff]  ;;  %v10867_v14 = vld [vmem:[#allocation14_spill] sm:$0xff] }
 0x2b5   :  { %v9743_v6 = vpop.f32.mrb[182].mxu0  ;;  %v9745_v47 = vpop.f32.mrb[182].mxu1 }
 0x2b6   :  { %4991 = vmatpush1.bf16.msra.mxu0 %v10851_v46  ;;  %v9757_v63 = vpop.f32.mrb[183].mxu0  ;;  %v9759_v52 = vpop.f32.mrb[183].mxu1  ;;  %v10863_v46 = vpack.c.bf16 %v10861_v41, %v10862_v27  ;;  %v10876_v27 = vld [vmem:[#allocation27_spill] sm:$0xff] }
 0x2b7   :  { %5164 = vmatpush1.bf16.msra.mxu1 %v10852_v54  ;;  %4992 = vmatprep.subr.bf16.mxu0 %v10853_v7 }
 0x2b8   :  { %5165 = vmatprep.subr.bf16.mxu1 %v10854_v16  ;;  %4523 = vmatmul.mubr.bf16.gmra.mrb[32].mxu0 %v8462_v23 }
 0x2b9   :  { %4696 = vmatmul.mubr.bf16.gmra.mrb[32].mxu1 %v8462_v23  ;;  %7773 = vmatprep.mubr.msk.bf16.mxu0 %vm3913_vm0, %v8467_v35 }
 0x2ba   :  { %7787 = vmatprep.mubr.msk.bf16.mxu1 %vm3913_vm0, %v8467_v35  ;;  %4993 = vmatpush1.bf16.msra.mxu0 %v10855_v1  ;;  %v8465_v35 = vld [vmem:[#allocation8 + $0x110] ss:$8 sps:$4 sm:$0xff]   ;;  %v10864_v1 = vld [vmem:[#allocation18_spill] sm:$0xff] }
 0x2bb   :  { %5166 = vmatpush1.bf16.msra.mxu1 %v10857_v51  ;;  %4994 = vmatprep.subr.bf16.mxu0 %v10860_v40  ;;  %v9785_v23 = vpop.f32.mrb[184].mxu0  ;;  %v9787_v54 = vpop.f32.mrb[184].mxu1  ;;  %v10866_v51 = vpack.c.bf16 %v10864_v1, %v10865_v24  ;;  %v10869_v40 = vpack.c.bf16 %v10867_v14, %v10868_v8  ;;  %v10872_v1 = vld [vmem:[#allocation34_spill] sm:$0xff]  ;;  %v10873_v24 = vld [vmem:[#allocation20_spill] sm:$0xff] }
 0x2bc   :  { %5167 = vmatprep.subr.bf16.mxu1 %v10863_v46  ;;  %v9789_v7 = vpop.f32.mrb[185].mxu0  ;;  %v9791_v28 = vpop.f32.mrb[185].mxu1  ;;  %v10906_v14 = vld [vmem:[#allocation40_spill] sm:$0xff] }
 0x2bd   :  { %v9793_v26 = vpop.f32.mrb[186].mxu0  ;;  %v9795_v16 = vpop.f32.mrb[186].mxu1 }
 0x2be   :  { %4995 = vmatpush1.bf16.msra.mxu0 %v10866_v51  ;;  %v9807_v46 = vpop.f32.mrb[187].mxu0  ;;  %v9809_v45 = vpop.f32.mrb[187].mxu1  ;;  %v10874_v51 = vpack.c.bf16 %v10872_v1, %v10873_v24  ;;  %v10881_v24 = vpack.c.bf16 %v9425_v5, %v9407_v60  ;;  %v10883_v60 = vpack.c.bf16 %v9411_v31, %v9403_v2  ;;  %v10886_v2 = vpack.c.bf16 %v9477_v19, %v9459_v18  ;;  %v10891_v19 = vld [vmem:[#allocation32_spill] sm:$0xff] }
 0x2bf   :  { %5168 = vmatpush1.bf16.msra.mxu1 %v10869_v40  ;;  %4996 = vmatprep.subr.bf16.mxu0 %v10871_v55  ;;  %v10875_v40 = vld [vmem:[#allocation25_spill] sm:$0xff]  ;;  %v10879_v55 = vld [vmem:[#allocation23_spill] sm:$0xff] }
 0x2c0   :  { %5169 = vmatprep.subr.bf16.mxu1 %v10874_v51  ;;  %4533 = vmatmul.mubr.bf16.gmra.mrb[36].mxu0 %v8465_v35  ;;  %v10877_v43 = vpack.c.bf16 %v10875_v40, %v10876_v27  ;;  %v10880_v1 = vpack.c.bf16 %v10878_v48, %v10879_v55  ;;  %v10882_v51 = vpack.c.bf16 %v9427_v59, %v9409_v53  ;;  %v8473_v40 = vld [vmem:[#allocation8 + $0x134] ss:$8 sps:$4 sm:$0xff]  }
 0x2c1   :  { %4706 = vmatmul.mubr.bf16.gmra.mrb[36].mxu1 %v8465_v35  ;;  %7774 = vmatprep.mubr.msk.bf16.mxu0 %vm3913_vm0, %v8470_v61  ;;  %v10884_v59 = vpack.c.bf16 %v9413_v30, %v9405_v36  ;;  %v10887_v30 = vpack.c.bf16 %v9461_v10, %v9453_v33  ;;  %v8476_v10 = vld [vmem:[#allocation8 + $0x144] ss:$8 sps:$4 sm:$0xff]  }
 0x2c2   :  { %7788 = vmatprep.mubr.msk.bf16.mxu1 %vm3913_vm0, %v8470_v61  ;;  %4997 = vmatpush1.bf16.msra.mxu0 %v10877_v43  ;;  %v8468_v61 = vld [vmem:[#allocation8 + $0x120] ss:$8 sps:$4 sm:$0xff]  }
 0x2c3   :  { %5170 = vmatpush1.bf16.msra.mxu1 %v10880_v1  ;;  %4998 = vmatprep.subr.bf16.mxu0 %v10881_v24  ;;  %v9835_v35 = vpop.f32.mrb[188].mxu0  ;;  %v9837_v41 = vpop.f32.mrb[188].mxu1  ;;  %v10885_v24 = vpack.c.bf16 %v9475_v49, %v9457_v9  ;;  %v10888_v9 = vld [vmem:[#allocation30_spill] sm:$0xff] }
 0x2c4   :  { %5171 = vmatprep.subr.bf16.mxu1 %v10882_v51  ;;  %v9839_v8 = vpop.f32.mrb[189].mxu0  ;;  %v9841_v27 = vpop.f32.mrb[189].mxu1  ;;  %v10889_v18 = vpack.c.bf16 %v9463_v0, %v10888_v9  ;;  %v10890_v49 = vld [vmem:[#allocation42_spill] sm:$0xff]  ;;  %v10899_v9 = vld [vmem:[#allocation33_spill] sm:$0xff] }
 0x2c5   :  { %v9843_v43 = vpop.f32.mrb[190].mxu0  ;;  %v9845_v48 = vpop.f32.mrb[190].mxu1  ;;  %v10892_v51 = vpack.c.bf16 %v10890_v49, %v10891_v19  ;;  %v10902_v19 = vld [vmem:[#allocation29_spill] sm:$0xff]  ;;  %v10905_v36 = vld [vmem:[#allocation50_spill] sm:$0xff] }
 0x2c6   :  { %4999 = vmatpush1.bf16.msra.mxu0 %v10883_v60  ;;  %v9857_v55 = vpop.f32.mrb[191].mxu0  ;;  %v9859_v1 = vpop.f32.mrb[191].mxu1  ;;  %v10893_v60 = vld [vmem:[#allocation38_spill] sm:$0xff]  ;;  %v10907_v17 = vpack.c.bf16 %v10905_v36, %v10906_v14  ;;  %v10915_v36 = vld [vmem:[#allocation39_spill] sm:$0xff] }
 0x2c7   :  { %5172 = vmatpush1.bf16.msra.mxu1 %v10884_v59  ;;  %5000 = vmatprep.subr.bf16.mxu0 %v10885_v24  ;;  %v10894_v59 = vld [vmem:[#allocation28_spill] sm:$0xff] }
 0x2c8   :  { %5173 = vmatprep.subr.bf16.mxu1 %v10886_v2  ;;  %4543 = vmatmul.mubr.bf16.gmra.mrb[40].mxu0 %v8468_v61  ;;  %v10895_v24 = vpack.c.bf16 %v10893_v60, %v10894_v59 }
 0x2c9   :  { %4716 = vmatmul.mubr.bf16.gmra.mrb[40].mxu1 %v8468_v61  ;;  %7775 = vmatprep.mubr.msk.bf16.mxu0 %vm3913_vm0, %v8473_v40 }
 0x2ca   :  { %7789 = vmatprep.mubr.msk.bf16.mxu1 %vm3913_vm0, %v8473_v40  ;;  %5001 = vmatpush1.bf16.msra.mxu0 %v10887_v30  ;;  %v8471_v40 = vld [vmem:[#allocation8 + $0x130] ss:$8 sps:$4 sm:$0xff]  }
 0x2cb   :  { %5174 = vmatpush1.bf16.msra.mxu1 %v10889_v18  ;;  %5002 = vmatprep.subr.bf16.mxu0 %v10892_v51  ;;  %v9885_v61 = vpop.f32.mrb[192].mxu0  ;;  %v9887_v2 = vpop.f32.mrb[192].mxu1  ;;  %v10900_v18 = vld [vmem:[#allocation35_spill] sm:$0xff] }
 0x2cc   :  { %5175 = vmatprep.subr.bf16.mxu1 %v10895_v24  ;;  %10896 = vst [vmem:[#allocation78_spill] sm:$0xff] %v9885_v61  ;;  %10897 = vst [vmem:[#allocation75_spill] sm:$0xff] %v9887_v2  ;;  %v9889_v53 = vpop.f32.mrb[193].mxu0  ;;  %v9891_v33 = vpop.f32.mrb[193].mxu1  ;;  %v10901_v49 = vpack.c.bf16 %v10899_v9, %v10900_v18  ;;  %v10903_v51 = vld [vmem:[#allocation31_spill] sm:$0xff]  ;;  %v10908_v9 = vld [vmem:[#allocation46_spill] sm:$0xff] }
 0x2cd   :  { %v9893_v0 = vpop.f32.mrb[194].mxu0  ;;  %v9895_v30 = vpop.f32.mrb[194].mxu1  ;;  %v10904_v60 = vpack.c.bf16 %v10902_v19, %v10903_v51  ;;  %v10909_v18 = vld [vmem:[#allocation36_spill] sm:$0xff]  ;;  %v10912_v24 = vld [vmem:[#allocation43_spill] sm:$0xff]  ;;  %v10920_v19 = vld [vmem:[#allocation54_spill] sm:$0xff] }
 0x2ce   :  { %10898 = vst [vmem:[#allocation79_spill] sm:$0xff] %v9895_v30  ;;  %5003 = vmatpush1.bf16.msra.mxu0 %v10901_v49  ;;  %v9907_v5 = vpop.f32.mrb[195].mxu0  ;;  %v9909_v31 = vpop.f32.mrb[195].mxu1  ;;  %v10910_v49 = vpack.c.bf16 %v10908_v9, %v10909_v18  ;;  %v10917_v18 = vld [vmem:[#allocation58_spill] sm:$0xff]  ;;  %v10921_v51 = vld [vmem:[#allocation44_spill] sm:$0xff] }
 0x2cf   :  { %5176 = vmatpush1.bf16.msra.mxu1 %v10904_v60  ;;  %5004 = vmatprep.subr.bf16.mxu0 %v10907_v17  ;;  %v10911_v60 = vld [vmem:[#allocation41_spill] sm:$0xff]  ;;  %v10922_v62 = vpack.c.bf16 %v10920_v19, %v10921_v51  ;;  %v10937_v2 = vld [vmem:[#allocation66_spill] sm:$0xff]  ;;  %v10938_v30 = vld [vmem:[#allocation56_spill] sm:$0xff] }
 0x2d0   :  { %5177 = vmatprep.subr.bf16.mxu1 %v10910_v49  ;;  %4553 = vmatmul.mubr.bf16.gmra.mrb[44].mxu0 %v8471_v40  ;;  %v10913_v14 = vpack.c.bf16 %v10911_v60, %v10912_v24  ;;  %v10914_v17 = vld [vmem:[#allocation37_spill] sm:$0xff]  ;;  %v10918_v49 = vld [vmem:[#allocation48_spill] sm:$0xff]  ;;  %v10939_v61 = vpack.c.bf16 %v10937_v2, %v10938_v30  ;;  %v10947_v30 = vld [vmem:[#allocation55_spill] sm:$0xff] }
 0x2d1   :  { %4726 = vmatmul.mubr.bf16.gmra.mrb[44].mxu1 %v8471_v40  ;;  %7776 = vmatprep.mubr.msk.bf16.mxu0 %vm3913_vm0, %v8476_v10  ;;  %v10916_v9 = vpack.c.bf16 %v10914_v17, %v10915_v36  ;;  %v10919_v59 = vpack.c.bf16 %v10917_v18, %v10918_v49  ;;  %v8479_v60 = vld [vmem:[#allocation8 + $0x154] ss:$8 sps:$4 sm:$0xff]   ;;  %v10929_v36 = vld [vmem:[#allocation49_spill] sm:$0xff] }
 0x2d2   :  { %7790 = vmatprep.mubr.msk.bf16.mxu1 %vm3913_vm0, %v8476_v10  ;;  %5005 = vmatpush1.bf16.msra.mxu0 %v10913_v14  ;;  %v8474_v10 = vld [vmem:[#allocation8 + $0x140] ss:$8 sps:$4 sm:$0xff]   ;;  %v10944_v49 = vld [vmem:[#allocation59_spill] sm:$0xff] }
 0x2d3   :  { %5178 = vmatpush1.bf16.msra.mxu1 %v10916_v9  ;;  %5006 = vmatprep.subr.bf16.mxu0 %v10919_v59  ;;  %v9935_v40 = vpop.f32.mrb[196].mxu0  ;;  %v9937_v50 = vpop.f32.mrb[196].mxu1  ;;  %v10930_v59 = vld [vmem:[#allocation51_spill] sm:$0xff]  ;;  %v10932_v19 = vld [vmem:[#allocation45_spill] sm:$0xff] }
 0x2d4   :  { %5179 = vmatprep.subr.bf16.mxu1 %v10922_v62  ;;  %10923 = vst [vmem:[#allocation76_spill] sm:$0xff] %v9935_v40  ;;  %10924 = vst [vmem:[#allocation15_spill] sm:$0xff] %v9937_v50  ;;  %v9939_v29 = vpop.f32.mrb[197].mxu0  ;;  %v9941_v24 = vpop.f32.mrb[197].mxu1  ;;  %v10931_v9 = vpack.c.bf16 %v10929_v36, %v10930_v59  ;;  %v10933_v62 = vld [vmem:[#allocation47_spill] sm:$0xff]  ;;  %v10940_v36 = vld [vmem:[#allocation62_spill] sm:$0xff] }
 0x2d5   :  { %10925 = vst [vmem:[#allocation26_spill] sm:$0xff] %v9939_v29  ;;  %10926 = vst [vmem:[#allocation17_spill] sm:$0xff] %v9941_v24  ;;  %v9943_v14 = vpop.f32.mrb[198].mxu0  ;;  %v9945_v17 = vpop.f32.mrb[198].mxu1  ;;  %v10934_v51 = vpack.c.bf16 %v10932_v19, %v10933_v62  ;;  %v10941_v59 = vld [vmem:[#allocation52_spill] sm:$0xff]  ;;  %v10952_v19 = vld [vmem:[#allocation71_spill] sm:$0xff] }
 0x2d6   :  { %10927 = vst [vmem:[#allocation22_spill] sm:$0xff] %v9943_v14  ;;  %10928 = vst [vmem:[#allocation13_spill] sm:$0xff] %v9945_v17  ;;  %5007 = vmatpush1.bf16.msra.mxu0 %v10931_v9  ;;  %v9957_v44 = vpop.f32.mrb[199].mxu0  ;;  %v9959_v42 = vpop.f32.mrb[199].mxu1  ;;  %v10942_v9 = vpack.c.bf16 %v10940_v36, %v10941_v59  ;;  %v10949_v59 = vld [vmem:[#allocation70_spill] sm:$0xff]  ;;  %v10953_v62 = vld [vmem:[#allocation60_spill] sm:$0xff] }
 0x2d7   :  { %5180 = vmatpush1.bf16.msra.mxu1 %v10934_v51  ;;  %10935 = vst [vmem:[#allocation18_spill] sm:$0xff] %v9957_v44  ;;  %10936 = vst [vmem:[#allocation19_spill] sm:$0xff] %v9959_v42  ;;  %5008 = vmatprep.subr.bf16.mxu0 %v10939_v61  ;;  %v10943_v51 = vld [vmem:[#allocation57_spill] sm:$0xff]  ;;  %v10954_v50 = vpack.c.bf16 %v10952_v19, %v10953_v62  ;;  %v10968_v42 = vld [vmem:[#allocation80_spill] sm:$0xff] }
 0x2d8   :  { %5181 = vmatprep.subr.bf16.mxu1 %v10942_v9  ;;  %4563 = vmatmul.mubr.bf16.gmra.mrb[48].mxu0 %v8474_v10  ;;  %v10945_v2 = vpack.c.bf16 %v10943_v51, %v10944_v49  ;;  %v10946_v61 = vld [vmem:[#allocation53_spill] sm:$0xff]  ;;  %v10950_v9 = vld [vmem:[#allocation64_spill] sm:$0xff] }
 0x2d9   :  { %4736 = vmatmul.mubr.bf16.gmra.mrb[48].mxu1 %v8474_v10  ;;  %7777 = vmatprep.mubr.msk.bf16.mxu0 %vm3913_vm0, %v8479_v60  ;;  %v10948_v36 = vpack.c.bf16 %v10946_v61, %v10947_v30  ;;  %v10951_v18 = vpack.c.bf16 %v10949_v59, %v10950_v9  ;;  %v8482_v51 = vld [vmem:[#allocation8 + $0x164] ss:$8 sps:$4 sm:$0xff]  }
 0x2da   :  { %7791 = vmatprep.mubr.msk.bf16.mxu1 %vm3913_vm0, %v8479_v60  ;;  %5009 = vmatpush1.bf16.msra.mxu0 %v10945_v2  ;;  %v8477_v60 = vld [vmem:[#allocation8 + $0x150] ss:$8 sps:$4 sm:$0xff]   ;;  %v10961_v30 = vld [vmem:[#allocation65_spill] sm:$0xff] }
 0x2db   :  { %5182 = vmatpush1.bf16.msra.mxu1 %v10948_v36  ;;  %5010 = vmatprep.subr.bf16.mxu0 %v10951_v18  ;;  %v9985_v10 = vpop.f32.mrb[200].mxu0  ;;  %v9987_v17 = vpop.f32.mrb[200].mxu1  ;;  %v10962_v18 = vld [vmem:[#allocation67_spill] sm:$0xff]  ;;  %v10964_v19 = vld [vmem:[#allocation61_spill] sm:$0xff] }
 0x2dc   :  { %5183 = vmatprep.subr.bf16.mxu1 %v10954_v50  ;;  %10955 = vst [vmem:[#allocation14_spill] sm:$0xff] %v9985_v10  ;;  %10956 = vst [vmem:[#allocation16_spill] sm:$0xff] %v9987_v17  ;;  %v9989_v40 = vpop.f32.mrb[201].mxu0  ;;  %v9991_v49 = vpop.f32.mrb[201].mxu1  ;;  %v10963_v36 = vpack.c.bf16 %v10961_v30, %v10962_v18  ;;  %v10965_v50 = vld [vmem:[#allocation63_spill] sm:$0xff]  ;;  %v10969_v29 = vld [vmem:[#allocation69_spill] sm:$0xff] }
 0x2dd   :  { %10957 = vst [vmem:[#allocation24_spill] sm:$0xff] %v9989_v40  ;;  %10958 = vst [vmem:[#allocation34_spill] sm:$0xff] %v9991_v49  ;;  %v9993_v2 = vpop.f32.mrb[202].mxu0  ;;  %v9995_v61 = vpop.f32.mrb[202].mxu1  ;;  %v10966_v62 = vpack.c.bf16 %v10964_v19, %v10965_v50  ;;  %v10970_v44 = vpack.c.bf16 %v10968_v42, %v10969_v29  ;;  %v10971_v30 = vld [vmem:[#allocation81_spill] sm:$0xff]  ;;  %v10972_v18 = vld [vmem:[#allocation74_spill] sm:$0xff] }
 0x2de   :  { %10959 = vst [vmem:[#allocation20_spill] sm:$0xff] %v9993_v2  ;;  %10960 = vst [vmem:[#allocation25_spill] sm:$0xff] %v9995_v61  ;;  %5011 = vmatpush1.bf16.msra.mxu0 %v10963_v36  ;;  %v10007_v14 = vpop.f32.mrb[203].mxu0  ;;  %v10009_v24 = vpop.f32.mrb[203].mxu1  ;;  %v10973_v36 = vpack.c.bf16 %v10971_v30, %v10972_v18  ;;  %v8485_v18 = vld [vmem:[#allocation8 + $0x174] ss:$8 sps:$4 sm:$0xff]  }
 0x2df   :  { %5184 = vmatpush1.bf16.msra.mxu1 %v10966_v62  ;;  %10967 = vst [vmem:[#allocation27_spill] sm:$0xff] %v10009_v24  ;;  %5498 = vmatprep.subr.bf16.mxu0 %v10970_v44  ;;  %v8480_v44 = vld [vmem:[#allocation8 + $0x160] ss:$8 sps:$4 sm:$0xff]   ;;  %v11018_v24 = vld [vmem:[#allocation72_spill] sm:$0xff] }
 0x2e0   :  { %5671 = vmatprep.subr.bf16.mxu1 %v10973_v36  ;;  %4573 = vmatmul.mubr.bf16.gmra.mrb[52].mxu0 %v8477_v60 }
 0x2e1   :  { %4746 = vmatmul.mubr.bf16.gmra.mrb[52].mxu1 %v8477_v60  ;;  %7778 = vmatprep.mubr.msk.bf16.mxu0 %vm3913_vm0, %v8482_v51 }
 0x2e2   :  { %7792 = vmatprep.mubr.msk.bf16.mxu1 %vm3913_vm0, %v8482_v51  ;;  %v8483_v51 = vld [vmem:[#allocation8 + $0x170] ss:$8 sps:$4 sm:$0xff]  }
 0x2e3   :  { %v10023_v62 = vpop.f32.mrb[204].mxu0  ;;  %v10025_v42 = vpop.f32.mrb[204].mxu1 }
 0x2e4   :  { %10974 = vst [vmem:[#allocation21_spill] sm:$0xff] %v10023_v62  ;;  %10975 = vst [vmem:[#allocation23_spill] sm:$0xff] %v10025_v42  ;;  %v10027_v29 = vpop.f32.mrb[205].mxu0  ;;  %v10029_v30 = vpop.f32.mrb[205].mxu1 }
 0x2e5   :  { %10976 = vst [vmem:[#allocation30_spill] sm:$0xff] %v10027_v29  ;;  %10977 = vst [vmem:[#allocation42_spill] sm:$0xff] %v10029_v30  ;;  %v10031_v36 = vpop.f32.mrb[206].mxu0  ;;  %v10033_v9 = vpop.f32.mrb[206].mxu1 }
 0x2e6   :  { %10978 = vst [vmem:[#allocation32_spill] sm:$0xff] %v10031_v36  ;;  %10979 = vst [vmem:[#allocation38_spill] sm:$0xff] %v10033_v9  ;;  %v10039_v59 = vpop.f32.mrb[207].mxu0  ;;  %v10041_v50 = vpop.f32.mrb[207].mxu1  ;;  %v8488_v36 = vld [vmem:[#allocation8 + $0x184] ss:$8 sps:$4 sm:$0xff]  }
 0x2e7   :  { %10980 = vst [vmem:[#allocation28_spill] sm:$0xff] %v10039_v59  ;;  %10981 = vst [vmem:[#allocation33_spill] sm:$0xff] %v10041_v50 }
 0x2e8   :  { %4583 = vmatmul.mubr.bf16.gmra.mrb[56].mxu0 %v8480_v44 }
 0x2e9   :  { %4756 = vmatmul.mubr.bf16.gmra.mrb[56].mxu1 %v8480_v44  ;;  %7779 = vmatprep.mubr.msk.bf16.mxu0 %vm3913_vm0, %v8485_v18 }
 0x2ea   :  { %7793 = vmatprep.mubr.msk.bf16.mxu1 %vm3913_vm0, %v8485_v18  ;;  %v8486_v18 = vld [vmem:[#allocation8 + $0x180] ss:$8 sps:$4 sm:$0xff]  }
 0x2eb   :  { %v10049_v60 = vpop.f32.mrb[208].mxu0  ;;  %v10051_v62 = vpop.f32.mrb[208].mxu1 }
 0x2ec   :  { %10982 = vst [vmem:[#allocation35_spill] sm:$0xff] %v10049_v60  ;;  %10983 = vst [vmem:[#allocation29_spill] sm:$0xff] %v10051_v62  ;;  %v10053_v42 = vpop.f32.mrb[209].mxu0  ;;  %v10055_v9 = vpop.f32.mrb[209].mxu1 }
 0x2ed   :  { %10984 = vst [vmem:[#allocation31_spill] sm:$0xff] %v10053_v42  ;;  %10985 = vst [vmem:[#allocation50_spill] sm:$0xff] %v10055_v9  ;;  %v10057_v19 = vpop.f32.mrb[210].mxu0  ;;  %v10059_v29 = vpop.f32.mrb[210].mxu1 }
 0x2ee   :  { %10986 = vst [vmem:[#allocation40_spill] sm:$0xff] %v10057_v19  ;;  %10987 = vst [vmem:[#allocation46_spill] sm:$0xff] %v10059_v29  ;;  %v10065_v17 = vpop.f32.mrb[211].mxu0  ;;  %v10067_v30 = vpop.f32.mrb[211].mxu1  ;;  %v8491_v19 = vld [vmem:[#allocation8 + $0x194] ss:$8 sps:$4 sm:$0xff]  }
 0x2ef   :  { %10988 = vst [vmem:[#allocation36_spill] sm:$0xff] %v10065_v17  ;;  %10989 = vst [vmem:[#allocation41_spill] sm:$0xff] %v10067_v30 }
 0x2f0   :  { %4593 = vmatmul.mubr.bf16.gmra.mrb[60].mxu0 %v8483_v51 }
 0x2f1   :  { %4766 = vmatmul.mubr.bf16.gmra.mrb[60].mxu1 %v8483_v51  ;;  %7780 = vmatprep.mubr.msk.bf16.mxu0 %vm3913_vm0, %v8488_v36 }
 0x2f2   :  { %7794 = vmatprep.mubr.msk.bf16.mxu1 %vm3913_vm0, %v8488_v36  ;;  %v8489_v36 = vld [vmem:[#allocation8 + $0x190] ss:$8 sps:$4 sm:$0xff]  }
 0x2f3   :  { %v10075_v44 = vpop.f32.mrb[212].mxu0  ;;  %v10077_v60 = vpop.f32.mrb[212].mxu1 }
 0x2f4   :  { %10990 = vst [vmem:[#allocation43_spill] sm:$0xff] %v10075_v44  ;;  %10991 = vst [vmem:[#allocation37_spill] sm:$0xff] %v10077_v60  ;;  %v10079_v62 = vpop.f32.mrb[213].mxu0  ;;  %v10081_v29 = vpop.f32.mrb[213].mxu1 }
 0x2f5   :  { %10992 = vst [vmem:[#allocation39_spill] sm:$0xff] %v10079_v62  ;;  %10993 = vst [vmem:[#allocation58_spill] sm:$0xff] %v10081_v29  ;;  %v10083_v50 = vpop.f32.mrb[214].mxu0  ;;  %v10085_v42 = vpop.f32.mrb[214].mxu1 }
 0x2f6   :  { %10994 = vst [vmem:[#allocation48_spill] sm:$0xff] %v10083_v50  ;;  %10995 = vst [vmem:[#allocation54_spill] sm:$0xff] %v10085_v42  ;;  %v10091_v59 = vpop.f32.mrb[215].mxu0  ;;  %v10093_v9 = vpop.f32.mrb[215].mxu1  ;;  %v8494_v50 = vld [vmem:[#allocation8 + $0x1a4] ss:$8 sps:$4 sm:$0xff]  }
 0x2f7   :  { %10996 = vst [vmem:[#allocation44_spill] sm:$0xff] %v10091_v59  ;;  %10997 = vst [vmem:[#allocation49_spill] sm:$0xff] %v10093_v9 }
 0x2f8   :  { %4603 = vmatmul.mubr.bf16.gmra.mrb[64].mxu0 %v8486_v18 }
 0x2f9   :  { %4776 = vmatmul.mubr.bf16.gmra.mrb[64].mxu1 %v8486_v18  ;;  %7781 = vmatprep.mubr.msk.bf16.mxu0 %vm3913_vm0, %v8491_v19 }
 0x2fa   :  { %7795 = vmatprep.mubr.msk.bf16.mxu1 %vm3913_vm0, %v8491_v19  ;;  %v8492_v19 = vld [vmem:[#allocation8 + $0x1a0] ss:$8 sps:$4 sm:$0xff]  }
 0x2fb   :  { %v10101_v51 = vpop.f32.mrb[216].mxu0  ;;  %v10103_v44 = vpop.f32.mrb[216].mxu1 }
 0x2fc   :  { %10998 = vst [vmem:[#allocation51_spill] sm:$0xff] %v10101_v51  ;;  %10999 = vst [vmem:[#allocation45_spill] sm:$0xff] %v10103_v44  ;;  %v10105_v60 = vpop.f32.mrb[217].mxu0  ;;  %v10107_v42 = vpop.f32.mrb[217].mxu1 }
 0x2fd   :  { %11000 = vst [vmem:[#allocation47_spill] sm:$0xff] %v10105_v60  ;;  %11001 = vst [vmem:[#allocation66_spill] sm:$0xff] %v10107_v42  ;;  %v10109_v30 = vpop.f32.mrb[218].mxu0  ;;  %v10111_v62 = vpop.f32.mrb[218].mxu1 }
 0x2fe   :  { %11002 = vst [vmem:[#allocation56_spill] sm:$0xff] %v10109_v30  ;;  %11003 = vst [vmem:[#allocation62_spill] sm:$0xff] %v10111_v62  ;;  %v10117_v17 = vpop.f32.mrb[219].mxu0  ;;  %v10119_v29 = vpop.f32.mrb[219].mxu1  ;;  %v8497_v30 = vld [vmem:[#allocation8 + $0x1b4] ss:$8 sps:$4 sm:$0xff]  }
 0x2ff   :  { %11004 = vst [vmem:[#allocation52_spill] sm:$0xff] %v10117_v17  ;;  %11005 = vst [vmem:[#allocation57_spill] sm:$0xff] %v10119_v29 }
 0x300   :  { %4613 = vmatmul.mubr.bf16.gmra.mrb[68].mxu0 %v8489_v36 }
 0x301   :  { %4786 = vmatmul.mubr.bf16.gmra.mrb[68].mxu1 %v8489_v36  ;;  %7782 = vmatprep.mubr.msk.bf16.mxu0 %vm3913_vm0, %v8494_v50 }
 0x302   :  { %7796 = vmatprep.mubr.msk.bf16.mxu1 %vm3913_vm0, %v8494_v50 }
 0x303   :  { %v10127_v18 = vpop.f32.mrb[220].mxu0  ;;  %v10129_v51 = vpop.f32.mrb[220].mxu1 }
 0x304   :  { %11006 = vst [vmem:[#allocation59_spill] sm:$0xff] %v10127_v18  ;;  %11007 = vst [vmem:[#allocation53_spill] sm:$0xff] %v10129_v51  ;;  %v10131_v44 = vpop.f32.mrb[221].mxu0  ;;  %v10133_v62 = vpop.f32.mrb[221].mxu1 }
 0x305   :  { %11008 = vst [vmem:[#allocation55_spill] sm:$0xff] %v10131_v44  ;;  %11009 = vst [vmem:[#allocation70_spill] sm:$0xff] %v10133_v62  ;;  %v10135_v9 = vpop.f32.mrb[222].mxu0  ;;  %v10137_v60 = vpop.f32.mrb[222].mxu1 }
 0x306   :  { %11010 = vst [vmem:[#allocation64_spill] sm:$0xff] %v10135_v9  ;;  %11011 = vst [vmem:[#allocation71_spill] sm:$0xff] %v10137_v60  ;;  %v10143_v59 = vpop.f32.mrb[223].mxu0  ;;  %v10145_v42 = vpop.f32.mrb[223].mxu1  ;;  %v8495_v9 = vld [vmem:[#allocation8 + $0x1b0] ss:$8 sps:$4 sm:$0xff]  }
 0x307   :  { %11012 = vst [vmem:[#allocation60_spill] sm:$0xff] %v10143_v59  ;;  %11013 = vst [vmem:[#allocation65_spill] sm:$0xff] %v10145_v42  ;;  %v8500_v60 = vld [vmem:[#allocation8 + $0x1c4] ss:$8 sps:$4 sm:$0xff]  }
 0x308   :  { %4623 = vmatmul.mubr.bf16.gmra.mrb[72].mxu0 %v8492_v19 }
 0x309   :  { %4796 = vmatmul.mubr.bf16.gmra.mrb[72].mxu1 %v8492_v19  ;;  %7783 = vmatprep.mubr.msk.bf16.mxu0 %vm3913_vm0, %v8497_v30 }
 0x30a   :  { %7797 = vmatprep.mubr.msk.bf16.mxu1 %vm3913_vm0, %v8497_v30 }
 0x30b   :  { %v3990_v36 = vpop.f32.mrb[224].mxu0  ;;  %v4163_v18 = vpop.f32.mrb[224].mxu1 }
 0x30c   :  { %v3992_v50 = vpop.f32.mrb[225].mxu0  ;;  %v4165_v51 = vpop.f32.mrb[225].mxu1 }
 0x30d   :  { %v8134_v61 = vpack.c.bf16 %v3992_v50, %v3990_v36  ;;  %v8135_v10 = vpack.c.bf16 %v4165_v51, %v4163_v18  ;;  %v3994_v2 = vpop.f32.mrb[226].mxu0  ;;  %v4167_v49 = vpop.f32.mrb[226].mxu1  ;;  %v8498_v36 = vld [vmem:[#allocation8 + $0x1c0] ss:$8 sps:$4 sm:$0xff]  }
 0x30e   :  { %v3996_v29 = vpop.f32.mrb[227].mxu0  ;;  %v4169_v44 = vpop.f32.mrb[227].mxu1 }
 0x30f   :  { %7188 = vst [vmem:[#allocation9] sm:$0xff] %v8134_v61  ;;  %7189 = vst [vmem:[#allocation9 + $0x8] sm:$0xff] %v8135_v10  ;;  %v8136_v17 = vpack.c.bf16 %v3996_v29, %v3994_v2  ;;  %v8137_v19 = vpack.c.bf16 %v4169_v44, %v4167_v49  ;;  %v8503_v29 = vld [vmem:[#allocation8 + $0x1d4] ss:$8 sps:$4 sm:$0xff]  }
 0x310   :  { %4633 = vmatmul.mubr.bf16.gmra.mrb[76].mxu0 %v8495_v9 }
 0x311   :  { %4806 = vmatmul.mubr.bf16.gmra.mrb[76].mxu1 %v8495_v9  ;;  %7826 = vmatprep.mubr.msk.bf16.mxu0 %vm3913_vm0, %v8500_v60  ;;  %7190 = vst [vmem:[#allocation9 + $0x10] sm:$0xff] %v8136_v17  ;;  %7191 = vst [vmem:[#allocation9 + $0x18] sm:$0xff] %v8137_v19  ;;  %v11014_v17 = vld [vmem:[#allocation73_spill] sm:$0xff] }
 0x312   :  { %7840 = vmatprep.mubr.msk.bf16.mxu1 %vm3913_vm0, %v8500_v60  ;;  %v11015_v60 = vld [vmem:[#allocation68_spill] sm:$0xff]  ;;  %v11017_v19 = vld [vmem:[#allocation77_spill] sm:$0xff] }
 0x313   :  { %v4000_v30 = vpop.f32.mrb[228].mxu0  ;;  %v4173_v62 = vpop.f32.mrb[228].mxu1  ;;  %v11016_v44 = vpack.c.bf16 %v11014_v17, %v11015_v60  ;;  %v11019_v40 = vpack.c.bf16 %v11017_v19, %v11018_v24  ;;  %v8501_v24 = vld [vmem:[#allocation8 + $0x1d0] ss:$8 sps:$4 sm:$0xff]   ;;  %v11034_v19 = vpack.c.bf16 %v9807_v46, %v9789_v7  ;;  %v11037_v7 = vpack.c.bf16 %v9795_v16, %v9787_v54 }
 0x314   :  { %v4002_v51 = vpop.f32.mrb[229].mxu0  ;;  %v4175_v18 = vpop.f32.mrb[229].mxu1  ;;  %v8507_v54 = vld [vmem:[#allocation8 + $0x1f0] ss:$8 sps:$4 sm:$0xff]   ;;  %v11040_v16 = vpack.c.bf16 %v9843_v43, %v9835_v35 }
 0x315   :  { %v8138_v50 = vpack.c.bf16 %v4002_v51, %v4000_v30  ;;  %v8139_v42 = vpack.c.bf16 %v4175_v18, %v4173_v62  ;;  %v4004_v59 = vpop.f32.mrb[230].mxu0  ;;  %v4177_v61 = vpop.f32.mrb[230].mxu1  ;;  %v11020_v62 = vpack.c.bf16 %v9663_v32, %v9651_v38  ;;  %v11023_v18 = vld [vmem:[#allocation82_spill] sm:$0xff]  ;;  %v11025_v32 = vpack.c.bf16 %v9657_v3, %v9649_v57 }
 0x316   :  { %v4006_v10 = vpop.f32.mrb[231].mxu0  ;;  %v4179_v2 = vpop.f32.mrb[231].mxu1  ;;  %v8506_v3 = vld [vmem:[#allocation8 + $0x1e4] ss:$8 sps:$4 sm:$0xff]   ;;  %v11028_v57 = vpack.c.bf16 %v9699_v22, %v9685_v11 }
 0x317   :  { %7192 = vst [vmem:[#allocation9 + $0x20] sm:$0xff] %v8138_v50  ;;  %7193 = vst [vmem:[#allocation9 + $0x28] sm:$0xff] %v8139_v42  ;;  %v8140_v49 = vpack.c.bf16 %v4006_v10, %v4004_v59  ;;  %v8141_v9 = vpack.c.bf16 %v4179_v2, %v4177_v61  ;;  %v11021_v59 = vpack.c.bf16 %v9665_v34, %v9653_v56 }
 0x318   :  { %5017 = vmatmul.mubr.bf16.vlgmr.msra.gmra.mrb[80].mxu0 %v8498_v36  ;;  %v11026_v10 = vpack.c.bf16 %v9713_v39, %v9689_v25  ;;  %v11027_v2 = vpack.c.bf16 %v9715_v21, %v9691_v15  ;;  %v11029_v25 = vpack.c.bf16 %v9701_v4, %v9687_v12  ;;  %v11030_v15 = vpack.c.bf16 %v9757_v63, %v9739_v20  ;;  %v8504_v12 = vld [vmem:[#allocation8 + $0x1e0] ss:$8 sps:$4 sm:$0xff]  }
 0x319   :  { %5190 = vmatmul.mubr.bf16.vlgmr.msra.gmra.mrb[80].mxu1 %v8498_v36  ;;  %5499 = vmatpush1.bf16.msra.mxu0 %v11016_v44  ;;  %7194 = vst [vmem:[#allocation9 + $0x30] sm:$0xff] %v8140_v49  ;;  %7195 = vst [vmem:[#allocation9 + $0x38] sm:$0xff] %v8141_v9  ;;  %v11031_v39 = vpack.c.bf16 %v9759_v52, %v9741_v37  ;;  %v11032_v4 = vpack.c.bf16 %v9743_v6, %v9735_v58 }
 0x31a   :  { %5672 = vmatpush1.bf16.msra.mxu1 %v11019_v40  ;;  %5500 = vmatprep.subr.bf16.mxu0 %v11020_v62  ;;  %v11022_v40 = vld [vmem:[#allocation83_spill] sm:$0xff]  ;;  %v11033_v20 = vpack.c.bf16 %v9745_v47, %v9737_v13  ;;  %v11035_v62 = vpack.c.bf16 %v9809_v45, %v9791_v28  ;;  %v11036_v47 = vpack.c.bf16 %v9793_v26, %v9785_v23 }
 0x31b   :  { %5673 = vmatprep.subr.bf16.mxu1 %v11021_v59  ;;  %v4010_v42 = vpop.f32.mrb[232].mxu0  ;;  %v4183_v30 = vpop.f32.mrb[232].mxu1  ;;  %7827 = vmatprep.mubr.msk.bf16.mxu0 %vm3913_vm0, %v8503_v29  ;;  %v11024_v50 = vpack.c.bf16 %v11022_v40, %v11023_v18  ;;  %v8509_v13 = vld [vmem:[#allocation8 + $0x1f4] ss:$8 sps:$4 sm:$0xff]   ;;  %v11038_v45 = vpack.c.bf16 %v9857_v55, %v9839_v8  ;;  %v11039_v28 = vpack.c.bf16 %v9859_v1, %v9841_v27 }
 0x31c   :  { %7841 = vmatprep.mubr.msk.bf16.mxu1 %vm3913_vm0, %v8503_v29  ;;  %v4012_v36 = vpop.f32.mrb[233].mxu0  ;;  %v4185_v51 = vpop.f32.mrb[233].mxu1  ;;  %v11041_v8 = vpack.c.bf16 %v9845_v48, %v9837_v41  ;;  %v8512_v41 = vld [vmem:[#allocation8 + $0x204] ss:$8 sps:$4 sm:$0xff]  }
 0x31d   :  { %5501 = vmatpush1.bf16.msra.mxu0 %v11024_v50  ;;  %v8142_v38 = vpack.c.bf16 %v4012_v36, %v4010_v42  ;;  %v8143_v34 = vpack.c.bf16 %v4185_v51, %v4183_v30  ;;  %v4014_v56 = vpop.f32.mrb[234].mxu0  ;;  %v4187_v61 = vpop.f32.mrb[234].mxu1  ;;  %v11042_v51 = vpack.c.bf16 %v9907_v5, %v9889_v53  ;;  %v11044_v48 = vld [vmem:[#allocation78_spill] sm:$0xff]  ;;  %v11047_v5 = vld [vmem:[#allocation75_spill] sm:$0xff] }
 0x31e   :  { %5674 = vmatpush1.bf16.msra.mxu1 %v11025_v32  ;;  %5502 = vmatprep.subr.bf16.mxu0 %v11026_v10  ;;  %v4016_v49 = vpop.f32.mrb[235].mxu0  ;;  %v4189_v9 = vpop.f32.mrb[235].mxu1  ;;  %v11045_v50 = vpack.c.bf16 %v9893_v0, %v11044_v48  ;;  %v11046_v32 = vld [vmem:[#allocation79_spill] sm:$0xff] }
 0x31f   :  { %5675 = vmatprep.subr.bf16.mxu1 %v11027_v2  ;;  %7196 = vst [vmem:[#allocation9 + $0x40] sm:$0xff] %v8142_v38  ;;  %7197 = vst [vmem:[#allocation9 + $0x48] sm:$0xff] %v8143_v34  ;;  %v8144_v29 = vpack.c.bf16 %v4016_v49, %v4014_v56  ;;  %v8145_v17 = vpack.c.bf16 %v4189_v9, %v4187_v61  ;;  %v11048_v53 = vpack.c.bf16 %v11046_v32, %v11047_v5  ;;  %v11052_v34 = vld [vmem:[#allocation19_spill] sm:$0xff]  ;;  %v11053_v56 = vld [vmem:[#allocation17_spill] sm:$0xff] }
 0x320   :  { %5027 = vmatmul.mubr.bf16.gmra.mrb[84].mxu0 %v8501_v24  ;;  %v11054_v61 = vpack.c.bf16 %v11052_v34, %v11053_v56  ;;  %v8510_v9 = vld [vmem:[#allocation8 + $0x200] ss:$8 sps:$4 sm:$0xff]   ;;  %v11085_v48 = vld [vmem:[#allocation31_spill] sm:$0xff]  ;;  %v8518_v56 = vld [vmem:[#allocation8 + $0x224] ss:$8 sps:$4 sm:$0xff]  }
 0x321   :  { %5200 = vmatmul.mubr.bf16.gmra.mrb[84].mxu1 %v8501_v24  ;;  %5503 = vmatpush1.bf16.msra.mxu0 %v11028_v57  ;;  %7198 = vst [vmem:[#allocation9 + $0x50] sm:$0xff] %v8144_v29  ;;  %7199 = vst [vmem:[#allocation9 + $0x58] sm:$0xff] %v8145_v17  ;;  %v11043_v24 = vpack.c.bf16 %v9909_v31, %v9891_v33  ;;  %v11049_v31 = vld [vmem:[#allocation18_spill] sm:$0xff]  ;;  %v11056_v17 = vld [vmem:[#allocation76_spill] sm:$0xff] }
 0x322   :  { %5676 = vmatpush1.bf16.msra.mxu1 %v11029_v25  ;;  %5504 = vmatprep.subr.bf16.mxu0 %v11030_v15  ;;  %v11050_v33 = vld [vmem:[#allocation26_spill] sm:$0xff]  ;;  %v11058_v57 = vld [vmem:[#allocation13_spill] sm:$0xff]  ;;  %v11059_v25 = vld [vmem:[#allocation15_spill] sm:$0xff] }
 0x323   :  { %5677 = vmatprep.subr.bf16.mxu1 %v11031_v39  ;;  %v4020_v21 = vpop.f32.mrb[236].mxu0  ;;  %7828 = vmatprep.mubr.msk.bf16.mxu0 %vm3913_vm0, %v8506_v3  ;;  %v11051_v38 = vpack.c.bf16 %v11049_v31, %v11050_v33  ;;  %v11055_v29 = vld [vmem:[#allocation22_spill] sm:$0xff]  ;;  %v11060_v15 = vpack.c.bf16 %v11058_v57, %v11059_v25  ;;  %v11087_v32 = vld [vmem:[#allocation41_spill] sm:$0xff] }
 0x324   :  { %v4193_v60 = vpop.f32.mrb[236].mxu1  ;;  %7842 = vmatprep.mubr.msk.bf16.mxu1 %vm3913_vm0, %v8506_v3  ;;  %v4022_v11 = vpop.f32.mrb[237].mxu0  ;;  %v11057_v3 = vpack.c.bf16 %v11055_v29, %v11056_v17  ;;  %v11088_v5 = vld [vmem:[#allocation50_spill] sm:$0xff]  ;;  %v11096_v29 = vld [vmem:[#allocation44_spill] sm:$0xff]  ;;  %v11097_v17 = vld [vmem:[#allocation39_spill] sm:$0xff] }
 0x325   :  { %v4195_v22 = vpop.f32.mrb[237].mxu1  ;;  %5505 = vmatpush1.bf16.msra.mxu0 %v11032_v4  ;;  %v8146_v63 = vpack.c.bf16 %v4022_v11, %v4020_v21  ;;  %v4024_v52 = vpop.f32.mrb[238].mxu0  ;;  %v11063_v4 = vld [vmem:[#allocation27_spill] sm:$0xff]  ;;  %v11099_v57 = vld [vmem:[#allocation49_spill] sm:$0xff]  ;;  %v11100_v25 = vld [vmem:[#allocation58_spill] sm:$0xff] }
 0x326   :  { %5678 = vmatpush1.bf16.msra.mxu1 %v11033_v20  ;;  %v8147_v37 = vpack.c.bf16 %v4195_v22, %v4193_v60  ;;  %v4197_v44 = vpop.f32.mrb[238].mxu1  ;;  %5506 = vmatprep.subr.bf16.mxu0 %v11034_v19  ;;  %v4026_v59 = vpop.f32.mrb[239].mxu0  ;;  %v11061_v22 = vld [vmem:[#allocation24_spill] sm:$0xff]  ;;  %v11064_v20 = vld [vmem:[#allocation34_spill] sm:$0xff] }
 0x327   :  { %5679 = vmatprep.subr.bf16.mxu1 %v11035_v62  ;;  %v4199_v42 = vpop.f32.mrb[239].mxu1  ;;  %7200 = vst [vmem:[#allocation9 + $0x60] sm:$0xff] %v8146_v63  ;;  %v8148_v58 = vpack.c.bf16 %v4026_v59, %v4024_v52  ;;  %v11065_v63 = vpack.c.bf16 %v11063_v4, %v11064_v20  ;;  %v8515_v62 = vld [vmem:[#allocation8 + $0x214] ss:$8 sps:$4 sm:$0xff]  }
 0x328   :  { %7201 = vst [vmem:[#allocation9 + $0x68] sm:$0xff] %v8147_v37  ;;  %v8149_v6 = vpack.c.bf16 %v4199_v42, %v4197_v44  ;;  %5037 = vmatmul.mubr.bf16.gmra.mrb[88].mxu0 %v8504_v12  ;;  %v11066_v59 = vld [vmem:[#allocation20_spill] sm:$0xff]  ;;  %v11067_v42 = vld [vmem:[#allocation14_spill] sm:$0xff]  ;;  %v11103_v4 = vld [vmem:[#allocation43_spill] sm:$0xff] }
 0x329   :  { %5210 = vmatmul.mubr.bf16.gmra.mrb[88].mxu1 %v8504_v12  ;;  %5507 = vmatpush1.bf16.msra.mxu0 %v11036_v47  ;;  %7202 = vst [vmem:[#allocation9 + $0x70] sm:$0xff] %v8148_v58  ;;  %v11062_v12 = vpack.c.bf16 %v10007_v14, %v11061_v22  ;;  %v11068_v58 = vpack.c.bf16 %v11066_v59, %v11067_v42  ;;  %v11070_v14 = vld [vmem:[#allocation16_spill] sm:$0xff]  ;;  %v8516_v22 = vld [vmem:[#allocation8 + $0x220] ss:$8 sps:$4 sm:$0xff]  }
 0x32a   :  { %5680 = vmatpush1.bf16.msra.mxu1 %v11037_v7  ;;  %7203 = vst [vmem:[#allocation9 + $0x78] sm:$0xff] %v8149_v6  ;;  %5508 = vmatprep.subr.bf16.mxu0 %v11038_v45  ;;  %v11069_v6 = vld [vmem:[#allocation25_spill] sm:$0xff]  ;;  %v11072_v47 = vld [vmem:[#allocation28_spill] sm:$0xff]  ;;  %v11073_v7 = vld [vmem:[#allocation30_spill] sm:$0xff] }
 0x32b   :  { %5681 = vmatprep.subr.bf16.mxu1 %v11039_v28  ;;  %v4030_v46 = vpop.f32.mrb[240].mxu0  ;;  %7829 = vmatprep.mubr.msk.bf16.mxu0 %vm3913_vm0, %v8509_v13  ;;  %v11074_v45 = vpack.c.bf16 %v11072_v47, %v11073_v7  ;;  %v11075_v28 = vld [vmem:[#allocation33_spill] sm:$0xff]  ;;  %v11108_v42 = vld [vmem:[#allocation52_spill] sm:$0xff] }
 0x32c   :  { %v4203_v30 = vpop.f32.mrb[240].mxu1  ;;  %7843 = vmatprep.mubr.msk.bf16.mxu1 %vm3913_vm0, %v8509_v13  ;;  %v4032_v23 = vpop.f32.mrb[241].mxu0  ;;  %v11071_v13 = vpack.c.bf16 %v11069_v6, %v11070_v14  ;;  %v11111_v14 = vld [vmem:[#allocation57_spill] sm:$0xff] }
 0x32d   :  { %v4205_v26 = vpop.f32.mrb[241].mxu1  ;;  %5509 = vmatpush1.bf16.msra.mxu0 %v11040_v16  ;;  %v8150_v55 = vpack.c.bf16 %v4032_v23, %v4030_v46  ;;  %v4034_v1 = vpop.f32.mrb[242].mxu0  ;;  %v11076_v46 = vld [vmem:[#allocation42_spill] sm:$0xff] }
 0x32e   :  { %5682 = vmatpush1.bf16.msra.mxu1 %v11041_v8  ;;  %v8151_v27 = vpack.c.bf16 %v4205_v26, %v4203_v30  ;;  %v4207_v36 = vpop.f32.mrb[242].mxu1  ;;  %5510 = vmatprep.subr.bf16.mxu0 %v11042_v51  ;;  %v4036_v40 = vpop.f32.mrb[243].mxu0  ;;  %v11077_v30 = vpack.c.bf16 %v11075_v28, %v11076_v46  ;;  %v8513_v8 = vld [vmem:[#allocation8 + $0x210] ss:$8 sps:$4 sm:$0xff]  }
 0x32f   :  { %5683 = vmatprep.subr.bf16.mxu1 %v11043_v24  ;;  %v4209_v18 = vpop.f32.mrb[243].mxu1  ;;  %7204 = vst [vmem:[#allocation9 + $0x80] sm:$0xff] %v8150_v55  ;;  %v8152_v35 = vpack.c.bf16 %v4036_v40, %v4034_v1  ;;  %v11078_v55 = vld [vmem:[#allocation32_spill] sm:$0xff]  ;;  %v11082_v51 = vld [vmem:[#allocation23_spill] sm:$0xff] }
 0x330   :  { %7205 = vst [vmem:[#allocation9 + $0x88] sm:$0xff] %v8151_v27  ;;  %v8153_v43 = vpack.c.bf16 %v4209_v18, %v4207_v36  ;;  %5047 = vmatmul.mubr.bf16.gmra.mrb[92].mxu0 %v8507_v54  ;;  %v11079_v27 = vld [vmem:[#allocation21_spill] sm:$0xff]  ;;  %v11081_v36 = vld [vmem:[#allocation38_spill] sm:$0xff] }
 0x331   :  { %5220 = vmatmul.mubr.bf16.gmra.mrb[92].mxu1 %v8507_v54  ;;  %5511 = vmatpush1.bf16.msra.mxu0 %v11045_v50  ;;  %7206 = vst [vmem:[#allocation9 + $0x90] sm:$0xff] %v8152_v35  ;;  %v11080_v1 = vpack.c.bf16 %v11078_v55, %v11079_v27  ;;  %v11083_v24 = vpack.c.bf16 %v11081_v36, %v11082_v51  ;;  %v11120_v27 = vld [vmem:[#allocation60_spill] sm:$0xff]  ;;  %v11123_v51 = vld [vmem:[#allocation65_spill] sm:$0xff] }
 0x332   :  { %5684 = vmatpush1.bf16.msra.mxu1 %v11048_v53  ;;  %7207 = vst [vmem:[#allocation9 + $0x98] sm:$0xff] %v8153_v43  ;;  %5512 = vmatprep.subr.bf16.mxu0 %v11051_v38  ;;  %v11089_v53 = vpack.c.bf16 %v11087_v32, %v11088_v5  ;;  %v11127_v32 = vld [vmem:[#allocation59_spill] sm:$0xff] }
 0x333   :  { %5685 = vmatprep.subr.bf16.mxu1 %v11054_v61  ;;  %v4040_v10 = vpop.f32.mrb[244].mxu0  ;;  %7830 = vmatprep.mubr.msk.bf16.mxu0 %vm3913_vm0, %v8512_v41  ;;  %v11090_v61 = vld [vmem:[#allocation40_spill] sm:$0xff] }
 0x334   :  { %v4213_v2 = vpop.f32.mrb[244].mxu1  ;;  %7844 = vmatprep.mubr.msk.bf16.mxu1 %vm3913_vm0, %v8512_v41  ;;  %v4042_v0 = vpop.f32.mrb[245].mxu0  ;;  %v11084_v41 = vld [vmem:[#allocation36_spill] sm:$0xff] }
 0x335   :  { %v4215_v49 = vpop.f32.mrb[245].mxu1  ;;  %5513 = vmatpush1.bf16.msra.mxu0 %v11057_v3  ;;  %v8154_v39 = vpack.c.bf16 %v4042_v0, %v4040_v10  ;;  %v4044_v60 = vpop.f32.mrb[246].mxu0  ;;  %v11086_v50 = vpack.c.bf16 %v11084_v41, %v11085_v48  ;;  %v11091_v10 = vld [vmem:[#allocation35_spill] sm:$0xff]  ;;  %v11093_v0 = vld [vmem:[#allocation46_spill] sm:$0xff]  ;;  %v11098_v3 = vpack.c.bf16 %v11096_v29, %v11097_v17 }
 0x336   :  { %5686 = vmatpush1.bf16.msra.mxu1 %v11060_v15  ;;  %v8155_v21 = vpack.c.bf16 %v4215_v49, %v4213_v2  ;;  %v4217_v11 = vpop.f32.mrb[246].mxu1  ;;  %5514 = vmatprep.subr.bf16.mxu0 %v11062_v12  ;;  %v4046_v37 = vpop.f32.mrb[247].mxu0  ;;  %v11092_v2 = vpack.c.bf16 %v11090_v61, %v11091_v10  ;;  %v11094_v49 = vld [vmem:[#allocation29_spill] sm:$0xff]  ;;  %v11101_v15 = vpack.c.bf16 %v11099_v57, %v11100_v25  ;;  %v11102_v12 = vld [vmem:[#allocation48_spill] sm:$0xff] }
 0x337   :  { %5687 = vmatprep.subr.bf16.mxu1 %v11065_v63  ;;  %v4219_v52 = vpop.f32.mrb[247].mxu1  ;;  %7208 = vst [vmem:[#allocation9 + $0xa0] sm:$0xff] %v8154_v39  ;;  %v8156_v44 = vpack.c.bf16 %v4046_v37, %v4044_v60  ;;  %v11104_v20 = vpack.c.bf16 %v11102_v12, %v11103_v4  ;;  %v11105_v63 = vld [vmem:[#allocation54_spill] sm:$0xff]  ;;  %v11106_v37 = vld [vmem:[#allocation37_spill] sm:$0xff]  ;;  %v8519_v48 = vld [vmem:[#allocation8 + $0x230] ss:$8 sps:$4 sm:$0xff]  }
 0x338   :  { %7209 = vst [vmem:[#allocation9 + $0xa8] sm:$0xff] %v8155_v21  ;;  %v8157_v19 = vpack.c.bf16 %v4219_v52, %v4217_v11  ;;  %5057 = vmatmul.mubr.bf16.gmra.mrb[96].mxu0 %v8510_v9  ;;  %v11107_v52 = vpack.c.bf16 %v11105_v63, %v11106_v37  ;;  %v8524_v10 = vld [vmem:[#allocation8 + $0x244] ss:$8 sps:$4 sm:$0xff]   ;;  %v8522_v25 = vld [vmem:[#allocation8 + $0x240] ss:$8 sps:$4 sm:$0xff]  }
 0x339   :  { %5230 = vmatmul.mubr.bf16.gmra.mrb[96].mxu1 %v8510_v9  ;;  %5515 = vmatpush1.bf16.msra.mxu0 %v11068_v58  ;;  %7210 = vst [vmem:[#allocation9 + $0xb0] sm:$0xff] %v8156_v44  ;;  %v11095_v9 = vpack.c.bf16 %v11093_v0, %v11094_v49  ;;  %v11109_v58 = vld [vmem:[#allocation47_spill] sm:$0xff] }
 0x33a   :  { %5688 = vmatpush1.bf16.msra.mxu1 %v11071_v13  ;;  %7211 = vst [vmem:[#allocation9 + $0xb8] sm:$0xff] %v8157_v19  ;;  %5516 = vmatprep.subr.bf16.mxu0 %v11074_v45  ;;  %v11110_v6 = vpack.c.bf16 %v11108_v42, %v11109_v58  ;;  %v11112_v13 = vld [vmem:[#allocation66_spill] sm:$0xff] }
 0x33b   :  { %5689 = vmatprep.subr.bf16.mxu1 %v11077_v30  ;;  %v4050_v23 = vpop.f32.mrb[248].mxu0  ;;  %7831 = vmatprep.mubr.msk.bf16.mxu0 %vm3913_vm0, %v8515_v62  ;;  %v11113_v47 = vpack.c.bf16 %v11111_v14, %v11112_v13  ;;  %v8521_v30 = vld [vmem:[#allocation8 + $0x234] ss:$8 sps:$4 sm:$0xff]  }
 0x33c   :  { %v4223_v26 = vpop.f32.mrb[248].mxu1  ;;  %7845 = vmatprep.mubr.msk.bf16.mxu1 %vm3913_vm0, %v8515_v62  ;;  %v4052_v54 = vpop.f32.mrb[249].mxu0 }
 0x33d   :  { %v4225_v16 = vpop.f32.mrb[249].mxu1  ;;  %5517 = vmatpush1.bf16.msra.mxu0 %v11080_v1  ;;  %v8158_v40 = vpack.c.bf16 %v4052_v54, %v4050_v23  ;;  %v4054_v35 = vpop.f32.mrb[250].mxu0  ;;  %v11114_v23 = vld [vmem:[#allocation56_spill] sm:$0xff]  ;;  %v11121_v1 = vld [vmem:[#allocation55_spill] sm:$0xff] }
 0x33e   :  { %5690 = vmatpush1.bf16.msra.mxu1 %v11083_v24  ;;  %v8159_v18 = vpack.c.bf16 %v4225_v16, %v4223_v26  ;;  %v4227_v43 = vpop.f32.mrb[250].mxu1  ;;  %5518 = vmatprep.subr.bf16.mxu0 %v11086_v50  ;;  %v4056_v31 = vpop.f32.mrb[251].mxu0  ;;  %v11115_v26 = vld [vmem:[#allocation51_spill] sm:$0xff]  ;;  %v11117_v16 = vld [vmem:[#allocation62_spill] sm:$0xff]  ;;  %v11122_v36 = vpack.c.bf16 %v11120_v27, %v11121_v1  ;;  %v11126_v50 = vld [vmem:[#allocation64_spill] sm:$0xff] }
 0x33f   :  { %5691 = vmatprep.subr.bf16.mxu1 %v11089_v53  ;;  %v4229_v33 = vpop.f32.mrb[251].mxu1  ;;  %7212 = vst [vmem:[#allocation9 + $0xc0] sm:$0xff] %v8158_v40  ;;  %v8160_v38 = vpack.c.bf16 %v4056_v31, %v4054_v35  ;;  %v11116_v54 = vpack.c.bf16 %v11114_v23, %v11115_v26  ;;  %v11124_v24 = vld [vmem:[#allocation70_spill] sm:$0xff]  ;;  %v11128_v5 = vpack.c.bf16 %v11126_v50, %v11127_v32  ;;  %v11129_v53 = vld [vmem:[#allocation71_spill] sm:$0xff]  ;;  %v11130_v31 = vld [vmem:[#allocation53_spill] sm:$0xff] }
 0x340   :  { %7213 = vst [vmem:[#allocation9 + $0xc8] sm:$0xff] %v8159_v18  ;;  %v8161_v34 = vpack.c.bf16 %v4229_v33, %v4227_v43  ;;  %5067 = vmatmul.mubr.bf16.gmra.mrb[100].mxu0 %v8513_v8  ;;  %v11125_v40 = vpack.c.bf16 %v11123_v51, %v11124_v24  ;;  %v11131_v33 = vpack.c.bf16 %v11129_v53, %v11130_v31  ;;  %v8528_v23 = vld [vmem:[#allocation8 + $0x260] ss:$8 sps:$4 sm:$0xff]  }
 0x341   :  { %5240 = vmatmul.mubr.bf16.gmra.mrb[100].mxu1 %v8513_v8  ;;  %5519 = vmatpush1.bf16.msra.mxu0 %v11092_v2  ;;  %7214 = vst [vmem:[#allocation9 + $0xd0] sm:$0xff] %v8160_v38  ;;  %v11118_v8 = vld [vmem:[#allocation45_spill] sm:$0xff] }
 0x342   :  { %5692 = vmatpush1.bf16.msra.mxu1 %v11095_v9  ;;  %7215 = vst [vmem:[#allocation9 + $0xd8] sm:$0xff] %v8161_v34  ;;  %5520 = vmatprep.subr.bf16.mxu0 %v11098_v3  ;;  %v11119_v55 = vpack.c.bf16 %v11117_v16, %v11118_v8 }
 0x343   :  { %5693 = vmatprep.subr.bf16.mxu1 %v11101_v15  ;;  %v4060_v39 = vpop.f32.mrb[252].mxu0  ;;  %7832 = vmatprep.mubr.msk.bf16.mxu0 %vm3913_vm0, %v8518_v56 }
 0x344   :  { %v4233_v21 = vpop.f32.mrb[252].mxu1  ;;  %7846 = vmatprep.mubr.msk.bf16.mxu1 %vm3913_vm0, %v8518_v56  ;;  %v4062_v60 = vpop.f32.mrb[253].mxu0 }
 0x345   :  { %v4235_v11 = vpop.f32.mrb[253].mxu1  ;;  %5521 = vmatpush1.bf16.msra.mxu0 %v11104_v20  ;;  %v8162_v44 = vpack.c.bf16 %v4062_v60, %v4060_v39  ;;  %v4064_v62 = vpop.f32.mrb[254].mxu0 }
 0x346   :  { %5694 = vmatpush1.bf16.msra.mxu1 %v11107_v52  ;;  %v8163_v19 = vpack.c.bf16 %v4235_v11, %v4233_v21  ;;  %v4237_v59 = vpop.f32.mrb[254].mxu1  ;;  %5522 = vmatprep.subr.bf16.mxu0 %v11110_v6  ;;  %v4066_v7 = vpop.f32.mrb[255].mxu0  ;;  %v8527_v11 = vld [vmem:[#allocation8 + $0x254] ss:$8 sps:$4 sm:$0xff]   ;;  %v8530_v6 = vld [vmem:[#allocation8 + $0x264] ss:$8 sps:$4 sm:$0xff]  }
 0x347   :  { %5695 = vmatprep.subr.bf16.mxu1 %v11113_v47  ;;  %v4239_v45 = vpop.f32.mrb[255].mxu1  ;;  %7216 = vst [vmem:[#allocation9 + $0xe0] sm:$0xff] %v8162_v44  ;;  %v8164_v28 = vpack.c.bf16 %v4066_v7, %v4064_v62 }
 0x348   :  { %7217 = vst [vmem:[#allocation9 + $0xe8] sm:$0xff] %v8163_v19  ;;  %v8165_v46 = vpack.c.bf16 %v4239_v45, %v4237_v59  ;;  %5077 = vmatmul.mubr.bf16.gmra.mrb[104].mxu0 %v8516_v22  ;;  %v8525_v19 = vld [vmem:[#allocation8 + $0x250] ss:$8 sps:$4 sm:$0xff]  }
 0x349   :  { %5250 = vmatmul.mubr.bf16.gmra.mrb[104].mxu1 %v8516_v22  ;;  %5523 = vmatpush1.bf16.msra.mxu0 %v11116_v54  ;;  %7218 = vst [vmem:[#allocation9 + $0xf0] sm:$0xff] %v8164_v28 }
 0x34a   :  { %5696 = vmatpush1.bf16.msra.mxu1 %v11119_v55  ;;  %7219 = vst [vmem:[#allocation9 + $0xf8] sm:$0xff] %v8165_v46  ;;  %5524 = vmatprep.subr.bf16.mxu0 %v11122_v36  ;;  %v8533_v55 = vld [vmem:[#allocation8 + $0x274] ss:$8 sps:$4 sm:$0xff]  }
 0x34b   :  { %5697 = vmatprep.subr.bf16.mxu1 %v11125_v40  ;;  %v4070_v18 = vpop.f32.mrb[0].mxu0  ;;  %7833 = vmatprep.mubr.msk.bf16.mxu0 %vm3913_vm0, %v8521_v30 }
 0x34c   :  { %v4243_v35 = vpop.f32.mrb[0].mxu1  ;;  %7847 = vmatprep.mubr.msk.bf16.mxu1 %vm3913_vm0, %v8521_v30  ;;  %v4072_v43 = vpop.f32.mrb[1].mxu0 }
 0x34d   :  { %v4245_v41 = vpop.f32.mrb[1].mxu1  ;;  %5525 = vmatpush1.bf16.msra.mxu0 %v11128_v5  ;;  %v8166_v38 = vpack.c.bf16 %v4072_v43, %v4070_v18  ;;  %v4074_v56 = vpop.f32.mrb[2].mxu0  ;;  %v8531_v43 = vld [vmem:[#allocation8 + $0x270] ss:$8 sps:$4 sm:$0xff]   ;;  %v8536_v5 = vld [vmem:[#allocation8 + $0x284] ss:$8 sps:$4 sm:$0xff]  }
 0x34e   :  { %5698 = vmatpush1.bf16.msra.mxu1 %v11131_v33  ;;  %v8167_v34 = vpack.c.bf16 %v4245_v41, %v4243_v35  ;;  %v4247_v61 = vpop.f32.mrb[2].mxu1  ;;  %v4076_v2 = vpop.f32.mrb[3].mxu0 }
 0x34f   :  { %v4249_v0 = vpop.f32.mrb[3].mxu1  ;;  %7220 = vst [vmem:[#allocation9 + $0x100] sm:$0xff] %v8166_v38  ;;  %v8168_v49 = vpack.c.bf16 %v4076_v2, %v4074_v56  ;;  %v8534_v2 = vld [vmem:[#allocation8 + $0x280] ss:$8 sps:$4 sm:$0xff]  }
 0x350   :  { %7221 = vst [vmem:[#allocation9 + $0x108] sm:$0xff] %v8167_v34  ;;  %v8169_v9 = vpack.c.bf16 %v4249_v0, %v4247_v61  ;;  %5087 = vmatmul.mubr.bf16.gmra.mrb[108].mxu0 %v8519_v48 }
 0x351   :  { %5260 = vmatmul.mubr.bf16.gmra.mrb[108].mxu1 %v8519_v48  ;;  %7222 = vst [vmem:[#allocation9 + $0x110] sm:$0xff] %v8168_v49  ;;  %7834 = vmatprep.mubr.msk.bf16.mxu0 %vm3913_vm0, %v8524_v10 }
 0x352   :  { %7223 = vst [vmem:[#allocation9 + $0x118] sm:$0xff] %v8169_v9  ;;  %7848 = vmatprep.mubr.msk.bf16.mxu1 %vm3913_vm0, %v8524_v10 }
 0x353   :  { %v4080_v29 = vpop.f32.mrb[4].mxu0 }
 0x354   :  { %v4253_v17 = vpop.f32.mrb[4].mxu1  ;;  %v4082_v3 = vpop.f32.mrb[5].mxu0 }
 0x355   :  { %v4255_v57 = vpop.f32.mrb[5].mxu1  ;;  %v8170_v15 = vpack.c.bf16 %v4082_v3, %v4080_v29  ;;  %v4084_v21 = vpop.f32.mrb[6].mxu0 }
 0x356   :  { %v8171_v39 = vpack.c.bf16 %v4255_v57, %v4253_v17  ;;  %v4257_v60 = vpop.f32.mrb[6].mxu1  ;;  %v4086_v22 = vpop.f32.mrb[7].mxu0  ;;  %v8539_v17 = vld [vmem:[#allocation8 + $0x294] ss:$8 sps:$4 sm:$0xff]  }
 0x357   :  { %v4259_v12 = vpop.f32.mrb[7].mxu1  ;;  %7224 = vst [vmem:[#allocation9 + $0x120] sm:$0xff] %v8170_v15  ;;  %v8172_v4 = vpack.c.bf16 %v4086_v22, %v4084_v21  ;;  %v8537_v22 = vld [vmem:[#allocation8 + $0x290] ss:$8 sps:$4 sm:$0xff]  }
 0x358   :  { %7225 = vst [vmem:[#allocation9 + $0x128] sm:$0xff] %v8171_v39  ;;  %v8173_v20 = vpack.c.bf16 %v4259_v12, %v4257_v60  ;;  %5097 = vmatmul.mubr.bf16.gmra.mrb[112].mxu0 %v8522_v25 }
 0x359   :  { %5270 = vmatmul.mubr.bf16.gmra.mrb[112].mxu1 %v8522_v25  ;;  %7226 = vst [vmem:[#allocation9 + $0x130] sm:$0xff] %v8172_v4  ;;  %7835 = vmatprep.mubr.msk.bf16.mxu0 %vm3913_vm0, %v8527_v11 }
 0x35a   :  { %7227 = vst [vmem:[#allocation9 + $0x138] sm:$0xff] %v8173_v20  ;;  %7849 = vmatprep.mubr.msk.bf16.mxu1 %vm3913_vm0, %v8527_v11 }
 0x35b   :  { %v4090_v63 = vpop.f32.mrb[8].mxu0 }
 0x35c   :  { %v4263_v37 = vpop.f32.mrb[8].mxu1  ;;  %v4092_v52 = vpop.f32.mrb[9].mxu0 }
 0x35d   :  { %v4265_v44 = vpop.f32.mrb[9].mxu1  ;;  %v8174_v62 = vpack.c.bf16 %v4092_v52, %v4090_v63  ;;  %v4094_v42 = vpop.f32.mrb[10].mxu0 }
 0x35e   :  { %v8175_v59 = vpack.c.bf16 %v4265_v44, %v4263_v37  ;;  %v4267_v58 = vpop.f32.mrb[10].mxu1  ;;  %v4096_v14 = vpop.f32.mrb[11].mxu0  ;;  %v8542_v37 = vld [vmem:[#allocation8 + $0x2a4] ss:$8 sps:$4 sm:$0xff]  }
 0x35f   :  { %v4269_v13 = vpop.f32.mrb[11].mxu1  ;;  %7228 = vst [vmem:[#allocation9 + $0x140] sm:$0xff] %v8174_v62  ;;  %v8176_v47 = vpack.c.bf16 %v4096_v14, %v4094_v42  ;;  %v8540_v14 = vld [vmem:[#allocation8 + $0x2a0] ss:$8 sps:$4 sm:$0xff]  }
 0x360   :  { %7229 = vst [vmem:[#allocation9 + $0x148] sm:$0xff] %v8175_v59  ;;  %v8177_v7 = vpack.c.bf16 %v4269_v13, %v4267_v58  ;;  %5107 = vmatmul.mubr.bf16.gmra.mrb[116].mxu0 %v8525_v19 }
 0x361   :  { %5280 = vmatmul.mubr.bf16.gmra.mrb[116].mxu1 %v8525_v19  ;;  %7230 = vst [vmem:[#allocation9 + $0x150] sm:$0xff] %v8176_v47  ;;  %7836 = vmatprep.mubr.msk.bf16.mxu0 %vm3913_vm0, %v8530_v6 }
 0x362   :  { %7231 = vst [vmem:[#allocation9 + $0x158] sm:$0xff] %v8177_v7  ;;  %7850 = vmatprep.mubr.msk.bf16.mxu1 %vm3913_vm0, %v8530_v6 }
 0x363   :  { %v4100_v45 = vpop.f32.mrb[12].mxu0 }
 0x364   :  { %v4273_v28 = vpop.f32.mrb[12].mxu1  ;;  %v4102_v46 = vpop.f32.mrb[13].mxu0 }
 0x365   :  { %v4275_v30 = vpop.f32.mrb[13].mxu1  ;;  %v8178_v26 = vpack.c.bf16 %v4102_v46, %v4100_v45  ;;  %v4104_v16 = vpop.f32.mrb[14].mxu0 }
 0x366   :  { %v8179_v54 = vpack.c.bf16 %v4275_v30, %v4273_v28  ;;  %v4277_v8 = vpop.f32.mrb[14].mxu1  ;;  %v4106_v27 = vpop.f32.mrb[15].mxu0  ;;  %v8545_v28 = vld [vmem:[#allocation8 + $0x2b4] ss:$8 sps:$4 sm:$0xff]  }
 0x367   :  { %v4279_v1 = vpop.f32.mrb[15].mxu1  ;;  %7232 = vst [vmem:[#allocation9 + $0x160] sm:$0xff] %v8178_v26  ;;  %v8180_v36 = vpack.c.bf16 %v4106_v27, %v4104_v16  ;;  %v8543_v27 = vld [vmem:[#allocation8 + $0x2b0] ss:$8 sps:$4 sm:$0xff]  }
 0x368   :  { %7233 = vst [vmem:[#allocation9 + $0x168] sm:$0xff] %v8179_v54  ;;  %v8181_v51 = vpack.c.bf16 %v4279_v1, %v4277_v8  ;;  %5117 = vmatmul.mubr.bf16.gmra.mrb[120].mxu0 %v8528_v23 }
 0x369   :  { %5290 = vmatmul.mubr.bf16.gmra.mrb[120].mxu1 %v8528_v23  ;;  %7234 = vst [vmem:[#allocation9 + $0x170] sm:$0xff] %v8180_v36  ;;  %7837 = vmatprep.mubr.msk.bf16.mxu0 %vm3913_vm0, %v8533_v55 }
 0x36a   :  { %7235 = vst [vmem:[#allocation9 + $0x178] sm:$0xff] %v8181_v51  ;;  %7851 = vmatprep.mubr.msk.bf16.mxu1 %vm3913_vm0, %v8533_v55 }
 0x36b   :  { %v4110_v24 = vpop.f32.mrb[16].mxu0 }
 0x36c   :  { %v4283_v40 = vpop.f32.mrb[16].mxu1  ;;  %v4112_v18 = vpop.f32.mrb[17].mxu0 }
 0x36d   :  { %v4285_v35 = vpop.f32.mrb[17].mxu1  ;;  %v8182_v41 = vpack.c.bf16 %v4112_v18, %v4110_v24  ;;  %v4114_v50 = vpop.f32.mrb[18].mxu0 }
 0x36e   :  { %v8183_v48 = vpack.c.bf16 %v4285_v35, %v4283_v40  ;;  %v4287_v32 = vpop.f32.mrb[18].mxu1  ;;  %v4116_v53 = vpop.f32.mrb[19].mxu0  ;;  %v8548_v40 = vld [vmem:[#allocation8 + $0x2c4] ss:$8 sps:$4 sm:$0xff]  }
 0x36f   :  { %v4289_v31 = vpop.f32.mrb[19].mxu1  ;;  %7236 = vst [vmem:[#allocation9 + $0x180] sm:$0xff] %v8182_v41  ;;  %v8184_v33 = vpack.c.bf16 %v4116_v53, %v4114_v50  ;;  %v8546_v53 = vld [vmem:[#allocation8 + $0x2c0] ss:$8 sps:$4 sm:$0xff]  }
 0x370   :  { %7237 = vst [vmem:[#allocation9 + $0x188] sm:$0xff] %v8183_v48  ;;  %v8185_v38 = vpack.c.bf16 %v4289_v31, %v4287_v32  ;;  %5127 = vmatmul.mubr.bf16.gmra.mrb[124].mxu0 %v8531_v43 }
 0x371   :  { %5300 = vmatmul.mubr.bf16.gmra.mrb[124].mxu1 %v8531_v43  ;;  %7238 = vst [vmem:[#allocation9 + $0x190] sm:$0xff] %v8184_v33  ;;  %7838 = vmatprep.mubr.msk.bf16.mxu0 %vm3913_vm0, %v8536_v5 }
 0x372   :  { %7239 = vst [vmem:[#allocation9 + $0x198] sm:$0xff] %v8185_v38  ;;  %7852 = vmatprep.mubr.msk.bf16.mxu1 %vm3913_vm0, %v8536_v5 }
 0x373   :  { %v4120_v34 = vpop.f32.mrb[20].mxu0 }
 0x374   :  { %v4293_v56 = vpop.f32.mrb[20].mxu1  ;;  %v4122_v61 = vpop.f32.mrb[21].mxu0 }
 0x375   :  { %v4295_v10 = vpop.f32.mrb[21].mxu1  ;;  %v8186_v0 = vpack.c.bf16 %v4122_v61, %v4120_v34  ;;  %v4124_v9 = vpop.f32.mrb[22].mxu0 }
 0x376   :  { %v8187_v49 = vpack.c.bf16 %v4295_v10, %v4293_v56  ;;  %v4297_v29 = vpop.f32.mrb[22].mxu1  ;;  %v4126_v3 = vpop.f32.mrb[23].mxu0  ;;  %v8551_v56 = vld [vmem:[#allocation8 + $0x2d4] ss:$8 sps:$4 sm:$0xff]  }
 0x377   :  { %v4299_v57 = vpop.f32.mrb[23].mxu1  ;;  %7240 = vst [vmem:[#allocation9 + $0x1a0] sm:$0xff] %v8186_v0  ;;  %v8188_v25 = vpack.c.bf16 %v4126_v3, %v4124_v9  ;;  %v8549_v3 = vld [vmem:[#allocation8 + $0x2d0] ss:$8 sps:$4 sm:$0xff]  }
 0x378   :  { %7241 = vst [vmem:[#allocation9 + $0x1a8] sm:$0xff] %v8187_v49  ;;  %v8189_v15 = vpack.c.bf16 %v4299_v57, %v4297_v29  ;;  %5137 = vmatmul.mubr.bf16.gmra.mrb[128].mxu0 %v8534_v2 }
 0x379   :  { %5310 = vmatmul.mubr.bf16.gmra.mrb[128].mxu1 %v8534_v2  ;;  %7242 = vst [vmem:[#allocation9 + $0x1b0] sm:$0xff] %v8188_v25  ;;  %7839 = vmatprep.mubr.msk.bf16.mxu0 %vm3913_vm0, %v8539_v17 }
 0x37a   :  { %7243 = vst [vmem:[#allocation9 + $0x1b8] sm:$0xff] %v8189_v15  ;;  %7853 = vmatprep.mubr.msk.bf16.mxu1 %vm3913_vm0, %v8539_v17 }
 0x37b   :  { %v4504_v39 = vpop.f32.mrb[24].mxu0 }
 0x37c   :  { %v4677_v21 = vpop.f32.mrb[24].mxu1  ;;  %v4506_v60 = vpop.f32.mrb[25].mxu0 }
 0x37d   :  { %v4679_v11 = vpop.f32.mrb[25].mxu1  ;;  %v8190_v12 = vpack.c.bf16 %v4506_v60, %v4504_v39  ;;  %v4508_v20 = vpop.f32.mrb[26].mxu0 }
 0x37e   :  { %v8191_v4 = vpack.c.bf16 %v4679_v11, %v4677_v21  ;;  %v4681_v63 = vpop.f32.mrb[26].mxu1  ;;  %v4510_v52 = vpop.f32.mrb[27].mxu0  ;;  %v8554_v21 = vld [vmem:[#allocation8 + $0x2e4] ss:$8 sps:$4 sm:$0xff]  }
 0x37f   :  { %v4683_v44 = vpop.f32.mrb[27].mxu1  ;;  %7244 = vst [vmem:[#allocation9 + $0x1c0] sm:$0xff] %v8190_v12  ;;  %v8192_v19 = vpack.c.bf16 %v4510_v52, %v4508_v20  ;;  %v8552_v52 = vld [vmem:[#allocation8 + $0x2e0] ss:$8 sps:$4 sm:$0xff]  }
 0x380   :  { %7245 = vst [vmem:[#allocation9 + $0x1c8] sm:$0xff] %v8191_v4  ;;  %v8193_v62 = vpack.c.bf16 %v4683_v44, %v4681_v63  ;;  %5147 = vmatmul.mubr.bf16.gmra.mrb[132].mxu0 %v8537_v22 }
 0x381   :  { %5320 = vmatmul.mubr.bf16.gmra.mrb[132].mxu1 %v8537_v22  ;;  %7246 = vst [vmem:[#allocation9 + $0x1d0] sm:$0xff] %v8192_v19  ;;  %7882 = vmatprep.mubr.msk.bf16.mxu0 %vm3913_vm0, %v8542_v37 }
 0x382   :  { %7247 = vst [vmem:[#allocation9 + $0x1d8] sm:$0xff] %v8193_v62  ;;  %7896 = vmatprep.mubr.msk.bf16.mxu1 %vm3913_vm0, %v8542_v37 }
 0x383   :  { %v4514_v59 = vpop.f32.mrb[28].mxu0 }
 0x384   :  { %v4687_v42 = vpop.f32.mrb[28].mxu1  ;;  %v4516_v58 = vpop.f32.mrb[29].mxu0 }
 0x385   :  { %v4689_v6 = vpop.f32.mrb[29].mxu1  ;;  %v8194_v13 = vpack.c.bf16 %v4516_v58, %v4514_v59  ;;  %v4518_v7 = vpop.f32.mrb[30].mxu0 }
 0x386   :  { %v8195_v47 = vpack.c.bf16 %v4689_v6, %v4687_v42  ;;  %v4691_v45 = vpop.f32.mrb[30].mxu1  ;;  %v4520_v46 = vpop.f32.mrb[31].mxu0  ;;  %v8557_v42 = vld [vmem:[#allocation8 + $0x2f4] ss:$8 sps:$4 sm:$0xff]  }
 0x387   :  { %v4693_v30 = vpop.f32.mrb[31].mxu1  ;;  %7248 = vst [vmem:[#allocation9 + $0x1e0] sm:$0xff] %v8194_v13  ;;  %v8196_v23 = vpack.c.bf16 %v4520_v46, %v4518_v7  ;;  %v8555_v46 = vld [vmem:[#allocation8 + $0x2f0] ss:$8 sps:$4 sm:$0xff]  }
 0x388   :  { %7249 = vst [vmem:[#allocation9 + $0x1e8] sm:$0xff] %v8195_v47  ;;  %v8197_v26 = vpack.c.bf16 %v4693_v30, %v4691_v45  ;;  %5531 = vmatmul.mubr.bf16.vlgmr.msra.gmra.mrb[136].mxu0 %v8540_v14 }
 0x389   :  { %5704 = vmatmul.mubr.bf16.vlgmr.msra.gmra.mrb[136].mxu1 %v8540_v14  ;;  %7250 = vst [vmem:[#allocation9 + $0x1f0] sm:$0xff] %v8196_v23  ;;  %7883 = vmatprep.mubr.msk.bf16.mxu0 %vm3913_vm0, %v8545_v28 }
 0x38a   :  { %7251 = vst [vmem:[#allocation9 + $0x1f8] sm:$0xff] %v8197_v26  ;;  %7897 = vmatprep.mubr.msk.bf16.mxu1 %vm3913_vm0, %v8545_v28 }
 0x38b   :  { %v4524_v54 = vpop.f32.mrb[32].mxu0 }
 0x38c   :  { %v4697_v16 = vpop.f32.mrb[32].mxu1  ;;  %v4526_v8 = vpop.f32.mrb[33].mxu0 }
 0x38d   :  { %v4699_v55 = vpop.f32.mrb[33].mxu1  ;;  %v8198_v1 = vpack.c.bf16 %v4526_v8, %v4524_v54  ;;  %v4528_v51 = vpop.f32.mrb[34].mxu0 }
 0x38e   :  { %v8199_v36 = vpack.c.bf16 %v4699_v55, %v4697_v16  ;;  %v4701_v24 = vpop.f32.mrb[34].mxu1  ;;  %v4530_v18 = vpop.f32.mrb[35].mxu0  ;;  %v8560_v16 = vld [vmem:[#allocation8 + $0x304] ss:$8 sps:$4 sm:$0xff]  }
 0x38f   :  { %v4703_v35 = vpop.f32.mrb[35].mxu1  ;;  %7252 = vst [vmem:[#allocation9 + $0x200] sm:$0xff] %v8198_v1  ;;  %v8200_v43 = vpack.c.bf16 %v4530_v18, %v4528_v51  ;;  %v8558_v18 = vld [vmem:[#allocation8 + $0x300] ss:$8 sps:$4 sm:$0xff]  }
 0x390   :  { %7253 = vst [vmem:[#allocation9 + $0x208] sm:$0xff] %v8199_v36  ;;  %v8201_v41 = vpack.c.bf16 %v4703_v35, %v4701_v24  ;;  %5541 = vmatmul.mubr.bf16.gmra.mrb[140].mxu0 %v8543_v27 }
 0x391   :  { %5714 = vmatmul.mubr.bf16.gmra.mrb[140].mxu1 %v8543_v27  ;;  %7254 = vst [vmem:[#allocation9 + $0x210] sm:$0xff] %v8200_v43  ;;  %7884 = vmatprep.mubr.msk.bf16.mxu0 %vm3913_vm0, %v8548_v40 }
 0x392   :  { %7255 = vst [vmem:[#allocation9 + $0x218] sm:$0xff] %v8201_v41  ;;  %7898 = vmatprep.mubr.msk.bf16.mxu1 %vm3913_vm0, %v8548_v40 }
 0x393   :  { %v4534_v48 = vpop.f32.mrb[36].mxu0 }
 0x394   :  { %v4707_v50 = vpop.f32.mrb[36].mxu1  ;;  %v4536_v32 = vpop.f32.mrb[37].mxu0 }
 0x395   :  { %v4709_v5 = vpop.f32.mrb[37].mxu1  ;;  %v8202_v31 = vpack.c.bf16 %v4536_v32, %v4534_v48  ;;  %v4538_v38 = vpop.f32.mrb[38].mxu0 }
 0x396   :  { %v8203_v33 = vpack.c.bf16 %v4709_v5, %v4707_v50  ;;  %v4711_v34 = vpop.f32.mrb[38].mxu1  ;;  %v4540_v61 = vpop.f32.mrb[39].mxu0  ;;  %v8563_v50 = vld [vmem:[#allocation8 + $0x314] ss:$8 sps:$4 sm:$0xff]  }
 0x397   :  { %v4713_v10 = vpop.f32.mrb[39].mxu1  ;;  %7256 = vst [vmem:[#allocation9 + $0x220] sm:$0xff] %v8202_v31  ;;  %v8204_v2 = vpack.c.bf16 %v4540_v61, %v4538_v38  ;;  %v8561_v61 = vld [vmem:[#allocation8 + $0x310] ss:$8 sps:$4 sm:$0xff]  }
 0x398   :  { %7257 = vst [vmem:[#allocation9 + $0x228] sm:$0xff] %v8203_v33  ;;  %v8205_v0 = vpack.c.bf16 %v4713_v10, %v4711_v34  ;;  %5551 = vmatmul.mubr.bf16.gmra.mrb[144].mxu0 %v8546_v53 }
 0x399   :  { %5724 = vmatmul.mubr.bf16.gmra.mrb[144].mxu1 %v8546_v53  ;;  %7258 = vst [vmem:[#allocation9 + $0x230] sm:$0xff] %v8204_v2  ;;  %7885 = vmatprep.mubr.msk.bf16.mxu0 %vm3913_vm0, %v8551_v56 }
 0x39a   :  { %7259 = vst [vmem:[#allocation9 + $0x238] sm:$0xff] %v8205_v0  ;;  %7899 = vmatprep.mubr.msk.bf16.mxu1 %vm3913_vm0, %v8551_v56 }
 0x39b   :  { %v4544_v49 = vpop.f32.mrb[40].mxu0 }
 0x39c   :  { %v4717_v9 = vpop.f32.mrb[40].mxu1  ;;  %v4546_v29 = vpop.f32.mrb[41].mxu0 }
 0x39d   :  { %v4719_v17 = vpop.f32.mrb[41].mxu1  ;;  %v8206_v57 = vpack.c.bf16 %v4546_v29, %v4544_v49  ;;  %v4548_v15 = vpop.f32.mrb[42].mxu0 }
 0x39e   :  { %v8207_v25 = vpack.c.bf16 %v4719_v17, %v4717_v9  ;;  %v4721_v39 = vpop.f32.mrb[42].mxu1  ;;  %v4550_v60 = vpop.f32.mrb[43].mxu0  ;;  %v8566_v9 = vld [vmem:[#allocation8 + $0x324] ss:$8 sps:$4 sm:$0xff]  }
 0x39f   :  { %v4723_v11 = vpop.f32.mrb[43].mxu1  ;;  %7260 = vst [vmem:[#allocation9 + $0x240] sm:$0xff] %v8206_v57  ;;  %v8208_v22 = vpack.c.bf16 %v4550_v60, %v4548_v15  ;;  %v8564_v60 = vld [vmem:[#allocation8 + $0x320] ss:$8 sps:$4 sm:$0xff]  }
 0x3a0   :  { %7261 = vst [vmem:[#allocation9 + $0x248] sm:$0xff] %v8207_v25  ;;  %v8209_v12 = vpack.c.bf16 %v4723_v11, %v4721_v39  ;;  %5561 = vmatmul.mubr.bf16.gmra.mrb[148].mxu0 %v8549_v3 }
 0x3a1   :  { %5734 = vmatmul.mubr.bf16.gmra.mrb[148].mxu1 %v8549_v3  ;;  %7262 = vst [vmem:[#allocation9 + $0x250] sm:$0xff] %v8208_v22  ;;  %7886 = vmatprep.mubr.msk.bf16.mxu0 %vm3913_vm0, %v8554_v21 }
 0x3a2   :  { %7263 = vst [vmem:[#allocation9 + $0x258] sm:$0xff] %v8209_v12  ;;  %7900 = vmatprep.mubr.msk.bf16.mxu1 %vm3913_vm0, %v8554_v21 }
 0x3a3   :  { %v4554_v4 = vpop.f32.mrb[44].mxu0 }
 0x3a4   :  { %v4727_v20 = vpop.f32.mrb[44].mxu1  ;;  %v4556_v63 = vpop.f32.mrb[45].mxu0 }
 0x3a5   :  { %v4729_v37 = vpop.f32.mrb[45].mxu1  ;;  %v8210_v44 = vpack.c.bf16 %v4556_v63, %v4554_v4  ;;  %v4558_v62 = vpop.f32.mrb[46].mxu0 }
 0x3a6   :  { %v8211_v19 = vpack.c.bf16 %v4729_v37, %v4727_v20  ;;  %v4731_v59 = vpop.f32.mrb[46].mxu1  ;;  %v4560_v58 = vpop.f32.mrb[47].mxu0  ;;  %v8569_v20 = vld [vmem:[#allocation8 + $0x334] ss:$8 sps:$4 sm:$0xff]  }
 0x3a7   :  { %v4733_v6 = vpop.f32.mrb[47].mxu1  ;;  %7264 = vst [vmem:[#allocation9 + $0x260] sm:$0xff] %v8210_v44  ;;  %v8212_v14 = vpack.c.bf16 %v4560_v58, %v4558_v62  ;;  %v8567_v58 = vld [vmem:[#allocation8 + $0x330] ss:$8 sps:$4 sm:$0xff]  }
 0x3a8   :  { %7265 = vst [vmem:[#allocation9 + $0x268] sm:$0xff] %v8211_v19  ;;  %v8213_v13 = vpack.c.bf16 %v4733_v6, %v4731_v59  ;;  %5571 = vmatmul.mubr.bf16.gmra.mrb[152].mxu0 %v8552_v52 }
 0x3a9   :  { %5744 = vmatmul.mubr.bf16.gmra.mrb[152].mxu1 %v8552_v52  ;;  %7266 = vst [vmem:[#allocation9 + $0x270] sm:$0xff] %v8212_v14  ;;  %7887 = vmatprep.mubr.msk.bf16.mxu0 %vm3913_vm0, %v8557_v42 }
 0x3aa   :  { %7267 = vst [vmem:[#allocation9 + $0x278] sm:$0xff] %v8213_v13  ;;  %7901 = vmatprep.mubr.msk.bf16.mxu1 %vm3913_vm0, %v8557_v42 }
 0x3ab   :  { %v4564_v47 = vpop.f32.mrb[48].mxu0 }
 0x3ac   :  { %v4737_v7 = vpop.f32.mrb[48].mxu1  ;;  %v4566_v45 = vpop.f32.mrb[49].mxu0 }
 0x3ad   :  { %v4739_v28 = vpop.f32.mrb[49].mxu1  ;;  %v8214_v30 = vpack.c.bf16 %v4566_v45, %v4564_v47  ;;  %v4568_v26 = vpop.f32.mrb[50].mxu0 }
 0x3ae   :  { %v8215_v23 = vpack.c.bf16 %v4739_v28, %v4737_v7  ;;  %v4741_v54 = vpop.f32.mrb[50].mxu1  ;;  %v4570_v8 = vpop.f32.mrb[51].mxu0  ;;  %v8572_v7 = vld [vmem:[#allocation8 + $0x344] ss:$8 sps:$4 sm:$0xff]  }
 0x3af   :  { %v4743_v55 = vpop.f32.mrb[51].mxu1  ;;  %7268 = vst [vmem:[#allocation9 + $0x280] sm:$0xff] %v8214_v30  ;;  %v8216_v27 = vpack.c.bf16 %v4570_v8, %v4568_v26  ;;  %v8570_v8 = vld [vmem:[#allocation8 + $0x340] ss:$8 sps:$4 sm:$0xff]  }
 0x3b0   :  { %7269 = vst [vmem:[#allocation9 + $0x288] sm:$0xff] %v8215_v23  ;;  %v8217_v1 = vpack.c.bf16 %v4743_v55, %v4741_v54  ;;  %5581 = vmatmul.mubr.bf16.gmra.mrb[156].mxu0 %v8555_v46 }
 0x3b1   :  { %5754 = vmatmul.mubr.bf16.gmra.mrb[156].mxu1 %v8555_v46  ;;  %7270 = vst [vmem:[#allocation9 + $0x290] sm:$0xff] %v8216_v27  ;;  %7888 = vmatprep.mubr.msk.bf16.mxu0 %vm3913_vm0, %v8560_v16 }
 0x3b2   :  { %7271 = vst [vmem:[#allocation9 + $0x298] sm:$0xff] %v8217_v1  ;;  %7902 = vmatprep.mubr.msk.bf16.mxu1 %vm3913_vm0, %v8560_v16 }
 0x3b3   :  { %v4574_v36 = vpop.f32.mrb[52].mxu0 }
 0x3b4   :  { %v4747_v51 = vpop.f32.mrb[52].mxu1  ;;  %v4576_v24 = vpop.f32.mrb[53].mxu0 }
 0x3b5   :  { %v4749_v40 = vpop.f32.mrb[53].mxu1  ;;  %v8218_v35 = vpack.c.bf16 %v4576_v24, %v4574_v36  ;;  %v4578_v41 = vpop.f32.mrb[54].mxu0 }
 0x3b6   :  { %v8219_v43 = vpack.c.bf16 %v4749_v40, %v4747_v51  ;;  %v4751_v48 = vpop.f32.mrb[54].mxu1  ;;  %v4580_v32 = vpop.f32.mrb[55].mxu0  ;;  %v8575_v51 = vld [vmem:[#allocation8 + $0x354] ss:$8 sps:$4 sm:$0xff]  }
 0x3b7   :  { %v4753_v5 = vpop.f32.mrb[55].mxu1  ;;  %7272 = vst [vmem:[#allocation9 + $0x2a0] sm:$0xff] %v8218_v35  ;;  %v8220_v53 = vpack.c.bf16 %v4580_v32, %v4578_v41  ;;  %v8573_v32 = vld [vmem:[#allocation8 + $0x350] ss:$8 sps:$4 sm:$0xff]  }
 0x3b8   :  { %7273 = vst [vmem:[#allocation9 + $0x2a8] sm:$0xff] %v8219_v43  ;;  %v8221_v31 = vpack.c.bf16 %v4753_v5, %v4751_v48  ;;  %5591 = vmatmul.mubr.bf16.gmra.mrb[160].mxu0 %v8558_v18 }
 0x3b9   :  { %5764 = vmatmul.mubr.bf16.gmra.mrb[160].mxu1 %v8558_v18  ;;  %7274 = vst [vmem:[#allocation9 + $0x2b0] sm:$0xff] %v8220_v53  ;;  %7889 = vmatprep.mubr.msk.bf16.mxu0 %vm3913_vm0, %v8563_v50 }
 0x3ba   :  { %7275 = vst [vmem:[#allocation9 + $0x2b8] sm:$0xff] %v8221_v31  ;;  %7903 = vmatprep.mubr.msk.bf16.mxu1 %vm3913_vm0, %v8563_v50 }
 0x3bb   :  { %v4584_v33 = vpop.f32.mrb[56].mxu0 }
 0x3bc   :  { %v4757_v38 = vpop.f32.mrb[56].mxu1  ;;  %v4586_v34 = vpop.f32.mrb[57].mxu0 }
 0x3bd   :  { %v4759_v56 = vpop.f32.mrb[57].mxu1  ;;  %v8222_v10 = vpack.c.bf16 %v4586_v34, %v4584_v33  ;;  %v4588_v0 = vpop.f32.mrb[58].mxu0 }
 0x3be   :  { %v8223_v2 = vpack.c.bf16 %v4759_v56, %v4757_v38  ;;  %v4761_v49 = vpop.f32.mrb[58].mxu1  ;;  %v4590_v29 = vpop.f32.mrb[59].mxu0  ;;  %v8578_v38 = vld [vmem:[#allocation8 + $0x364] ss:$8 sps:$4 sm:$0xff]  }
 0x3bf   :  { %v4763_v17 = vpop.f32.mrb[59].mxu1  ;;  %7276 = vst [vmem:[#allocation9 + $0x2c0] sm:$0xff] %v8222_v10  ;;  %v8224_v3 = vpack.c.bf16 %v4590_v29, %v4588_v0  ;;  %v8576_v29 = vld [vmem:[#allocation8 + $0x360] ss:$8 sps:$4 sm:$0xff]  }
 0x3c0   :  { %7277 = vst [vmem:[#allocation9 + $0x2c8] sm:$0xff] %v8223_v2  ;;  %v8225_v57 = vpack.c.bf16 %v4763_v17, %v4761_v49  ;;  %5601 = vmatmul.mubr.bf16.gmra.mrb[164].mxu0 %v8561_v61 }
 0x3c1   :  { %5774 = vmatmul.mubr.bf16.gmra.mrb[164].mxu1 %v8561_v61  ;;  %7278 = vst [vmem:[#allocation9 + $0x2d0] sm:$0xff] %v8224_v3  ;;  %7890 = vmatprep.mubr.msk.bf16.mxu0 %vm3913_vm0, %v8566_v9 }
 0x3c2   :  { %7279 = vst [vmem:[#allocation9 + $0x2d8] sm:$0xff] %v8225_v57  ;;  %7904 = vmatprep.mubr.msk.bf16.mxu1 %vm3913_vm0, %v8566_v9 }
 0x3c3   :  { %v4594_v25 = vpop.f32.mrb[60].mxu0 }
 0x3c4   :  { %v4767_v15 = vpop.f32.mrb[60].mxu1  ;;  %v4596_v39 = vpop.f32.mrb[61].mxu0 }
 0x3c5   :  { %v4769_v21 = vpop.f32.mrb[61].mxu1  ;;  %v8226_v11 = vpack.c.bf16 %v4596_v39, %v4594_v25  ;;  %v4598_v12 = vpop.f32.mrb[62].mxu0 }
 0x3c6   :  { %v8227_v22 = vpack.c.bf16 %v4769_v21, %v4767_v15  ;;  %v4771_v4 = vpop.f32.mrb[62].mxu1  ;;  %v4600_v63 = vpop.f32.mrb[63].mxu0  ;;  %v8581_v15 = vld [vmem:[#allocation8 + $0x374] ss:$8 sps:$4 sm:$0xff]  }
 0x3c7   :  { %v4773_v37 = vpop.f32.mrb[63].mxu1  ;;  %7280 = vst [vmem:[#allocation9 + $0x2e0] sm:$0xff] %v8226_v11  ;;  %v8228_v52 = vpack.c.bf16 %v4600_v63, %v4598_v12  ;;  %v8579_v63 = vld [vmem:[#allocation8 + $0x370] ss:$8 sps:$4 sm:$0xff]  }
 0x3c8   :  { %7281 = vst [vmem:[#allocation9 + $0x2e8] sm:$0xff] %v8227_v22  ;;  %v8229_v44 = vpack.c.bf16 %v4773_v37, %v4771_v4  ;;  %5611 = vmatmul.mubr.bf16.gmra.mrb[168].mxu0 %v8564_v60 }
 0x3c9   :  { %5784 = vmatmul.mubr.bf16.gmra.mrb[168].mxu1 %v8564_v60  ;;  %7282 = vst [vmem:[#allocation9 + $0x2f0] sm:$0xff] %v8228_v52  ;;  %7891 = vmatprep.mubr.msk.bf16.mxu0 %vm3913_vm0, %v8569_v20 }
 0x3ca   :  { %7283 = vst [vmem:[#allocation9 + $0x2f8] sm:$0xff] %v8229_v44  ;;  %7905 = vmatprep.mubr.msk.bf16.mxu1 %vm3913_vm0, %v8569_v20 }
 0x3cb   :  { %v4604_v19 = vpop.f32.mrb[64].mxu0 }
 0x3cc   :  { %v4777_v62 = vpop.f32.mrb[64].mxu1  ;;  %v4606_v59 = vpop.f32.mrb[65].mxu0 }
 0x3cd   :  { %v4779_v42 = vpop.f32.mrb[65].mxu1  ;;  %v8230_v6 = vpack.c.bf16 %v4606_v59, %v4604_v19  ;;  %v4608_v13 = vpop.f32.mrb[66].mxu0 }
 0x3ce   :  { %v8231_v14 = vpack.c.bf16 %v4779_v42, %v4777_v62  ;;  %v4781_v47 = vpop.f32.mrb[66].mxu1  ;;  %v4610_v45 = vpop.f32.mrb[67].mxu0 }
 0x3cf   :  { %v4783_v28 = vpop.f32.mrb[67].mxu1  ;;  %7284 = vst [vmem:[#allocation9 + $0x300] sm:$0xff] %v8230_v6  ;;  %v8232_v46 = vpack.c.bf16 %v4610_v45, %v4608_v13 }
 0x3d0   :  { %7285 = vst [vmem:[#allocation9 + $0x308] sm:$0xff] %v8231_v14  ;;  %v8233_v30 = vpack.c.bf16 %v4783_v28, %v4781_v47  ;;  %5621 = vmatmul.mubr.bf16.gmra.mrb[172].mxu0 %v8567_v58 }
 0x3d1   :  { %5794 = vmatmul.mubr.bf16.gmra.mrb[172].mxu1 %v8567_v58  ;;  %7286 = vst [vmem:[#allocation9 + $0x310] sm:$0xff] %v8232_v46  ;;  %7892 = vmatprep.mubr.msk.bf16.mxu0 %vm3913_vm0, %v8572_v7 }
 0x3d2   :  { %7287 = vst [vmem:[#allocation9 + $0x318] sm:$0xff] %v8233_v30  ;;  %7906 = vmatprep.mubr.msk.bf16.mxu1 %vm3913_vm0, %v8572_v7 }
 0x3d3   :  { %v4614_v23 = vpop.f32.mrb[68].mxu0 }
 0x3d4   :  { %v4787_v26 = vpop.f32.mrb[68].mxu1  ;;  %v4616_v54 = vpop.f32.mrb[69].mxu0 }
 0x3d5   :  { %v4789_v16 = vpop.f32.mrb[69].mxu1  ;;  %v8234_v55 = vpack.c.bf16 %v4616_v54, %v4614_v23  ;;  %v4618_v1 = vpop.f32.mrb[70].mxu0 }
 0x3d6   :  { %v8235_v27 = vpack.c.bf16 %v4789_v16, %v4787_v26  ;;  %v4791_v36 = vpop.f32.mrb[70].mxu1  ;;  %v4620_v24 = vpop.f32.mrb[71].mxu0 }
 0x3d7   :  { %v4793_v40 = vpop.f32.mrb[71].mxu1  ;;  %7288 = vst [vmem:[#allocation9 + $0x320] sm:$0xff] %v8234_v55  ;;  %v8236_v18 = vpack.c.bf16 %v4620_v24, %v4618_v1 }
 0x3d8   :  { %7289 = vst [vmem:[#allocation9 + $0x328] sm:$0xff] %v8235_v27  ;;  %v8237_v35 = vpack.c.bf16 %v4793_v40, %v4791_v36  ;;  %5631 = vmatmul.mubr.bf16.gmra.mrb[176].mxu0 %v8570_v8 }
 0x3d9   :  { %5804 = vmatmul.mubr.bf16.gmra.mrb[176].mxu1 %v8570_v8  ;;  %7290 = vst [vmem:[#allocation9 + $0x330] sm:$0xff] %v8236_v18  ;;  %7893 = vmatprep.mubr.msk.bf16.mxu0 %vm3913_vm0, %v8575_v51 }
 0x3da   :  { %7291 = vst [vmem:[#allocation9 + $0x338] sm:$0xff] %v8237_v35  ;;  %7907 = vmatprep.mubr.msk.bf16.mxu1 %vm3913_vm0, %v8575_v51 }
 0x3db   :  { %v4624_v43 = vpop.f32.mrb[72].mxu0 }
 0x3dc   :  { %v4797_v41 = vpop.f32.mrb[72].mxu1  ;;  %v4626_v48 = vpop.f32.mrb[73].mxu0 }
 0x3dd   :  { %v4799_v50 = vpop.f32.mrb[73].mxu1  ;;  %v8238_v5 = vpack.c.bf16 %v4626_v48, %v4624_v43  ;;  %v4628_v31 = vpop.f32.mrb[74].mxu0 }
 0x3de   :  { %v8239_v53 = vpack.c.bf16 %v4799_v50, %v4797_v41  ;;  %v4801_v33 = vpop.f32.mrb[74].mxu1  ;;  %v4630_v34 = vpop.f32.mrb[75].mxu0 }
 0x3df   :  { %v4803_v56 = vpop.f32.mrb[75].mxu1  ;;  %7292 = vst [vmem:[#allocation9 + $0x340] sm:$0xff] %v8238_v5  ;;  %v8240_v61 = vpack.c.bf16 %v4630_v34, %v4628_v31 }
 0x3e0   :  { %7293 = vst [vmem:[#allocation9 + $0x348] sm:$0xff] %v8239_v53  ;;  %v8241_v10 = vpack.c.bf16 %v4803_v56, %v4801_v33  ;;  %5641 = vmatmul.mubr.bf16.gmra.mrb[180].mxu0 %v8573_v32 }
 0x3e1   :  { %5814 = vmatmul.mubr.bf16.gmra.mrb[180].mxu1 %v8573_v32  ;;  %7294 = vst [vmem:[#allocation9 + $0x350] sm:$0xff] %v8240_v61  ;;  %7894 = vmatprep.mubr.msk.bf16.mxu0 %vm3913_vm0, %v8578_v38 }
 0x3e2   :  { %7295 = vst [vmem:[#allocation9 + $0x358] sm:$0xff] %v8241_v10  ;;  %7908 = vmatprep.mubr.msk.bf16.mxu1 %vm3913_vm0, %v8578_v38 }
 0x3e3   :  { %v4634_v2 = vpop.f32.mrb[76].mxu0 }
 0x3e4   :  { %v4807_v0 = vpop.f32.mrb[76].mxu1  ;;  %v4636_v49 = vpop.f32.mrb[77].mxu0 }
 0x3e5   :  { %v4809_v9 = vpop.f32.mrb[77].mxu1  ;;  %v8242_v17 = vpack.c.bf16 %v4636_v49, %v4634_v2  ;;  %v4638_v57 = vpop.f32.mrb[78].mxu0 }
 0x3e6   :  { %v8243_v3 = vpack.c.bf16 %v4809_v9, %v4807_v0  ;;  %v4811_v25 = vpop.f32.mrb[78].mxu1  ;;  %v4640_v39 = vpop.f32.mrb[79].mxu0 }
 0x3e7   :  { %v4813_v21 = vpop.f32.mrb[79].mxu1  ;;  %7296 = vst [vmem:[#allocation9 + $0x360] sm:$0xff] %v8242_v17  ;;  %v8244_v60 = vpack.c.bf16 %v4640_v39, %v4638_v57 }
 0x3e8   :  { %7297 = vst [vmem:[#allocation9 + $0x368] sm:$0xff] %v8243_v3  ;;  %v8245_v11 = vpack.c.bf16 %v4813_v21, %v4811_v25  ;;  %5651 = vmatmul.mubr.bf16.gmra.mrb[184].mxu0 %v8576_v29 }
 0x3e9   :  { %5824 = vmatmul.mubr.bf16.gmra.mrb[184].mxu1 %v8576_v29  ;;  %7298 = vst [vmem:[#allocation9 + $0x370] sm:$0xff] %v8244_v60  ;;  %7895 = vmatprep.mubr.msk.bf16.mxu0 %vm3913_vm0, %v8581_v15 }
 0x3ea   :  { %7299 = vst [vmem:[#allocation9 + $0x378] sm:$0xff] %v8245_v11  ;;  %7909 = vmatprep.mubr.msk.bf16.mxu1 %vm3913_vm0, %v8581_v15 }
 0x3eb   :  { %v5018_v22 = vpop.f32.mrb[80].mxu0 }
 0x3ec   :  { %v5191_v12 = vpop.f32.mrb[80].mxu1  ;;  %v5020_v4 = vpop.f32.mrb[81].mxu0 }
 0x3ed   :  { %v5193_v20 = vpop.f32.mrb[81].mxu1  ;;  %v8246_v37 = vpack.c.bf16 %v5020_v4, %v5018_v22  ;;  %v5022_v44 = vpop.f32.mrb[82].mxu0 }
 0x3ee   :  { %v8247_v52 = vpack.c.bf16 %v5193_v20, %v5191_v12  ;;  %v5195_v19 = vpop.f32.mrb[82].mxu1  ;;  %v5024_v62 = vpop.f32.mrb[83].mxu0 }
 0x3ef   :  { %v5197_v59 = vpop.f32.mrb[83].mxu1  ;;  %7300 = vst [vmem:[#allocation9 + $0x380] sm:$0xff] %v8246_v37  ;;  %v8248_v42 = vpack.c.bf16 %v5024_v62, %v5022_v44 }
 0x3f0   :  { %7301 = vst [vmem:[#allocation9 + $0x388] sm:$0xff] %v8247_v52  ;;  %v8249_v58 = vpack.c.bf16 %v5197_v59, %v5195_v19  ;;  %5661 = vmatmul.mubr.bf16.gmra.mrb[188].mxu0 %v8579_v63 }
 0x3f1   :  { %5834 = vmatmul.mubr.bf16.gmra.mrb[188].mxu1 %v8579_v63  ;;  %7302 = vst [vmem:[#allocation9 + $0x390] sm:$0xff] %v8248_v42 }
 0x3f2   :  { %7303 = vst [vmem:[#allocation9 + $0x398] sm:$0xff] %v8249_v58 }
 0x3f3   :  { %v5028_v6 = vpop.f32.mrb[84].mxu0 }
 0x3f4   :  { %v5201_v14 = vpop.f32.mrb[84].mxu1  ;;  %v5030_v13 = vpop.f32.mrb[85].mxu0 }
 0x3f5   :  { %v5203_v47 = vpop.f32.mrb[85].mxu1  ;;  %v8250_v7 = vpack.c.bf16 %v5030_v13, %v5028_v6  ;;  %v5032_v28 = vpop.f32.mrb[86].mxu0 }
 0x3f6   :  { %v8251_v45 = vpack.c.bf16 %v5203_v47, %v5201_v14  ;;  %v5205_v46 = vpop.f32.mrb[86].mxu1  ;;  %v5034_v30 = vpop.f32.mrb[87].mxu0 }
 0x3f7   :  { %v5207_v23 = vpop.f32.mrb[87].mxu1  ;;  %7304 = vst [vmem:[#allocation9 + $0x3a0] sm:$0xff] %v8250_v7  ;;  %v8252_v26 = vpack.c.bf16 %v5034_v30, %v5032_v28 }
 0x3f8   :  { %7305 = vst [vmem:[#allocation9 + $0x3a8] sm:$0xff] %v8251_v45  ;;  %v8253_v54 = vpack.c.bf16 %v5207_v23, %v5205_v46 }
 0x3f9   :  { %7306 = vst [vmem:[#allocation9 + $0x3b0] sm:$0xff] %v8252_v26 }
 0x3fa   :  { %7307 = vst [vmem:[#allocation9 + $0x3b8] sm:$0xff] %v8253_v54 }
 0x3fb   :  { %v5038_v16 = vpop.f32.mrb[88].mxu0 }
 0x3fc   :  { %v5211_v8 = vpop.f32.mrb[88].mxu1  ;;  %v5040_v55 = vpop.f32.mrb[89].mxu0 }
 0x3fd   :  { %v5213_v27 = vpop.f32.mrb[89].mxu1  ;;  %v8254_v1 = vpack.c.bf16 %v5040_v55, %v5038_v16  ;;  %v5042_v51 = vpop.f32.mrb[90].mxu0 }
 0x3fe   :  { %v8255_v36 = vpack.c.bf16 %v5213_v27, %v5211_v8  ;;  %v5215_v24 = vpop.f32.mrb[90].mxu1  ;;  %v5044_v40 = vpop.f32.mrb[91].mxu0 }
 0x3ff   :  { %v5217_v18 = vpop.f32.mrb[91].mxu1  ;;  %7308 = vst [vmem:[#allocation9 + $0x3c0] sm:$0xff] %v8254_v1  ;;  %v8256_v35 = vpack.c.bf16 %v5044_v40, %v5042_v51 }
 0x400   :  { %7309 = vst [vmem:[#allocation9 + $0x3c8] sm:$0xff] %v8255_v36  ;;  %v8257_v43 = vpack.c.bf16 %v5217_v18, %v5215_v24 }
 0x401   :  { %7310 = vst [vmem:[#allocation9 + $0x3d0] sm:$0xff] %v8256_v35 }
 0x402   :  { %7311 = vst [vmem:[#allocation9 + $0x3d8] sm:$0xff] %v8257_v43 }
 0x403   :  { %v5048_v41 = vpop.f32.mrb[92].mxu0 }
 0x404   :  { %v5221_v48 = vpop.f32.mrb[92].mxu1  ;;  %v5050_v50 = vpop.f32.mrb[93].mxu0 }
 0x405   :  { %v5223_v32 = vpop.f32.mrb[93].mxu1  ;;  %v8258_v5 = vpack.c.bf16 %v5050_v50, %v5048_v41  ;;  %v5052_v31 = vpop.f32.mrb[94].mxu0 }
 0x406   :  { %v8259_v53 = vpack.c.bf16 %v5223_v32, %v5221_v48  ;;  %v5225_v33 = vpop.f32.mrb[94].mxu1  ;;  %v5054_v38 = vpop.f32.mrb[95].mxu0 }
 0x407   :  { %v5227_v34 = vpop.f32.mrb[95].mxu1  ;;  %7312 = vst [vmem:[#allocation9 + $0x3e0] sm:$0xff] %v8258_v5  ;;  %v8260_v56 = vpack.c.bf16 %v5054_v38, %v5052_v31 }
 0x408   :  { %7313 = vst [vmem:[#allocation9 + $0x3e8] sm:$0xff] %v8259_v53  ;;  %v8261_v61 = vpack.c.bf16 %v5227_v34, %v5225_v33 }
 0x409   :  { %7314 = vst [vmem:[#allocation9 + $0x3f0] sm:$0xff] %v8260_v56 }
 0x40a   :  { %7315 = vst [vmem:[#allocation9 + $0x3f8] sm:$0xff] %v8261_v61 }
 0x40b   :  { %v5058_v10 = vpop.f32.mrb[96].mxu0 }
 0x40c   :  { %v5231_v2 = vpop.f32.mrb[96].mxu1  ;;  %v5060_v0 = vpop.f32.mrb[97].mxu0 }
 0x40d   :  { %v5233_v49 = vpop.f32.mrb[97].mxu1  ;;  %v8262_v9 = vpack.c.bf16 %v5060_v0, %v5058_v10  ;;  %v5062_v17 = vpop.f32.mrb[98].mxu0 }
 0x40e   :  { %v8263_v29 = vpack.c.bf16 %v5233_v49, %v5231_v2  ;;  %v5235_v3 = vpop.f32.mrb[98].mxu1  ;;  %v5064_v57 = vpop.f32.mrb[99].mxu0 }
 0x40f   :  { %v5237_v25 = vpop.f32.mrb[99].mxu1  ;;  %7316 = vst [vmem:[#allocation9 + $0x400] sm:$0xff] %v8262_v9  ;;  %v8264_v15 = vpack.c.bf16 %v5064_v57, %v5062_v17 }
 0x410   :  { %7317 = vst [vmem:[#allocation9 + $0x408] sm:$0xff] %v8263_v29  ;;  %v8265_v39 = vpack.c.bf16 %v5237_v25, %v5235_v3 }
 0x411   :  { %7318 = vst [vmem:[#allocation9 + $0x410] sm:$0xff] %v8264_v15 }
 0x412   :  { %7319 = vst [vmem:[#allocation9 + $0x418] sm:$0xff] %v8265_v39 }
 0x413   :  { %v5068_v21 = vpop.f32.mrb[100].mxu0 }
 0x414   :  { %v5241_v60 = vpop.f32.mrb[100].mxu1  ;;  %v5070_v11 = vpop.f32.mrb[101].mxu0 }
 0x415   :  { %v5243_v22 = vpop.f32.mrb[101].mxu1  ;;  %v8266_v12 = vpack.c.bf16 %v5070_v11, %v5068_v21  ;;  %v5072_v20 = vpop.f32.mrb[102].mxu0 }
 0x416   :  { %v8267_v4 = vpack.c.bf16 %v5243_v22, %v5241_v60  ;;  %v5245_v63 = vpop.f32.mrb[102].mxu1  ;;  %v5074_v37 = vpop.f32.mrb[103].mxu0 }
 0x417   :  { %v5247_v52 = vpop.f32.mrb[103].mxu1  ;;  %7320 = vst [vmem:[#allocation9 + $0x420] sm:$0xff] %v8266_v12  ;;  %v8268_v44 = vpack.c.bf16 %v5074_v37, %v5072_v20 }
 0x418   :  { %7321 = vst [vmem:[#allocation9 + $0x428] sm:$0xff] %v8267_v4  ;;  %v8269_v19 = vpack.c.bf16 %v5247_v52, %v5245_v63 }
 0x419   :  { %7322 = vst [vmem:[#allocation9 + $0x430] sm:$0xff] %v8268_v44 }
 0x41a   :  { %7323 = vst [vmem:[#allocation9 + $0x438] sm:$0xff] %v8269_v19 }
 0x41b   :  { %v5078_v62 = vpop.f32.mrb[104].mxu0 }
 0x41c   :  { %v5251_v59 = vpop.f32.mrb[104].mxu1  ;;  %v5080_v42 = vpop.f32.mrb[105].mxu0 }
 0x41d   :  { %v5253_v58 = vpop.f32.mrb[105].mxu1  ;;  %v8270_v6 = vpack.c.bf16 %v5080_v42, %v5078_v62  ;;  %v5082_v13 = vpop.f32.mrb[106].mxu0 }
 0x41e   :  { %v8271_v14 = vpack.c.bf16 %v5253_v58, %v5251_v59  ;;  %v5255_v47 = vpop.f32.mrb[106].mxu1  ;;  %v5084_v7 = vpop.f32.mrb[107].mxu0 }
 0x41f   :  { %v5257_v45 = vpop.f32.mrb[107].mxu1  ;;  %7324 = vst [vmem:[#allocation9 + $0x440] sm:$0xff] %v8270_v6  ;;  %v8272_v28 = vpack.c.bf16 %v5084_v7, %v5082_v13 }
 0x420   :  { %7325 = vst [vmem:[#allocation9 + $0x448] sm:$0xff] %v8271_v14  ;;  %v8273_v46 = vpack.c.bf16 %v5257_v45, %v5255_v47 }
 0x421   :  { %7326 = vst [vmem:[#allocation9 + $0x450] sm:$0xff] %v8272_v28 }
 0x422   :  { %7327 = vst [vmem:[#allocation9 + $0x458] sm:$0xff] %v8273_v46 }
 0x423   :  { %v5088_v30 = vpop.f32.mrb[108].mxu0 }
 0x424   :  { %v5261_v23 = vpop.f32.mrb[108].mxu1  ;;  %v5090_v26 = vpop.f32.mrb[109].mxu0 }
 0x425   :  { %v5263_v54 = vpop.f32.mrb[109].mxu1  ;;  %v8274_v16 = vpack.c.bf16 %v5090_v26, %v5088_v30  ;;  %v5092_v55 = vpop.f32.mrb[110].mxu0 }
 0x426   :  { %v8275_v8 = vpack.c.bf16 %v5263_v54, %v5261_v23  ;;  %v5265_v27 = vpop.f32.mrb[110].mxu1  ;;  %v5094_v1 = vpop.f32.mrb[111].mxu0 }
 0x427   :  { %v5267_v36 = vpop.f32.mrb[111].mxu1  ;;  %7328 = vst [vmem:[#allocation9 + $0x460] sm:$0xff] %v8274_v16  ;;  %v8276_v51 = vpack.c.bf16 %v5094_v1, %v5092_v55 }
 0x428   :  { %7329 = vst [vmem:[#allocation9 + $0x468] sm:$0xff] %v8275_v8  ;;  %v8277_v24 = vpack.c.bf16 %v5267_v36, %v5265_v27 }
 0x429   :  { %7330 = vst [vmem:[#allocation9 + $0x470] sm:$0xff] %v8276_v51 }
 0x42a   :  { %7331 = vst [vmem:[#allocation9 + $0x478] sm:$0xff] %v8277_v24 }
 0x42b   :  { %v5098_v40 = vpop.f32.mrb[112].mxu0 }
 0x42c   :  { %v5271_v18 = vpop.f32.mrb[112].mxu1  ;;  %v5100_v35 = vpop.f32.mrb[113].mxu0 }
 0x42d   :  { %v5273_v43 = vpop.f32.mrb[113].mxu1  ;;  %v8278_v41 = vpack.c.bf16 %v5100_v35, %v5098_v40  ;;  %v5102_v50 = vpop.f32.mrb[114].mxu0 }
 0x42e   :  { %v8279_v48 = vpack.c.bf16 %v5273_v43, %v5271_v18  ;;  %v5275_v32 = vpop.f32.mrb[114].mxu1  ;;  %v5104_v5 = vpop.f32.mrb[115].mxu0 }
 0x42f   :  { %v5277_v53 = vpop.f32.mrb[115].mxu1  ;;  %7332 = vst [vmem:[#allocation9 + $0x480] sm:$0xff] %v8278_v41  ;;  %v8280_v31 = vpack.c.bf16 %v5104_v5, %v5102_v50 }
 0x430   :  { %7333 = vst [vmem:[#allocation9 + $0x488] sm:$0xff] %v8279_v48  ;;  %v8281_v33 = vpack.c.bf16 %v5277_v53, %v5275_v32 }
 0x431   :  { %7334 = vst [vmem:[#allocation9 + $0x490] sm:$0xff] %v8280_v31 }
 0x432   :  { %7335 = vst [vmem:[#allocation9 + $0x498] sm:$0xff] %v8281_v33 }
 0x433   :  { %v5108_v38 = vpop.f32.mrb[116].mxu0 }
 0x434   :  { %v5281_v34 = vpop.f32.mrb[116].mxu1  ;;  %v5110_v56 = vpop.f32.mrb[117].mxu0 }
 0x435   :  { %v5283_v61 = vpop.f32.mrb[117].mxu1  ;;  %v8282_v10 = vpack.c.bf16 %v5110_v56, %v5108_v38  ;;  %v5112_v0 = vpop.f32.mrb[118].mxu0 }
 0x436   :  { %v8283_v2 = vpack.c.bf16 %v5283_v61, %v5281_v34  ;;  %v5285_v49 = vpop.f32.mrb[118].mxu1  ;;  %v5114_v9 = vpop.f32.mrb[119].mxu0 }
 0x437   :  { %v5287_v29 = vpop.f32.mrb[119].mxu1  ;;  %7336 = vst [vmem:[#allocation9 + $0x4a0] sm:$0xff] %v8282_v10  ;;  %v8284_v17 = vpack.c.bf16 %v5114_v9, %v5112_v0 }
 0x438   :  { %7337 = vst [vmem:[#allocation9 + $0x4a8] sm:$0xff] %v8283_v2  ;;  %v8285_v3 = vpack.c.bf16 %v5287_v29, %v5285_v49 }
 0x439   :  { %7338 = vst [vmem:[#allocation9 + $0x4b0] sm:$0xff] %v8284_v17 }
 0x43a   :  { %7339 = vst [vmem:[#allocation9 + $0x4b8] sm:$0xff] %v8285_v3 }
 0x43b   :  { %v5118_v57 = vpop.f32.mrb[120].mxu0 }
 0x43c   :  { %v5291_v25 = vpop.f32.mrb[120].mxu1  ;;  %v5120_v15 = vpop.f32.mrb[121].mxu0 }
 0x43d   :  { %v5293_v39 = vpop.f32.mrb[121].mxu1  ;;  %v8286_v21 = vpack.c.bf16 %v5120_v15, %v5118_v57  ;;  %v5122_v11 = vpop.f32.mrb[122].mxu0 }
 0x43e   :  { %v8287_v60 = vpack.c.bf16 %v5293_v39, %v5291_v25  ;;  %v5295_v22 = vpop.f32.mrb[122].mxu1  ;;  %v5124_v12 = vpop.f32.mrb[123].mxu0 }
 0x43f   :  { %v5297_v4 = vpop.f32.mrb[123].mxu1  ;;  %7340 = vst [vmem:[#allocation9 + $0x4c0] sm:$0xff] %v8286_v21  ;;  %v8288_v20 = vpack.c.bf16 %v5124_v12, %v5122_v11 }
 0x440   :  { %7341 = vst [vmem:[#allocation9 + $0x4c8] sm:$0xff] %v8287_v60  ;;  %v8289_v63 = vpack.c.bf16 %v5297_v4, %v5295_v22 }
 0x441   :  { %7342 = vst [vmem:[#allocation9 + $0x4d0] sm:$0xff] %v8288_v20 }
 0x442   :  { %7343 = vst [vmem:[#allocation9 + $0x4d8] sm:$0xff] %v8289_v63 }
 0x443   :  { %v5128_v37 = vpop.f32.mrb[124].mxu0 }
 0x444   :  { %v5301_v52 = vpop.f32.mrb[124].mxu1  ;;  %v5130_v44 = vpop.f32.mrb[125].mxu0 }
 0x445   :  { %v5303_v19 = vpop.f32.mrb[125].mxu1  ;;  %v8290_v62 = vpack.c.bf16 %v5130_v44, %v5128_v37  ;;  %v5132_v42 = vpop.f32.mrb[126].mxu0 }
 0x446   :  { %v8291_v59 = vpack.c.bf16 %v5303_v19, %v5301_v52  ;;  %v5305_v58 = vpop.f32.mrb[126].mxu1  ;;  %v5134_v6 = vpop.f32.mrb[127].mxu0 }
 0x447   :  { %v5307_v14 = vpop.f32.mrb[127].mxu1  ;;  %7344 = vst [vmem:[#allocation9 + $0x4e0] sm:$0xff] %v8290_v62  ;;  %v8292_v13 = vpack.c.bf16 %v5134_v6, %v5132_v42 }
 0x448   :  { %7345 = vst [vmem:[#allocation9 + $0x4e8] sm:$0xff] %v8291_v59  ;;  %v8293_v47 = vpack.c.bf16 %v5307_v14, %v5305_v58 }
 0x449   :  { %7346 = vst [vmem:[#allocation9 + $0x4f0] sm:$0xff] %v8292_v13 }
 0x44a   :  { %7347 = vst [vmem:[#allocation9 + $0x4f8] sm:$0xff] %v8293_v47 }
 0x44b   :  { %v5138_v7 = vpop.f32.mrb[128].mxu0 }
 0x44c   :  { %v5311_v45 = vpop.f32.mrb[128].mxu1  ;;  %v5140_v28 = vpop.f32.mrb[129].mxu0 }
 0x44d   :  { %v5313_v46 = vpop.f32.mrb[129].mxu1  ;;  %v8294_v30 = vpack.c.bf16 %v5140_v28, %v5138_v7  ;;  %v5142_v26 = vpop.f32.mrb[130].mxu0 }
 0x44e   :  { %v8295_v23 = vpack.c.bf16 %v5313_v46, %v5311_v45  ;;  %v5315_v54 = vpop.f32.mrb[130].mxu1  ;;  %v5144_v16 = vpop.f32.mrb[131].mxu0 }
 0x44f   :  { %v5317_v8 = vpop.f32.mrb[131].mxu1  ;;  %7348 = vst [vmem:[#allocation9 + $0x500] sm:$0xff] %v8294_v30  ;;  %v8296_v55 = vpack.c.bf16 %v5144_v16, %v5142_v26 }
 0x450   :  { %7349 = vst [vmem:[#allocation9 + $0x508] sm:$0xff] %v8295_v23  ;;  %v8297_v27 = vpack.c.bf16 %v5317_v8, %v5315_v54 }
 0x451   :  { %7350 = vst [vmem:[#allocation9 + $0x510] sm:$0xff] %v8296_v55 }
 0x452   :  { %7351 = vst [vmem:[#allocation9 + $0x518] sm:$0xff] %v8297_v27 }
 0x453   :  { %v5148_v1 = vpop.f32.mrb[132].mxu0 }
 0x454   :  { %v5321_v36 = vpop.f32.mrb[132].mxu1  ;;  %v5150_v51 = vpop.f32.mrb[133].mxu0 }
 0x455   :  { %v5323_v24 = vpop.f32.mrb[133].mxu1  ;;  %v8298_v40 = vpack.c.bf16 %v5150_v51, %v5148_v1  ;;  %v5152_v35 = vpop.f32.mrb[134].mxu0 }
 0x456   :  { %v8299_v18 = vpack.c.bf16 %v5323_v24, %v5321_v36  ;;  %v5325_v43 = vpop.f32.mrb[134].mxu1  ;;  %v5154_v41 = vpop.f32.mrb[135].mxu0 }
 0x457   :  { %v5327_v48 = vpop.f32.mrb[135].mxu1  ;;  %7352 = vst [vmem:[#allocation9 + $0x520] sm:$0xff] %v8298_v40  ;;  %v8300_v50 = vpack.c.bf16 %v5154_v41, %v5152_v35 }
 0x458   :  { %7353 = vst [vmem:[#allocation9 + $0x528] sm:$0xff] %v8299_v18  ;;  %v8301_v32 = vpack.c.bf16 %v5327_v48, %v5325_v43 }
 0x459   :  { %7354 = vst [vmem:[#allocation9 + $0x530] sm:$0xff] %v8300_v50 }
 0x45a   :  { %7355 = vst [vmem:[#allocation9 + $0x538] sm:$0xff] %v8301_v32 }
 0x45b   :  { %v5532_v5 = vpop.f32.mrb[136].mxu0 }
 0x45c   :  { %v5705_v53 = vpop.f32.mrb[136].mxu1  ;;  %v5534_v31 = vpop.f32.mrb[137].mxu0 }
 0x45d   :  { %v5707_v33 = vpop.f32.mrb[137].mxu1  ;;  %v8302_v38 = vpack.c.bf16 %v5534_v31, %v5532_v5  ;;  %v5536_v56 = vpop.f32.mrb[138].mxu0 }
 0x45e   :  { %v8303_v34 = vpack.c.bf16 %v5707_v33, %v5705_v53  ;;  %v5709_v61 = vpop.f32.mrb[138].mxu1  ;;  %v5538_v10 = vpop.f32.mrb[139].mxu0 }
 0x45f   :  { %v5711_v2 = vpop.f32.mrb[139].mxu1  ;;  %7356 = vst [vmem:[#allocation9 + $0x540] sm:$0xff] %v8302_v38  ;;  %v8304_v0 = vpack.c.bf16 %v5538_v10, %v5536_v56 }
 0x460   :  { %7357 = vst [vmem:[#allocation9 + $0x548] sm:$0xff] %v8303_v34  ;;  %v8305_v49 = vpack.c.bf16 %v5711_v2, %v5709_v61 }
 0x461   :  { %7358 = vst [vmem:[#allocation9 + $0x550] sm:$0xff] %v8304_v0 }
 0x462   :  { %7359 = vst [vmem:[#allocation9 + $0x558] sm:$0xff] %v8305_v49 }
 0x463   :  { %v5542_v9 = vpop.f32.mrb[140].mxu0 }
 0x464   :  { %v5715_v29 = vpop.f32.mrb[140].mxu1  ;;  %v5544_v17 = vpop.f32.mrb[141].mxu0 }
 0x465   :  { %v5717_v3 = vpop.f32.mrb[141].mxu1  ;;  %v8306_v57 = vpack.c.bf16 %v5544_v17, %v5542_v9  ;;  %v5546_v15 = vpop.f32.mrb[142].mxu0 }
 0x466   :  { %v8307_v25 = vpack.c.bf16 %v5717_v3, %v5715_v29  ;;  %v5719_v39 = vpop.f32.mrb[142].mxu1  ;;  %v5548_v21 = vpop.f32.mrb[143].mxu0 }
 0x467   :  { %v5721_v60 = vpop.f32.mrb[143].mxu1  ;;  %7360 = vst [vmem:[#allocation9 + $0x560] sm:$0xff] %v8306_v57  ;;  %v8308_v11 = vpack.c.bf16 %v5548_v21, %v5546_v15 }
 0x468   :  { %7361 = vst [vmem:[#allocation9 + $0x568] sm:$0xff] %v8307_v25  ;;  %v8309_v22 = vpack.c.bf16 %v5721_v60, %v5719_v39 }
 0x469   :  { %7362 = vst [vmem:[#allocation9 + $0x570] sm:$0xff] %v8308_v11 }
 0x46a   :  { %7363 = vst [vmem:[#allocation9 + $0x578] sm:$0xff] %v8309_v22 }
 0x46b   :  { %v5552_v12 = vpop.f32.mrb[144].mxu0 }
 0x46c   :  { %v5725_v4 = vpop.f32.mrb[144].mxu1  ;;  %v5554_v20 = vpop.f32.mrb[145].mxu0 }
 0x46d   :  { %v5727_v63 = vpop.f32.mrb[145].mxu1  ;;  %v8310_v37 = vpack.c.bf16 %v5554_v20, %v5552_v12  ;;  %v5556_v44 = vpop.f32.mrb[146].mxu0 }
 0x46e   :  { %v8311_v52 = vpack.c.bf16 %v5727_v63, %v5725_v4  ;;  %v5729_v19 = vpop.f32.mrb[146].mxu1  ;;  %v5558_v62 = vpop.f32.mrb[147].mxu0 }
 0x46f   :  { %v5731_v59 = vpop.f32.mrb[147].mxu1  ;;  %7364 = vst [vmem:[#allocation9 + $0x580] sm:$0xff] %v8310_v37  ;;  %v8312_v42 = vpack.c.bf16 %v5558_v62, %v5556_v44 }
 0x470   :  { %7365 = vst [vmem:[#allocation9 + $0x588] sm:$0xff] %v8311_v52  ;;  %v8313_v58 = vpack.c.bf16 %v5731_v59, %v5729_v19 }
 0x471   :  { %7366 = vst [vmem:[#allocation9 + $0x590] sm:$0xff] %v8312_v42 }
 0x472   :  { %7367 = vst [vmem:[#allocation9 + $0x598] sm:$0xff] %v8313_v58 }
 0x473   :  { %v5562_v6 = vpop.f32.mrb[148].mxu0 }
 0x474   :  { %v5735_v14 = vpop.f32.mrb[148].mxu1  ;;  %v5564_v13 = vpop.f32.mrb[149].mxu0 }
 0x475   :  { %v5737_v47 = vpop.f32.mrb[149].mxu1  ;;  %v8314_v7 = vpack.c.bf16 %v5564_v13, %v5562_v6  ;;  %v5566_v28 = vpop.f32.mrb[150].mxu0 }
 0x476   :  { %v8315_v45 = vpack.c.bf16 %v5737_v47, %v5735_v14  ;;  %v5739_v46 = vpop.f32.mrb[150].mxu1  ;;  %v5568_v30 = vpop.f32.mrb[151].mxu0 }
 0x477   :  { %v5741_v23 = vpop.f32.mrb[151].mxu1  ;;  %7368 = vst [vmem:[#allocation9 + $0x5a0] sm:$0xff] %v8314_v7  ;;  %v8316_v26 = vpack.c.bf16 %v5568_v30, %v5566_v28 }
 0x478   :  { %7369 = vst [vmem:[#allocation9 + $0x5a8] sm:$0xff] %v8315_v45  ;;  %v8317_v54 = vpack.c.bf16 %v5741_v23, %v5739_v46 }
 0x479   :  { %7370 = vst [vmem:[#allocation9 + $0x5b0] sm:$0xff] %v8316_v26 }
 0x47a   :  { %7371 = vst [vmem:[#allocation9 + $0x5b8] sm:$0xff] %v8317_v54 }
 0x47b   :  { %v5572_v16 = vpop.f32.mrb[152].mxu0 }
 0x47c   :  { %v5745_v8 = vpop.f32.mrb[152].mxu1  ;;  %v5574_v55 = vpop.f32.mrb[153].mxu0 }
 0x47d   :  { %v5747_v27 = vpop.f32.mrb[153].mxu1  ;;  %v8318_v1 = vpack.c.bf16 %v5574_v55, %v5572_v16  ;;  %v5576_v51 = vpop.f32.mrb[154].mxu0 }
 0x47e   :  { %v8319_v36 = vpack.c.bf16 %v5747_v27, %v5745_v8  ;;  %v5749_v24 = vpop.f32.mrb[154].mxu1  ;;  %v5578_v40 = vpop.f32.mrb[155].mxu0 }
 0x47f   :  { %v5751_v18 = vpop.f32.mrb[155].mxu1  ;;  %7372 = vst [vmem:[#allocation9 + $0x5c0] sm:$0xff] %v8318_v1  ;;  %v8320_v35 = vpack.c.bf16 %v5578_v40, %v5576_v51 }
 0x480   :  { %7373 = vst [vmem:[#allocation9 + $0x5c8] sm:$0xff] %v8319_v36  ;;  %v8321_v43 = vpack.c.bf16 %v5751_v18, %v5749_v24 }
 0x481   :  { %7374 = vst [vmem:[#allocation9 + $0x5d0] sm:$0xff] %v8320_v35 }
 0x482   :  { %7375 = vst [vmem:[#allocation9 + $0x5d8] sm:$0xff] %v8321_v43 }
 0x483   :  { %v5582_v41 = vpop.f32.mrb[156].mxu0 }
 0x484   :  { %v5755_v48 = vpop.f32.mrb[156].mxu1  ;;  %v5584_v50 = vpop.f32.mrb[157].mxu0 }
 0x485   :  { %v5757_v32 = vpop.f32.mrb[157].mxu1  ;;  %v8322_v5 = vpack.c.bf16 %v5584_v50, %v5582_v41  ;;  %v5586_v31 = vpop.f32.mrb[158].mxu0 }
 0x486   :  { %v8323_v53 = vpack.c.bf16 %v5757_v32, %v5755_v48  ;;  %v5759_v33 = vpop.f32.mrb[158].mxu1  ;;  %v5588_v38 = vpop.f32.mrb[159].mxu0 }
 0x487   :  { %v5761_v34 = vpop.f32.mrb[159].mxu1  ;;  %7376 = vst [vmem:[#allocation9 + $0x5e0] sm:$0xff] %v8322_v5  ;;  %v8324_v56 = vpack.c.bf16 %v5588_v38, %v5586_v31 }
 0x488   :  { %7377 = vst [vmem:[#allocation9 + $0x5e8] sm:$0xff] %v8323_v53  ;;  %v8325_v61 = vpack.c.bf16 %v5761_v34, %v5759_v33 }
 0x489   :  { %7378 = vst [vmem:[#allocation9 + $0x5f0] sm:$0xff] %v8324_v56 }
 0x48a   :  { %7379 = vst [vmem:[#allocation9 + $0x5f8] sm:$0xff] %v8325_v61 }
 0x48b   :  { %v5592_v10 = vpop.f32.mrb[160].mxu0 }
 0x48c   :  { %v5765_v2 = vpop.f32.mrb[160].mxu1  ;;  %v5594_v0 = vpop.f32.mrb[161].mxu0 }
 0x48d   :  { %v5767_v49 = vpop.f32.mrb[161].mxu1  ;;  %v8326_v9 = vpack.c.bf16 %v5594_v0, %v5592_v10  ;;  %v5596_v17 = vpop.f32.mrb[162].mxu0 }
 0x48e   :  { %v8327_v29 = vpack.c.bf16 %v5767_v49, %v5765_v2  ;;  %v5769_v3 = vpop.f32.mrb[162].mxu1  ;;  %v5598_v57 = vpop.f32.mrb[163].mxu0 }
 0x48f   :  { %v5771_v25 = vpop.f32.mrb[163].mxu1  ;;  %7380 = vst [vmem:[#allocation9 + $0x600] sm:$0xff] %v8326_v9  ;;  %v8328_v15 = vpack.c.bf16 %v5598_v57, %v5596_v17 }
 0x490   :  { %7381 = vst [vmem:[#allocation9 + $0x608] sm:$0xff] %v8327_v29  ;;  %v8329_v39 = vpack.c.bf16 %v5771_v25, %v5769_v3 }
 0x491   :  { %7382 = vst [vmem:[#allocation9 + $0x610] sm:$0xff] %v8328_v15 }
 0x492   :  { %7383 = vst [vmem:[#allocation9 + $0x618] sm:$0xff] %v8329_v39 }
 0x493   :  { %v5602_v21 = vpop.f32.mrb[164].mxu0 }
 0x494   :  { %v5775_v60 = vpop.f32.mrb[164].mxu1  ;;  %v5604_v11 = vpop.f32.mrb[165].mxu0 }
 0x495   :  { %v5777_v22 = vpop.f32.mrb[165].mxu1  ;;  %v8330_v12 = vpack.c.bf16 %v5604_v11, %v5602_v21  ;;  %v5606_v20 = vpop.f32.mrb[166].mxu0 }
 0x496   :  { %v8331_v4 = vpack.c.bf16 %v5777_v22, %v5775_v60  ;;  %v5779_v63 = vpop.f32.mrb[166].mxu1  ;;  %v5608_v37 = vpop.f32.mrb[167].mxu0 }
 0x497   :  { %v5781_v52 = vpop.f32.mrb[167].mxu1  ;;  %7384 = vst [vmem:[#allocation9 + $0x620] sm:$0xff] %v8330_v12  ;;  %v8332_v44 = vpack.c.bf16 %v5608_v37, %v5606_v20 }
 0x498   :  { %7385 = vst [vmem:[#allocation9 + $0x628] sm:$0xff] %v8331_v4  ;;  %v8333_v19 = vpack.c.bf16 %v5781_v52, %v5779_v63 }
 0x499   :  { %7386 = vst [vmem:[#allocation9 + $0x630] sm:$0xff] %v8332_v44 }
 0x49a   :  { %7387 = vst [vmem:[#allocation9 + $0x638] sm:$0xff] %v8333_v19 }
 0x49b   :  { %v5612_v62 = vpop.f32.mrb[168].mxu0 }
 0x49c   :  { %v5785_v59 = vpop.f32.mrb[168].mxu1  ;;  %v5614_v42 = vpop.f32.mrb[169].mxu0 }
 0x49d   :  { %v5787_v58 = vpop.f32.mrb[169].mxu1  ;;  %v8334_v6 = vpack.c.bf16 %v5614_v42, %v5612_v62  ;;  %v5616_v13 = vpop.f32.mrb[170].mxu0 }
 0x49e   :  { %v8335_v14 = vpack.c.bf16 %v5787_v58, %v5785_v59  ;;  %v5789_v47 = vpop.f32.mrb[170].mxu1  ;;  %v5618_v7 = vpop.f32.mrb[171].mxu0 }
 0x49f   :  { %v5791_v45 = vpop.f32.mrb[171].mxu1  ;;  %7388 = vst [vmem:[#allocation9 + $0x640] sm:$0xff] %v8334_v6  ;;  %v8336_v28 = vpack.c.bf16 %v5618_v7, %v5616_v13 }
 0x4a0   :  { %7389 = vst [vmem:[#allocation9 + $0x648] sm:$0xff] %v8335_v14  ;;  %v8337_v46 = vpack.c.bf16 %v5791_v45, %v5789_v47 }
 0x4a1   :  { %7390 = vst [vmem:[#allocation9 + $0x650] sm:$0xff] %v8336_v28 }
 0x4a2   :  { %7391 = vst [vmem:[#allocation9 + $0x658] sm:$0xff] %v8337_v46 }
 0x4a3   :  { %v5622_v30 = vpop.f32.mrb[172].mxu0 }
 0x4a4   :  { %v5795_v23 = vpop.f32.mrb[172].mxu1  ;;  %v5624_v26 = vpop.f32.mrb[173].mxu0 }
 0x4a5   :  { %v5797_v54 = vpop.f32.mrb[173].mxu1  ;;  %v8338_v16 = vpack.c.bf16 %v5624_v26, %v5622_v30  ;;  %v5626_v55 = vpop.f32.mrb[174].mxu0 }
 0x4a6   :  { %v8339_v8 = vpack.c.bf16 %v5797_v54, %v5795_v23  ;;  %v5799_v27 = vpop.f32.mrb[174].mxu1  ;;  %v5628_v1 = vpop.f32.mrb[175].mxu0 }
 0x4a7   :  { %v5801_v36 = vpop.f32.mrb[175].mxu1  ;;  %7392 = vst [vmem:[#allocation9 + $0x660] sm:$0xff] %v8338_v16  ;;  %v8340_v51 = vpack.c.bf16 %v5628_v1, %v5626_v55 }
 0x4a8   :  { %7393 = vst [vmem:[#allocation9 + $0x668] sm:$0xff] %v8339_v8  ;;  %v8341_v24 = vpack.c.bf16 %v5801_v36, %v5799_v27 }
 0x4a9   :  { %7394 = vst [vmem:[#allocation9 + $0x670] sm:$0xff] %v8340_v51 }
 0x4aa   :  { %7395 = vst [vmem:[#allocation9 + $0x678] sm:$0xff] %v8341_v24 }
 0x4ab   :  { %v5632_v40 = vpop.f32.mrb[176].mxu0 }
 0x4ac   :  { %v5805_v18 = vpop.f32.mrb[176].mxu1  ;;  %v5634_v35 = vpop.f32.mrb[177].mxu0 }
 0x4ad   :  { %v5807_v43 = vpop.f32.mrb[177].mxu1  ;;  %v8342_v41 = vpack.c.bf16 %v5634_v35, %v5632_v40  ;;  %v5636_v50 = vpop.f32.mrb[178].mxu0 }
 0x4ae   :  { %v8343_v48 = vpack.c.bf16 %v5807_v43, %v5805_v18  ;;  %v5809_v32 = vpop.f32.mrb[178].mxu1  ;;  %v5638_v5 = vpop.f32.mrb[179].mxu0 }
 0x4af   :  { %v5811_v53 = vpop.f32.mrb[179].mxu1  ;;  %7396 = vst [vmem:[#allocation9 + $0x680] sm:$0xff] %v8342_v41  ;;  %v8344_v31 = vpack.c.bf16 %v5638_v5, %v5636_v50 }
 0x4b0   :  { %7397 = vst [vmem:[#allocation9 + $0x688] sm:$0xff] %v8343_v48  ;;  %v8345_v33 = vpack.c.bf16 %v5811_v53, %v5809_v32 }
 0x4b1   :  { %7398 = vst [vmem:[#allocation9 + $0x690] sm:$0xff] %v8344_v31 }
 0x4b2   :  { %7399 = vst [vmem:[#allocation9 + $0x698] sm:$0xff] %v8345_v33 }
 0x4b3   :  { %v5642_v38 = vpop.f32.mrb[180].mxu0 }
 0x4b4   :  { %v5815_v34 = vpop.f32.mrb[180].mxu1  ;;  %v5644_v56 = vpop.f32.mrb[181].mxu0 }
 0x4b5   :  { %v5817_v61 = vpop.f32.mrb[181].mxu1  ;;  %v8346_v10 = vpack.c.bf16 %v5644_v56, %v5642_v38  ;;  %v5646_v0 = vpop.f32.mrb[182].mxu0 }
 0x4b6   :  { %v8347_v2 = vpack.c.bf16 %v5817_v61, %v5815_v34  ;;  %v5819_v49 = vpop.f32.mrb[182].mxu1  ;;  %v5648_v9 = vpop.f32.mrb[183].mxu0 }
 0x4b7   :  { %v5821_v29 = vpop.f32.mrb[183].mxu1  ;;  %7400 = vst [vmem:[#allocation9 + $0x6a0] sm:$0xff] %v8346_v10  ;;  %v8348_v17 = vpack.c.bf16 %v5648_v9, %v5646_v0 }
 0x4b8   :  { %7401 = vst [vmem:[#allocation9 + $0x6a8] sm:$0xff] %v8347_v2  ;;  %v8349_v3 = vpack.c.bf16 %v5821_v29, %v5819_v49 }
 0x4b9   :  { %7402 = vst [vmem:[#allocation9 + $0x6b0] sm:$0xff] %v8348_v17 }
 0x4ba   :  { %7403 = vst [vmem:[#allocation9 + $0x6b8] sm:$0xff] %v8349_v3 }
 0x4bb   :  { %v5652_v57 = vpop.f32.mrb[184].mxu0 }
 0x4bc   :  { %v5825_v25 = vpop.f32.mrb[184].mxu1  ;;  %v5654_v15 = vpop.f32.mrb[185].mxu0 }
 0x4bd   :  { %v5827_v39 = vpop.f32.mrb[185].mxu1  ;;  %v8350_v21 = vpack.c.bf16 %v5654_v15, %v5652_v57  ;;  %v5656_v11 = vpop.f32.mrb[186].mxu0 }
 0x4be   :  { %v8351_v60 = vpack.c.bf16 %v5827_v39, %v5825_v25  ;;  %v5829_v22 = vpop.f32.mrb[186].mxu1  ;;  %v5658_v12 = vpop.f32.mrb[187].mxu0 }
 0x4bf   :  { %v5831_v4 = vpop.f32.mrb[187].mxu1  ;;  %7404 = vst [vmem:[#allocation9 + $0x6c0] sm:$0xff] %v8350_v21  ;;  %v8352_v20 = vpack.c.bf16 %v5658_v12, %v5656_v11 }
 0x4c0   :  { %7405 = vst [vmem:[#allocation9 + $0x6c8] sm:$0xff] %v8351_v60  ;;  %v8353_v63 = vpack.c.bf16 %v5831_v4, %v5829_v22 }
 0x4c1   :  { %7406 = vst [vmem:[#allocation9 + $0x6d0] sm:$0xff] %v8352_v20 }
 0x4c2   :  { %7407 = vst [vmem:[#allocation9 + $0x6d8] sm:$0xff] %v8353_v63 }
 0x4c3   :  { %v5662_v37 = vpop.f32.mrb[188].mxu0 }
 0x4c4   :  { %v5835_v52 = vpop.f32.mrb[188].mxu1  ;;  %v5664_v44 = vpop.f32.mrb[189].mxu0 }
 0x4c5   :  { %v5837_v19 = vpop.f32.mrb[189].mxu1  ;;  %v8354_v62 = vpack.c.bf16 %v5664_v44, %v5662_v37  ;;  %v5666_v42 = vpop.f32.mrb[190].mxu0 }
 0x4c6   :  { %v8355_v59 = vpack.c.bf16 %v5837_v19, %v5835_v52  ;;  %v5839_v58 = vpop.f32.mrb[190].mxu1  ;;  %v5668_v6 = vpop.f32.mrb[191].mxu0 }
 0x4c7   :  { %v5841_v14 = vpop.f32.mrb[191].mxu1  ;;  %7408 = vst [vmem:[#allocation9 + $0x6e0] sm:$0xff] %v8354_v62  ;;  %v8356_v13 = vpack.c.bf16 %v5668_v6, %v5666_v42 }
 0x4c8   :  { %7409 = vst [vmem:[#allocation9 + $0x6e8] sm:$0xff] %v8355_v59  ;;  %v8357_v47 = vpack.c.bf16 %v5841_v14, %v5839_v58 }
 0x4c9   :  { %7410 = vst [vmem:[#allocation9 + $0x6f0] sm:$0xff] %v8356_v13 }
 0x4ca   :  { %7411 = vst [vmem:[#allocation9 + $0x6f8] sm:$0xff] %v8357_v47 }
 0x4cb   :  { %8659 = shalt.err (!%p8656_p0)
}
 0x4cc   :  { %s8660_s27 = scalar_lea.hbm %s10389_s3, 28672 }
 0x4cd   :  { %p8661_p1 = scmp.ne.s32.totalorder %s10389_s3, %s8660_s27  ;;  %p8664_p2 = scmp.lt.u32.totalorder %s8660_s27, %s10389_s3 }
 0x4cf   :  { %p8666_p3 = pnand %p8664_p2, %p8661_p1 }
 0x4d1   :  { %8669 = shalt.err (!%p8666_p3)
}
 0x4d2   :  { %7423 = dma.vmem_to_hbm [thread:$0]  %s7418_s22, 28672, %s10389_s3, [#allocation5], %s8680_s1, %s8680_s1, %s8681_s9  }
 0x4d3   :  { %8674 = dma.done.wait [#allocation5], 28672  }
 0x4d4   :  { %8675 = vsyncadd [#allocation5], 4294938624 }
 0x4d5   :  { %7427 = vsyncpa [#allocation4], 1 }
 0x4d6   :  { %7428 = vsyncpa [#allocation7], 1 }
 0x4d7   :  { %7429 = vsyncpa [#allocation5], 1 }

</bundles_post_ra>
